<compile_context>
chip_gen: v7x
topology: tpu7x:2x2x1
jax: 0.10.0
libtpu: 0.0.40
codegen_flags: <defaults>
</compile_context>

<pallas_src>
import functools

import jax
import jax.numpy as jnp
import numpy as np
from jax import lax
from jax.experimental import pallas as pl
from jax.experimental.pallas import tpu as pltpu


# ----------------------------------------------------------------------------
# Fused Pallas kernel: conv1+BN+ReLU -> conv2+BN+ReLU -> conv3 -> pool -> head
# ----------------------------------------------------------------------------
def _encoder_fused_kernel(p1_ref, w1_ref, g1_ref, be1_ref,
                          w2_ref, g2_ref, be2_ref,
                          w3_ref, b3_ref,
                          o_ref,
                          x1s, p2s, x2s, p3s,
                          *, eps, z_dim, N, K, stride,
                          OH1, OW1, C1, OH2, OW2, C2, OH3, OW3, C3):
    bf16 = jnp.bfloat16

    def bn_relu(y, gamma, beta):
        # Training-mode BatchNorm2d == per-lane (channel) stats over all rows of
        # the NHWC-flattened activation.  Single pass (sum, sum-of-squares) folded
        # into one scale/shift, fused with ReLU.  All math in f32.
        m = y.shape[0]
        s1 = jnp.sum(y, axis=0, keepdims=True)
        s2 = jnp.sum(y * y, axis=0, keepdims=True)
        mu = s1 * (1.0 / m)
        var = jnp.maximum(s2 * (1.0 / m) - mu * mu, 0.0)
        scale = gamma * lax.rsqrt(var + eps)
        shift = beta - mu * scale
        return jnp.maximum(y * scale + shift, 0.0)

    def gather_patches(x_ref, patch_ref, n_batch, ih_dim, iw_dim, cin,
                       oh_dim, ow_dim):
        # In-kernel im2col: static strided-slice gathers of the VMEM-resident
        # activation, written into the (M_out, K*K*Cin) patch scratch at lane
        # offset tap*Cin.  All indices are trace-time constants.
        for n in range(n_batch):
            for oh in range(oh_dim):
                out0 = (n * oh_dim + oh) * ow_dim
                for kh in range(K):
                    row0 = (n * ih_dim + stride * oh + kh) * iw_dim
                    for kw in range(K):
                        t = kh * K + kw
                        patch_ref[out0:out0 + ow_dim, t * cin:(t + 1) * cin] = (
                            x_ref[pl.ds(row0 + kw, ow_dim, stride=stride), :])

    # ---- layer 1: conv as im2col matmul (bias dropped — cancelled by BN) + BN + ReLU
    y1 = jnp.dot(p1_ref[...], w1_ref[...], preferred_element_type=jnp.float32)
    x1s[...] = bn_relu(y1, g1_ref[...], be1_ref[...])

    # ---- layer 2: in-kernel im2col + ONE fused (M,256)@(256,C2) matmul + BN + ReLU
    gather_patches(x1s, p2s, N, OH1, OW1, C1, OH2, OW2)
    y2 = jnp.dot(p2s[...].astype(bf16), w2_ref[...],
                 preferred_element_type=jnp.float32)
    x2s[...] = bn_relu(y2, g2_ref[...], be2_ref[...])

    # ---- layer 3 (final: bias, no BN/ReLU): im2col + ONE (M,512)@(512,C3) matmul
    gather_patches(x2s, p3s, N, OH2, OW2, C2, OH3, OW3)
    y3 = jnp.dot(p3s[...].astype(bf16), w3_ref[...],
                 preferred_element_type=jnp.float32)

    # ---- adaptive average pool (1,1): identity when the layer-3 spatial output
    # is already 1x1 (28x28 input); general per-sample mean otherwise.
    S3 = OH3 * OW3
    if S3 == 1:
        enc = y3 + b3_ref[...]
    else:
        parts = [jnp.mean(y3[n * S3:(n + 1) * S3, :], axis=0, keepdims=True)
                 for n in range(N)]
        enc = jnp.concatenate(parts, axis=0) + b3_ref[...]

    # ---- head: lanes < z_dim -> mean ; lanes >= z_dim -> std = exp(0.5*logvar).
    # exp only sees the logvar lanes (mean lanes get exp(0)) — no inf in discards.
    col = lax.broadcasted_iota(jnp.int32, enc.shape, 1)
    is_logvar = col >= z_dim
    std = jnp.exp(0.5 * jnp.where(is_logvar, enc, 0.0))
    o_ref[...] = jnp.where(is_logvar, std, enc)


def _full_spec(shape):
    zeros = (0,) * len(shape)
    return pl.BlockSpec(shape, lambda i, z=zeros: z)


# ----------------------------------------------------------------------------
# Trace-time helpers
# ----------------------------------------------------------------------------
def im2col_nhwc(x_nhwc, K, stride):
    """Layer-1 patches only (C=im_chan).  Column order: (c, kh, kw)."""
    N, H, W, C = x_nhwc.shape
    OH = (H - K) // stride + 1
    OW = (W - K) // stride + 1
    cols = []
    for kh in range(K):
        for kw in range(K):
            cols.append(x_nhwc[:, kh:kh + stride * (OH - 1) + 1:stride,
                               kw:kw + stride * (OW - 1) + 1:stride, :])
    p = jnp.stack(cols, axis=3)                 # (N, OH, OW, K*K, C)
    p = jnp.transpose(p, (0, 1, 2, 4, 3))       # (N, OH, OW, C, K*K)
    return p.reshape(N * OH * OW, C * K * K), OH, OW


def _concat_weight(w_oihw, dtype):
    """(O, I, KH, KW) -> (KH*KW*I, O); row index = (kh*KW + kw)*I + c.
    Matches the in-kernel patch lane order (tap-major, channel-minor)."""
    O, I, KH, KW = w_oihw.shape
    return jnp.transpose(w_oihw, (2, 3, 1, 0)).reshape(KH * KW * I, O).astype(dtype)


# ----------------------------------------------------------------------------
# Public forward pass
# ----------------------------------------------------------------------------
def encoder_forward(image_nchw, params, z_dim=32):
    N = image_nchw.shape[0]
    K, stride = 4, 2
    bf16 = jnp.bfloat16

    # Layer-1 im2col against NHWC (single small HBM input: (N*OH1*OW1, Cin*K*K)).
    x_nhwc = jnp.transpose(image_nchw, (0, 2, 3, 1))
    p1, OH1, OW1 = im2col_nhwc(x_nhwc, K, stride)

    w1, w2, w3 = (p["w"] for p in params)
    c1, c2, c3 = w1.shape[0], w2.shape[0], w3.shape[0]
    assert c3 == 2 * z_dim

    w1f = w1.reshape(c1, -1).T.astype(bf16)     # (Cin*K*K, c1) — matches p1 cols
    w2cat = _concat_weight(w2, bf16)            # (K*K*c1, c2)
    w3cat = _concat_weight(w3, bf16)            # (K*K*c2, c3)

    OH2 = (OH1 - K) // stride + 1
    OW2 = (OW1 - K) // stride + 1
    OH3 = (OH2 - K) // stride + 1
    OW3 = (OW2 - K) // stride + 1

    g1 = params[0]["gamma"].reshape(1, c1)
    be1 = params[0]["beta"].reshape(1, c1)
    g2 = params[1]["gamma"].reshape(1, c2)
    be2 = params[1]["beta"].reshape(1, c2)
    b3 = params[2]["b"].reshape(1, c3)

    args = (p1.astype(bf16), w1f, g1, be1, w2cat, g2, be2, w3cat, b3)

    kernel = functools.partial(
        _encoder_fused_kernel, eps=1e-5, z_dim=z_dim,
        N=N, K=K, stride=stride,
        OH1=OH1, OW1=OW1, C1=c1,
        OH2=OH2, OW2=OW2, C2=c2,
        OH3=OH3, OW3=OW3, C3=c3)

    out = pl.pallas_call(
        kernel,
        out_shape=jax.ShapeDtypeStruct((N, 2 * z_dim), jnp.float32),
        grid=(1,),
        in_specs=[_full_spec(a.shape) for a in args],
        out_specs=_full_spec((N, 2 * z_dim)),
        scratch_shapes=[
            pltpu.VMEM((N * OH1 * OW1, c1), jnp.float32),        # layer-1 activation
            pltpu.VMEM((N * OH2 * OW2, K * K * c1), jnp.float32),  # layer-2 patches
            pltpu.VMEM((N * OH2 * OW2, c2), jnp.float32),        # layer-2 activation
            pltpu.VMEM((N * OH3 * OW3, K * K * c2), jnp.float32),  # layer-3 patches
        ],
        compiler_params=pltpu.CompilerParams(dimension_semantics=("arbitrary",)),
    )(*args)

    return out[:, :z_dim], out[:, z_dim:]


# ----------------------------------------------------------------------------
# Parameter init (matches the nn.Module's shapes) and pure-JAX references
# ----------------------------------------------------------------------------
def make_params(key, im_chan=1, output_chan=32, hidden_dim=16):
    chans = [(im_chan, hidden_dim), (hidden_dim, hidden_dim * 2),
             (hidden_dim * 2, output_chan * 2)]
    params = []
    for (cin, cout) in chans:
        key, kw, kb = jax.random.split(key, 3)
        fan_in = cin * 4 * 4
        w = jax.random.normal(kw, (cout, cin, 4, 4), jnp.float32) / np.sqrt(fan_in)
        b = 0.01 * jax.random.normal(kb, (cout,), jnp.float32)
        gamma = jnp.ones((cout,), jnp.float32)     # BN weight
        beta = jnp.zeros((cout,), jnp.float32)     # BN bias
        params.append(dict(w=w, b=b, gamma=gamma, beta=beta))
    return params


def encoder_reference(image, params, z_dim=32, matmul_dtype=jnp.float32):
    """Reference.  matmul_dtype=bf16 mimics the kernel's MXU operand dtype."""
    x = image
    n_layers = len(params)
    for li, p in enumerate(params):
        final = li == n_layers - 1
        x = lax.conv_general_dilated(
            x.astype(matmul_dtype), p["w"].astype(matmul_dtype),
            window_strides=(2, 2), padding="VALID",
            dimension_numbers=("NCHW", "OIHW", "NCHW"),
            preferred_element_type=jnp.float32)
        x = x + p["b"].reshape(1, -1, 1, 1)          # faithful: bias always applied
        if not final:
            mu = jnp.mean(x, axis=(0, 2, 3), keepdims=True)
            var = jnp.mean((x - mu) ** 2, axis=(0, 2, 3), keepdims=True)
            x = (x - mu) * lax.rsqrt(var + 1e-5)
            x = x * p["gamma"].reshape(1, -1, 1, 1) + p["beta"].reshape(1, -1, 1, 1)
            x = jnp.maximum(x, 0.0)
    enc = jnp.mean(x, axis=(2, 3))
    return enc[:, :z_dim], jnp.exp(0.5 * enc[:, z_dim:])


# ----------------------------------------------------------------------------
if __name__ == "__main__":
    key = jax.random.PRNGKey(0)
    k_img, k_par = jax.random.split(key)

    # batch=2, im_chan=1, 28x28 (three stride-2 valid convs end at 1x1 spatial)
    image = jax.random.normal(k_img, (2, 1, 28, 28), jnp.float32)
    params = make_params(k_par, im_chan=1, output_chan=32, hidden_dim=16)

    mean, std = jax.jit(encoder_forward)(image, params)
    jax.block_until_ready((mean, std))

    # Tight check vs a reference that uses the same bf16 MXU operand dtype.
    m_bf, s_bf = encoder_reference(image, params, matmul_dtype=jnp.bfloat16)
    np.testing.assert_allclose(np.asarray(mean), np.asarray(m_bf), rtol=5e-3, atol=5e-3)
    np.testing.assert_allclose(np.asarray(std), np.asarray(s_bf), rtol=5e-3, atol=5e-3)

    # Loose sanity check vs the pure-f32 reference (bounds bf16 rounding drift).
    m_f32, s_f32 = encoder_reference(image, params, matmul_dtype=jnp.float32)
    np.testing.assert_allclose(np.asarray(mean), np.asarray(m_f32), rtol=1e-1, atol=1e-1)
    np.testing.assert_allclose(np.asarray(std), np.asarray(s_f32), rtol=1e-1, atol=1e-1)

    assert mean.shape == (2, 32) and std.shape == (2, 32)
    print("KERNEL_OK")
</pallas_src>

<mosaic_0001>
module attributes {stable_mosaic.version = 11 : i64} {
  func.func @_encoder_fused_kernel(%arg0: i32, %arg1: memref<338x16xbf16, #tpu.memory_space<vmem>>, %arg2: memref<16x16xbf16, #tpu.memory_space<vmem>>, %arg3: memref<1x16xf32, #tpu.memory_space<vmem>>, %arg4: memref<1x16xf32, #tpu.memory_space<vmem>>, %arg5: memref<256x32xbf16, #tpu.memory_space<vmem>>, %arg6: memref<1x32xf32, #tpu.memory_space<vmem>>, %arg7: memref<1x32xf32, #tpu.memory_space<vmem>>, %arg8: memref<512x64xbf16, #tpu.memory_space<vmem>>, %arg9: memref<1x64xf32, #tpu.memory_space<vmem>>, %arg10: memref<2x64xf32, #tpu.memory_space<vmem>>, %arg11: memref<338x16xf32, #tpu.memory_space<vmem>>, %arg12: memref<50x256xf32, #tpu.memory_space<vmem>>, %arg13: memref<50x32xf32, #tpu.memory_space<vmem>>, %arg14: memref<2x512xf32, #tpu.memory_space<vmem>>) attributes {dimension_semantics = [#tpu.dimension_semantics<arbitrary>], iteration_bounds = array<i64: 1>, scalar_prefetch = 0 : i64, scratch_operands = 4 : i64, tpu.core_type = #tpu.core_type<tc>, window_params = [{pipeline_mode = #tpu.pipeline_mode<synchronous>, transform_indices = @transform_0, window_bounds = array<i64: 338, 16>}, {pipeline_mode = #tpu.pipeline_mode<synchronous>, transform_indices = @transform_1, window_bounds = array<i64: 16, 16>}, {pipeline_mode = #tpu.pipeline_mode<synchronous>, transform_indices = @transform_2, window_bounds = array<i64: 1, 16>}, {pipeline_mode = #tpu.pipeline_mode<synchronous>, transform_indices = @transform_3, window_bounds = array<i64: 1, 16>}, {pipeline_mode = #tpu.pipeline_mode<synchronous>, transform_indices = @transform_4, window_bounds = array<i64: 256, 32>}, {pipeline_mode = #tpu.pipeline_mode<synchronous>, transform_indices = @transform_5, window_bounds = array<i64: 1, 32>}, {pipeline_mode = #tpu.pipeline_mode<synchronous>, transform_indices = @transform_6, window_bounds = array<i64: 1, 32>}, {pipeline_mode = #tpu.pipeline_mode<synchronous>, transform_indices = @transform_7, window_bounds = array<i64: 512, 64>}, {pipeline_mode = #tpu.pipeline_mode<synchronous>, transform_indices = @transform_8, window_bounds = array<i64: 1, 64>}, {pipeline_mode = #tpu.pipeline_mode<synchronous>, transform_indices = @transform_9, window_bounds = array<i64: 2, 64>}]} {
    %c0 = arith.constant 0 : index
    %c0_0 = arith.constant 0 : index
    %0 = vector.load %arg1[%c0, %c0_0] : memref<338x16xbf16, #tpu.memory_space<vmem>>, vector<338x16xbf16>
    %c0_1 = arith.constant 0 : index
    %c0_2 = arith.constant 0 : index
    %1 = vector.load %arg2[%c0_1, %c0_2] : memref<16x16xbf16, #tpu.memory_space<vmem>>, vector<16x16xbf16>
    %cst = arith.constant dense<0.000000e+00> : vector<338x16xf32>
    %2 = tpu.matmul %0, %1, %cst {dimension_numbers = #tpu.dot_dimension_numbers<[1], [0], [0], [1], [0, 0, 1, 1], [], []>} : vector<338x16xbf16>, vector<16x16xbf16>, vector<338x16xf32> -> vector<338x16xf32>
    %c0_3 = arith.constant 0 : index
    %c0_4 = arith.constant 0 : index
    %3 = vector.load %arg3[%c0_3, %c0_4] : memref<1x16xf32, #tpu.memory_space<vmem>>, vector<1x16xf32>
    %c0_5 = arith.constant 0 : index
    %c0_6 = arith.constant 0 : index
    %4 = vector.load %arg4[%c0_5, %c0_6] : memref<1x16xf32, #tpu.memory_space<vmem>>, vector<1x16xf32>
    %cst_7 = arith.constant dense<0.000000e+00> : vector<16xf32>
    %5 = vector.multi_reduction <add>, %2, %cst_7 [0] : vector<338x16xf32> to vector<16xf32>
    %6 = vector.shape_cast %5 : vector<16xf32> to vector<1x16xf32>
    %7 = arith.mulf %2, %2 : vector<338x16xf32>
    %cst_8 = arith.constant dense<0.000000e+00> : vector<16xf32>
    %8 = vector.multi_reduction <add>, %7, %cst_8 [0] : vector<338x16xf32> to vector<16xf32>
    %9 = vector.shape_cast %8 : vector<16xf32> to vector<1x16xf32>
    %cst_9 = arith.constant 2.958580e-03 : f32
    %10 = vector.broadcast %cst_9 : f32 to vector<1x16xf32>
    %11 = arith.mulf %6, %10 : vector<1x16xf32>
    %cst_10 = arith.constant 2.958580e-03 : f32
    %12 = vector.broadcast %cst_10 : f32 to vector<1x16xf32>
    %13 = arith.mulf %9, %12 : vector<1x16xf32>
    %14 = arith.mulf %11, %11 : vector<1x16xf32>
    %15 = arith.subf %13, %14 : vector<1x16xf32>
    %cst_11 = arith.constant 0.000000e+00 : f32
    %16 = vector.broadcast %cst_11 : f32 to vector<1x16xf32>
    %17 = arith.maximumf %15, %16 : vector<1x16xf32>
    %cst_12 = arith.constant 9.99999974E-6 : f32
    %18 = vector.broadcast %cst_12 : f32 to vector<1x16xf32>
    %19 = arith.addf %17, %18 : vector<1x16xf32>
    %20 = math.rsqrt %19 : vector<1x16xf32>
    %21 = arith.mulf %3, %20 : vector<1x16xf32>
    %22 = arith.mulf %11, %21 : vector<1x16xf32>
    %23 = arith.subf %4, %22 : vector<1x16xf32>
    %24 = vector.broadcast %21 : vector<1x16xf32> to vector<338x16xf32>
    %25 = arith.mulf %2, %24 : vector<338x16xf32>
    %26 = vector.broadcast %23 : vector<1x16xf32> to vector<338x16xf32>
    %27 = arith.addf %25, %26 : vector<338x16xf32>
    %cst_13 = arith.constant 0.000000e+00 : f32
    %28 = vector.broadcast %cst_13 : f32 to vector<338x16xf32>
    %29 = arith.maximumf %27, %28 : vector<338x16xf32>
    %c0_14 = arith.constant 0 : index
    %c0_15 = arith.constant 0 : index
    %30 = vector.load %arg11[%c0_14, %c0_15] : memref<338x16xf32, #tpu.memory_space<vmem>>, vector<338x16xf32>
    tpu.vector_store %arg11[%c0_14, %c0_15], %29 {strides = array<i32>} : memref<338x16xf32, #tpu.memory_space<vmem>>, vector<338x16xf32>,
    %c0_16 = arith.constant 0 : index
    %c0_17 = arith.constant 0 : index
    %31 = tpu.strided_load %arg11[%c0_16, %c0_17] {strides = array<i32: 2, 1>} : memref<338x16xf32, #tpu.memory_space<vmem>>, vector<5x16xf32>
    %c0_18 = arith.constant 0 : index
    %c0_19 = arith.constant 0 : index
    %32 = vector.load %arg12[%c0_18, %c0_19] : memref<50x256xf32, #tpu.memory_space<vmem>>, vector<5x16xf32>
    tpu.vector_store %arg12[%c0_18, %c0_19], %31 {strides = array<i32>} : memref<50x256xf32, #tpu.memory_space<vmem>>, vector<5x16xf32>,
    %c1 = arith.constant 1 : index
    %c0_20 = arith.constant 0 : index
    %33 = tpu.strided_load %arg11[%c1, %c0_20] {strides = array<i32: 2, 1>} : memref<338x16xf32, #tpu.memory_space<vmem>>, vector<5x16xf32>
    %c0_21 = arith.constant 0 : index
    %c16 = arith.constant 16 : index
    %34 = vector.load %arg12[%c0_21, %c16] : memref<50x256xf32, #tpu.memory_space<vmem>>, vector<5x16xf32>
    tpu.vector_store %arg12[%c0_21, %c16], %33 {strides = array<i32>} : memref<50x256xf32, #tpu.memory_space<vmem>>, vector<5x16xf32>,
    %c2 = arith.constant 2 : index
    %c0_22 = arith.constant 0 : index
    %35 = tpu.strided_load %arg11[%c2, %c0_22] {strides = array<i32: 2, 1>} : memref<338x16xf32, #tpu.memory_space<vmem>>, vector<5x16xf32>
    %c0_23 = arith.constant 0 : index
    %c32 = arith.constant 32 : index
    %36 = vector.load %arg12[%c0_23, %c32] : memref<50x256xf32, #tpu.memory_space<vmem>>, vector<5x16xf32>
    tpu.vector_store %arg12[%c0_23, %c32], %35 {strides = array<i32>} : memref<50x256xf32, #tpu.memory_space<vmem>>, vector<5x16xf32>,
    %c3 = arith.constant 3 : index
    %c0_24 = arith.constant 0 : index
    %37 = tpu.strided_load %arg11[%c3, %c0_24] {strides = array<i32: 2, 1>} : memref<338x16xf32, #tpu.memory_space<vmem>>, vector<5x16xf32>
    %c0_25 = arith.constant 0 : index
    %c48 = arith.constant 48 : index
    %38 = vector.load %arg12[%c0_25, %c48] : memref<50x256xf32, #tpu.memory_space<vmem>>, vector<5x16xf32>
    tpu.vector_store %arg12[%c0_25, %c48], %37 {strides = array<i32>} : memref<50x256xf32, #tpu.memory_space<vmem>>, vector<5x16xf32>,
    %c13 = arith.constant 13 : index
    %c0_26 = arith.constant 0 : index
    %39 = tpu.strided_load %arg11[%c13, %c0_26] {strides = array<i32: 2, 1>} : memref<338x16xf32, #tpu.memory_space<vmem>>, vector<5x16xf32>
    %c0_27 = arith.constant 0 : index
    %c64 = arith.constant 64 : index
    %40 = vector.load %arg12[%c0_27, %c64] : memref<50x256xf32, #tpu.memory_space<vmem>>, vector<5x16xf32>
    tpu.vector_store %arg12[%c0_27, %c64], %39 {strides = array<i32>} : memref<50x256xf32, #tpu.memory_space<vmem>>, vector<5x16xf32>,
    %c14 = arith.constant 14 : index
    %c0_28 = arith.constant 0 : index
    %41 = tpu.strided_load %arg11[%c14, %c0_28] {strides = array<i32: 2, 1>} : memref<338x16xf32, #tpu.memory_space<vmem>>, vector<5x16xf32>
    %c0_29 = arith.constant 0 : index
    %c80 = arith.constant 80 : index
    %42 = vector.load %arg12[%c0_29, %c80] : memref<50x256xf32, #tpu.memory_space<vmem>>, vector<5x16xf32>
    tpu.vector_store %arg12[%c0_29, %c80], %41 {strides = array<i32>} : memref<50x256xf32, #tpu.memory_space<vmem>>, vector<5x16xf32>,
    %c15 = arith.constant 15 : index
    %c0_30 = arith.constant 0 : index
    %43 = tpu.strided_load %arg11[%c15, %c0_30] {strides = array<i32: 2, 1>} : memref<338x16xf32, #tpu.memory_space<vmem>>, vector<5x16xf32>
    %c0_31 = arith.constant 0 : index
    %c96 = arith.constant 96 : index
    %44 = vector.load %arg12[%c0_31, %c96] : memref<50x256xf32, #tpu.memory_space<vmem>>, vector<5x16xf32>
    tpu.vector_store %arg12[%c0_31, %c96], %43 {strides = array<i32>} : memref<50x256xf32, #tpu.memory_space<vmem>>, vector<5x16xf32>,
    %c16_32 = arith.constant 16 : index
    %c0_33 = arith.constant 0 : index
    %45 = tpu.strided_load %arg11[%c16_32, %c0_33] {strides = array<i32: 2, 1>} : memref<338x16xf32, #tpu.memory_space<vmem>>, vector<5x16xf32>
    %c0_34 = arith.constant 0 : index
    %c112 = arith.constant 112 : index
    %46 = vector.load %arg12[%c0_34, %c112] : memref<50x256xf32, #tpu.memory_space<vmem>>, vector<5x16xf32>
    tpu.vector_store %arg12[%c0_34, %c112], %45 {strides = array<i32>} : memref<50x256xf32, #tpu.memory_space<vmem>>, vector<5x16xf32>,
    %c26 = arith.constant 26 : index
    %c0_35 = arith.constant 0 : index
    %47 = tpu.strided_load %arg11[%c26, %c0_35] {strides = array<i32: 2, 1>} : memref<338x16xf32, #tpu.memory_space<vmem>>, vector<5x16xf32>
    %c0_36 = arith.constant 0 : index
    %c128 = arith.constant 128 : index
    %48 = vector.load %arg12[%c0_36, %c128] : memref<50x256xf32, #tpu.memory_space<vmem>>, vector<5x16xf32>
    tpu.vector_store %arg12[%c0_36, %c128], %47 {strides = array<i32>} : memref<50x256xf32, #tpu.memory_space<vmem>>, vector<5x16xf32>,
    %c27 = arith.constant 27 : index
    %c0_37 = arith.constant 0 : index
    %49 = tpu.strided_load %arg11[%c27, %c0_37] {strides = array<i32: 2, 1>} : memref<338x16xf32, #tpu.memory_space<vmem>>, vector<5x16xf32>
    %c0_38 = arith.constant 0 : index
    %c144 = arith.constant 144 : index
    %50 = vector.load %arg12[%c0_38, %c144] : memref<50x256xf32, #tpu.memory_space<vmem>>, vector<5x16xf32>
    tpu.vector_store %arg12[%c0_38, %c144], %49 {strides = array<i32>} : memref<50x256xf32, #tpu.memory_space<vmem>>, vector<5x16xf32>,
    %c28 = arith.constant 28 : index
    %c0_39 = arith.constant 0 : index
    %51 = tpu.strided_load %arg11[%c28, %c0_39] {strides = array<i32: 2, 1>} : memref<338x16xf32, #tpu.memory_space<vmem>>, vector<5x16xf32>
    %c0_40 = arith.constant 0 : index
    %c160 = arith.constant 160 : index
    %52 = vector.load %arg12[%c0_40, %c160] : memref<50x256xf32, #tpu.memory_space<vmem>>, vector<5x16xf32>
    tpu.vector_store %arg12[%c0_40, %c160], %51 {strides = array<i32>} : memref<50x256xf32, #tpu.memory_space<vmem>>, vector<5x16xf32>,
    %c29 = arith.constant 29 : index
    %c0_41 = arith.constant 0 : index
    %53 = tpu.strided_load %arg11[%c29, %c0_41] {strides = array<i32: 2, 1>} : memref<338x16xf32, #tpu.memory_space<vmem>>, vector<5x16xf32>
    %c0_42 = arith.constant 0 : index
    %c176 = arith.constant 176 : index
    %54 = vector.load %arg12[%c0_42, %c176] : memref<50x256xf32, #tpu.memory_space<vmem>>, vector<5x16xf32>
    tpu.vector_store %arg12[%c0_42, %c176], %53 {strides = array<i32>} : memref<50x256xf32, #tpu.memory_space<vmem>>, vector<5x16xf32>,
    %c39 = arith.constant 39 : index
    %c0_43 = arith.constant 0 : index
    %55 = tpu.strided_load %arg11[%c39, %c0_43] {strides = array<i32: 2, 1>} : memref<338x16xf32, #tpu.memory_space<vmem>>, vector<5x16xf32>
    %c0_44 = arith.constant 0 : index
    %c192 = arith.constant 192 : index
    %56 = vector.load %arg12[%c0_44, %c192] : memref<50x256xf32, #tpu.memory_space<vmem>>, vector<5x16xf32>
    tpu.vector_store %arg12[%c0_44, %c192], %55 {strides = array<i32>} : memref<50x256xf32, #tpu.memory_space<vmem>>, vector<5x16xf32>,
    %c40 = arith.constant 40 : index
    %c0_45 = arith.constant 0 : index
    %57 = tpu.strided_load %arg11[%c40, %c0_45] {strides = array<i32: 2, 1>} : memref<338x16xf32, #tpu.memory_space<vmem>>, vector<5x16xf32>
    %c0_46 = arith.constant 0 : index
    %c208 = arith.constant 208 : index
    %58 = vector.load %arg12[%c0_46, %c208] : memref<50x256xf32, #tpu.memory_space<vmem>>, vector<5x16xf32>
    tpu.vector_store %arg12[%c0_46, %c208], %57 {strides = array<i32>} : memref<50x256xf32, #tpu.memory_space<vmem>>, vector<5x16xf32>,
    %c41 = arith.constant 41 : index
    %c0_47 = arith.constant 0 : index
    %59 = tpu.strided_load %arg11[%c41, %c0_47] {strides = array<i32: 2, 1>} : memref<338x16xf32, #tpu.memory_space<vmem>>, vector<5x16xf32>
    %c0_48 = arith.constant 0 : index
    %c224 = arith.constant 224 : index
    %60 = vector.load %arg12[%c0_48, %c224] : memref<50x256xf32, #tpu.memory_space<vmem>>, vector<5x16xf32>
    tpu.vector_store %arg12[%c0_48, %c224], %59 {strides = array<i32>} : memref<50x256xf32, #tpu.memory_space<vmem>>, vector<5x16xf32>,
    %c42 = arith.constant 42 : index
    %c0_49 = arith.constant 0 : index
    %61 = tpu.strided_load %arg11[%c42, %c0_49] {strides = array<i32: 2, 1>} : memref<338x16xf32, #tpu.memory_space<vmem>>, vector<5x16xf32>
    %c0_50 = arith.constant 0 : index
    %c240 = arith.constant 240 : index
    %62 = vector.load %arg12[%c0_50, %c240] : memref<50x256xf32, #tpu.memory_space<vmem>>, vector<5x16xf32>
    tpu.vector_store %arg12[%c0_50, %c240], %61 {strides = array<i32>} : memref<50x256xf32, #tpu.memory_space<vmem>>, vector<5x16xf32>,
    %c26_51 = arith.constant 26 : index
    %c0_52 = arith.constant 0 : index
    %63 = tpu.strided_load %arg11[%c26_51, %c0_52] {strides = array<i32: 2, 1>} : memref<338x16xf32, #tpu.memory_space<vmem>>, vector<5x16xf32>
    %c5 = arith.constant 5 : index
    %c0_53 = arith.constant 0 : index
    %64 = vector.load %arg12[%c5, %c0_53] : memref<50x256xf32, #tpu.memory_space<vmem>>, vector<5x16xf32>
    tpu.vector_store %arg12[%c5, %c0_53], %63 {strides = array<i32>} : memref<50x256xf32, #tpu.memory_space<vmem>>, vector<5x16xf32>,
    %c27_54 = arith.constant 27 : index
    %c0_55 = arith.constant 0 : index
    %65 = tpu.strided_load %arg11[%c27_54, %c0_55] {strides = array<i32: 2, 1>} : memref<338x16xf32, #tpu.memory_space<vmem>>, vector<5x16xf32>
    %c5_56 = arith.constant 5 : index
    %c16_57 = arith.constant 16 : index
    %66 = vector.load %arg12[%c5_56, %c16_57] : memref<50x256xf32, #tpu.memory_space<vmem>>, vector<5x16xf32>
    tpu.vector_store %arg12[%c5_56, %c16_57], %65 {strides = array<i32>} : memref<50x256xf32, #tpu.memory_space<vmem>>, vector<5x16xf32>,
    %c28_58 = arith.constant 28 : index
    %c0_59 = arith.constant 0 : index
    %67 = tpu.strided_load %arg11[%c28_58, %c0_59] {strides = array<i32: 2, 1>} : memref<338x16xf32, #tpu.memory_space<vmem>>, vector<5x16xf32>
    %c5_60 = arith.constant 5 : index
    %c32_61 = arith.constant 32 : index
    %68 = vector.load %arg12[%c5_60, %c32_61] : memref<50x256xf32, #tpu.memory_space<vmem>>, vector<5x16xf32>
    tpu.vector_store %arg12[%c5_60, %c32_61], %67 {strides = array<i32>} : memref<50x256xf32, #tpu.memory_space<vmem>>, vector<5x16xf32>,
    %c29_62 = arith.constant 29 : index
    %c0_63 = arith.constant 0 : index
    %69 = tpu.strided_load %arg11[%c29_62, %c0_63] {strides = array<i32: 2, 1>} : memref<338x16xf32, #tpu.memory_space<vmem>>, vector<5x16xf32>
    %c5_64 = arith.constant 5 : index
    %c48_65 = arith.constant 48 : index
    %70 = vector.load %arg12[%c5_64, %c48_65] : memref<50x256xf32, #tpu.memory_space<vmem>>, vector<5x16xf32>
    tpu.vector_store %arg12[%c5_64, %c48_65], %69 {strides = array<i32>} : memref<50x256xf32, #tpu.memory_space<vmem>>, vector<5x16xf32>,
    %c39_66 = arith.constant 39 : index
    %c0_67 = arith.constant 0 : index
    %71 = tpu.strided_load %arg11[%c39_66, %c0_67] {strides = array<i32: 2, 1>} : memref<338x16xf32, #tpu.memory_space<vmem>>, vector<5x16xf32>
    %c5_68 = arith.constant 5 : index
    %c64_69 = arith.constant 64 : index
    %72 = vector.load %arg12[%c5_68, %c64_69] : memref<50x256xf32, #tpu.memory_space<vmem>>, vector<5x16xf32>
    tpu.vector_store %arg12[%c5_68, %c64_69], %71 {strides = array<i32>} : memref<50x256xf32, #tpu.memory_space<vmem>>, vector<5x16xf32>,
    %c40_70 = arith.constant 40 : index
    %c0_71 = arith.constant 0 : index
    %73 = tpu.strided_load %arg11[%c40_70, %c0_71] {strides = array<i32: 2, 1>} : memref<338x16xf32, #tpu.memory_space<vmem>>, vector<5x16xf32>
    %c5_72 = arith.constant 5 : index
    %c80_73 = arith.constant 80 : index
    %74 = vector.load %arg12[%c5_72, %c80_73] : memref<50x256xf32, #tpu.memory_space<vmem>>, vector<5x16xf32>
    tpu.vector_store %arg12[%c5_72, %c80_73], %73 {strides = array<i32>} : memref<50x256xf32, #tpu.memory_space<vmem>>, vector<5x16xf32>,
    %c41_74 = arith.constant 41 : index
    %c0_75 = arith.constant 0 : index
    %75 = tpu.strided_load %arg11[%c41_74, %c0_75] {strides = array<i32: 2, 1>} : memref<338x16xf32, #tpu.memory_space<vmem>>, vector<5x16xf32>
    %c5_76 = arith.constant 5 : index
    %c96_77 = arith.constant 96 : index
    %76 = vector.load %arg12[%c5_76, %c96_77] : memref<50x256xf32, #tpu.memory_space<vmem>>, vector<5x16xf32>
    tpu.vector_store %arg12[%c5_76, %c96_77], %75 {strides = array<i32>} : memref<50x256xf32, #tpu.memory_space<vmem>>, vector<5x16xf32>,
    %c42_78 = arith.constant 42 : index
    %c0_79 = arith.constant 0 : index
    %77 = tpu.strided_load %arg11[%c42_78, %c0_79] {strides = array<i32: 2, 1>} : memref<338x16xf32, #tpu.memory_space<vmem>>, vector<5x16xf32>
    %c5_80 = arith.constant 5 : index
    %c112_81 = arith.constant 112 : index
    %78 = vector.load %arg12[%c5_80, %c112_81] : memref<50x256xf32, #tpu.memory_space<vmem>>, vector<5x16xf32>
    tpu.vector_store %arg12[%c5_80, %c112_81], %77 {strides = array<i32>} : memref<50x256xf32, #tpu.memory_space<vmem>>, vector<5x16xf32>,
    %c52 = arith.constant 52 : index
    %c0_82 = arith.constant 0 : index
    %79 = tpu.strided_load %arg11[%c52, %c0_82] {strides = array<i32: 2, 1>} : memref<338x16xf32, #tpu.memory_space<vmem>>, vector<5x16xf32>
    %c5_83 = arith.constant 5 : index
    %c128_84 = arith.constant 128 : index
    %80 = vector.load %arg12[%c5_83, %c128_84] : memref<50x256xf32, #tpu.memory_space<vmem>>, vector<5x16xf32>
    tpu.vector_store %arg12[%c5_83, %c128_84], %79 {strides = array<i32>} : memref<50x256xf32, #tpu.memory_space<vmem>>, vector<5x16xf32>,
    %c53 = arith.constant 53 : index
    %c0_85 = arith.constant 0 : index
    %81 = tpu.strided_load %arg11[%c53, %c0_85] {strides = array<i32: 2, 1>} : memref<338x16xf32, #tpu.memory_space<vmem>>, vector<5x16xf32>
    %c5_86 = arith.constant 5 : index
    %c144_87 = arith.constant 144 : index
    %82 = vector.load %arg12[%c5_86, %c144_87] : memref<50x256xf32, #tpu.memory_space<vmem>>, vector<5x16xf32>
    tpu.vector_store %arg12[%c5_86, %c144_87], %81 {strides = array<i32>} : memref<50x256xf32, #tpu.memory_space<vmem>>, vector<5x16xf32>,
    %c54 = arith.constant 54 : index
    %c0_88 = arith.constant 0 : index
    %83 = tpu.strided_load %arg11[%c54, %c0_88] {strides = array<i32: 2, 1>} : memref<338x16xf32, #tpu.memory_space<vmem>>, vector<5x16xf32>
    %c5_89 = arith.constant 5 : index
    %c160_90 = arith.constant 160 : index
    %84 = vector.load %arg12[%c5_89, %c160_90] : memref<50x256xf32, #tpu.memory_space<vmem>>, vector<5x16xf32>
    tpu.vector_store %arg12[%c5_89, %c160_90], %83 {strides = array<i32>} : memref<50x256xf32, #tpu.memory_space<vmem>>, vector<5x16xf32>,
    %c55 = arith.constant 55 : index
    %c0_91 = arith.constant 0 : index
    %85 = tpu.strided_load %arg11[%c55, %c0_91] {strides = array<i32: 2, 1>} : memref<338x16xf32, #tpu.memory_space<vmem>>, vector<5x16xf32>
    %c5_92 = arith.constant 5 : index
    %c176_93 = arith.constant 176 : index
    %86 = vector.load %arg12[%c5_92, %c176_93] : memref<50x256xf32, #tpu.memory_space<vmem>>, vector<5x16xf32>
    tpu.vector_store %arg12[%c5_92, %c176_93], %85 {strides = array<i32>} : memref<50x256xf32, #tpu.memory_space<vmem>>, vector<5x16xf32>,
    %c65 = arith.constant 65 : index
    %c0_94 = arith.constant 0 : index
    %87 = tpu.strided_load %arg11[%c65, %c0_94] {strides = array<i32: 2, 1>} : memref<338x16xf32, #tpu.memory_space<vmem>>, vector<5x16xf32>
    %c5_95 = arith.constant 5 : index
    %c192_96 = arith.constant 192 : index
    %88 = vector.load %arg12[%c5_95, %c192_96] : memref<50x256xf32, #tpu.memory_space<vmem>>, vector<5x16xf32>
    tpu.vector_store %arg12[%c5_95, %c192_96], %87 {strides = array<i32>} : memref<50x256xf32, #tpu.memory_space<vmem>>, vector<5x16xf32>,
    %c66 = arith.constant 66 : index
    %c0_97 = arith.constant 0 : index
    %89 = tpu.strided_load %arg11[%c66, %c0_97] {strides = array<i32: 2, 1>} : memref<338x16xf32, #tpu.memory_space<vmem>>, vector<5x16xf32>
    %c5_98 = arith.constant 5 : index
    %c208_99 = arith.constant 208 : index
    %90 = vector.load %arg12[%c5_98, %c208_99] : memref<50x256xf32, #tpu.memory_space<vmem>>, vector<5x16xf32>
    tpu.vector_store %arg12[%c5_98, %c208_99], %89 {strides = array<i32>} : memref<50x256xf32, #tpu.memory_space<vmem>>, vector<5x16xf32>,
    %c67 = arith.constant 67 : index
    %c0_100 = arith.constant 0 : index
    %91 = tpu.strided_load %arg11[%c67, %c0_100] {strides = array<i32: 2, 1>} : memref<338x16xf32, #tpu.memory_space<vmem>>, vector<5x16xf32>
    %c5_101 = arith.constant 5 : index
    %c224_102 = arith.constant 224 : index
    %92 = vector.load %arg12[%c5_101, %c224_102] : memref<50x256xf32, #tpu.memory_space<vmem>>, vector<5x16xf32>
    tpu.vector_store %arg12[%c5_101, %c224_102], %91 {strides = array<i32>} : memref<50x256xf32, #tpu.memory_space<vmem>>, vector<5x16xf32>,
    %c68 = arith.constant 68 : index
    %c0_103 = arith.constant 0 : index
    %93 = tpu.strided_load %arg11[%c68, %c0_103] {strides = array<i32: 2, 1>} : memref<338x16xf32, #tpu.memory_space<vmem>>, vector<5x16xf32>
    %c5_104 = arith.constant 5 : index
    %c240_105 = arith.constant 240 : index
    %94 = vector.load %arg12[%c5_104, %c240_105] : memref<50x256xf32, #tpu.memory_space<vmem>>, vector<5x16xf32>
    tpu.vector_store %arg12[%c5_104, %c240_105], %93 {strides = array<i32>} : memref<50x256xf32, #tpu.memory_space<vmem>>, vector<5x16xf32>,
    %c52_106 = arith.constant 52 : index
    %c0_107 = arith.constant 0 : index
    %95 = tpu.strided_load %arg11[%c52_106, %c0_107] {strides = array<i32: 2, 1>} : memref<338x16xf32, #tpu.memory_space<vmem>>, vector<5x16xf32>
    %c10 = arith.constant 10 : index
    %c0_108 = arith.constant 0 : index
    %96 = vector.load %arg12[%c10, %c0_108] : memref<50x256xf32, #tpu.memory_space<vmem>>, vector<5x16xf32>
    tpu.vector_store %arg12[%c10, %c0_108], %95 {strides = array<i32>} : memref<50x256xf32, #tpu.memory_space<vmem>>, vector<5x16xf32>,
    %c53_109 = arith.constant 53 : index
    %c0_110 = arith.constant 0 : index
    %97 = tpu.strided_load %arg11[%c53_109, %c0_110] {strides = array<i32: 2, 1>} : memref<338x16xf32, #tpu.memory_space<vmem>>, vector<5x16xf32>
    %c10_111 = arith.constant 10 : index
    %c16_112 = arith.constant 16 : index
    %98 = vector.load %arg12[%c10_111, %c16_112] : memref<50x256xf32, #tpu.memory_space<vmem>>, vector<5x16xf32>
    tpu.vector_store %arg12[%c10_111, %c16_112], %97 {strides = array<i32>} : memref<50x256xf32, #tpu.memory_space<vmem>>, vector<5x16xf32>,
    %c54_113 = arith.constant 54 : index
    %c0_114 = arith.constant 0 : index
    %99 = tpu.strided_load %arg11[%c54_113, %c0_114] {strides = array<i32: 2, 1>} : memref<338x16xf32, #tpu.memory_space<vmem>>, vector<5x16xf32>
    %c10_115 = arith.constant 10 : index
    %c32_116 = arith.constant 32 : index
    %100 = vector.load %arg12[%c10_115, %c32_116] : memref<50x256xf32, #tpu.memory_space<vmem>>, vector<5x16xf32>
    tpu.vector_store %arg12[%c10_115, %c32_116], %99 {strides = array<i32>} : memref<50x256xf32, #tpu.memory_space<vmem>>, vector<5x16xf32>,
    %c55_117 = arith.constant 55 : index
    %c0_118 = arith.constant 0 : index
    %101 = tpu.strided_load %arg11[%c55_117, %c0_118] {strides = array<i32: 2, 1>} : memref<338x16xf32, #tpu.memory_space<vmem>>, vector<5x16xf32>
    %c10_119 = arith.constant 10 : index
    %c48_120 = arith.constant 48 : index
    %102 = vector.load %arg12[%c10_119, %c48_120] : memref<50x256xf32, #tpu.memory_space<vmem>>, vector<5x16xf32>
    tpu.vector_store %arg12[%c10_119, %c48_120], %101 {strides = array<i32>} : memref<50x256xf32, #tpu.memory_space<vmem>>, vector<5x16xf32>,
    %c65_121 = arith.constant 65 : index
    %c0_122 = arith.constant 0 : index
    %103 = tpu.strided_load %arg11[%c65_121, %c0_122] {strides = array<i32: 2, 1>} : memref<338x16xf32, #tpu.memory_space<vmem>>, vector<5x16xf32>
    %c10_123 = arith.constant 10 : index
    %c64_124 = arith.constant 64 : index
    %104 = vector.load %arg12[%c10_123, %c64_124] : memref<50x256xf32, #tpu.memory_space<vmem>>, vector<5x16xf32>
    tpu.vector_store %arg12[%c10_123, %c64_124], %103 {strides = array<i32>} : memref<50x256xf32, #tpu.memory_space<vmem>>, vector<5x16xf32>,
    %c66_125 = arith.constant 66 : index
    %c0_126 = arith.constant 0 : index
    %105 = tpu.strided_load %arg11[%c66_125, %c0_126] {strides = array<i32: 2, 1>} : memref<338x16xf32, #tpu.memory_space<vmem>>, vector<5x16xf32>
    %c10_127 = arith.constant 10 : index
    %c80_128 = arith.constant 80 : index
    %106 = vector.load %arg12[%c10_127, %c80_128] : memref<50x256xf32, #tpu.memory_space<vmem>>, vector<5x16xf32>
    tpu.vector_store %arg12[%c10_127, %c80_128], %105 {strides = array<i32>} : memref<50x256xf32, #tpu.memory_space<vmem>>, vector<5x16xf32>,
    %c67_129 = arith.constant 67 : index
    %c0_130 = arith.constant 0 : index
    %107 = tpu.strided_load %arg11[%c67_129, %c0_130] {strides = array<i32: 2, 1>} : memref<338x16xf32, #tpu.memory_space<vmem>>, vector<5x16xf32>
    %c10_131 = arith.constant 10 : index
    %c96_132 = arith.constant 96 : index
    %108 = vector.load %arg12[%c10_131, %c96_132] : memref<50x256xf32, #tpu.memory_space<vmem>>, vector<5x16xf32>
    tpu.vector_store %arg12[%c10_131, %c96_132], %107 {strides = array<i32>} : memref<50x256xf32, #tpu.memory_space<vmem>>, vector<5x16xf32>,
    %c68_133 = arith.constant 68 : index
    %c0_134 = arith.constant 0 : index
    %109 = tpu.strided_load %arg11[%c68_133, %c0_134] {strides = array<i32: 2, 1>} : memref<338x16xf32, #tpu.memory_space<vmem>>, vector<5x16xf32>
    %c10_135 = arith.constant 10 : index
    %c112_136 = arith.constant 112 : index
    %110 = vector.load %arg12[%c10_135, %c112_136] : memref<50x256xf32, #tpu.memory_space<vmem>>, vector<5x16xf32>
    tpu.vector_store %arg12[%c10_135, %c112_136], %109 {strides = array<i32>} : memref<50x256xf32, #tpu.memory_space<vmem>>, vector<5x16xf32>,
    %c78 = arith.constant 78 : index
    %c0_137 = arith.constant 0 : index
    %111 = tpu.strided_load %arg11[%c78, %c0_137] {strides = array<i32: 2, 1>} : memref<338x16xf32, #tpu.memory_space<vmem>>, vector<5x16xf32>
    %c10_138 = arith.constant 10 : index
    %c128_139 = arith.constant 128 : index
    %112 = vector.load %arg12[%c10_138, %c128_139] : memref<50x256xf32, #tpu.memory_space<vmem>>, vector<5x16xf32>
    tpu.vector_store %arg12[%c10_138, %c128_139], %111 {strides = array<i32>} : memref<50x256xf32, #tpu.memory_space<vmem>>, vector<5x16xf32>,
    %c79 = arith.constant 79 : index
    %c0_140 = arith.constant 0 : index
    %113 = tpu.strided_load %arg11[%c79, %c0_140] {strides = array<i32: 2, 1>} : memref<338x16xf32, #tpu.memory_space<vmem>>, vector<5x16xf32>
    %c10_141 = arith.constant 10 : index
    %c144_142 = arith.constant 144 : index
    %114 = vector.load %arg12[%c10_141, %c144_142] : memref<50x256xf32, #tpu.memory_space<vmem>>, vector<5x16xf32>
    tpu.vector_store %arg12[%c10_141, %c144_142], %113 {strides = array<i32>} : memref<50x256xf32, #tpu.memory_space<vmem>>, vector<5x16xf32>,
    %c80_143 = arith.constant 80 : index
    %c0_144 = arith.constant 0 : index
    %115 = tpu.strided_load %arg11[%c80_143, %c0_144] {strides = array<i32: 2, 1>} : memref<338x16xf32, #tpu.memory_space<vmem>>, vector<5x16xf32>
    %c10_145 = arith.constant 10 : index
    %c160_146 = arith.constant 160 : index
    %116 = vector.load %arg12[%c10_145, %c160_146] : memref<50x256xf32, #tpu.memory_space<vmem>>, vector<5x16xf32>
    tpu.vector_store %arg12[%c10_145, %c160_146], %115 {strides = array<i32>} : memref<50x256xf32, #tpu.memory_space<vmem>>, vector<5x16xf32>,
    %c81 = arith.constant 81 : index
    %c0_147 = arith.constant 0 : index
    %117 = tpu.strided_load %arg11[%c81, %c0_147] {strides = array<i32: 2, 1>} : memref<338x16xf32, #tpu.memory_space<vmem>>, vector<5x16xf32>
    %c10_148 = arith.constant 10 : index
    %c176_149 = arith.constant 176 : index
    %118 = vector.load %arg12[%c10_148, %c176_149] : memref<50x256xf32, #tpu.memory_space<vmem>>, vector<5x16xf32>
    tpu.vector_store %arg12[%c10_148, %c176_149], %117 {strides = array<i32>} : memref<50x256xf32, #tpu.memory_space<vmem>>, vector<5x16xf32>,
    %c91 = arith.constant 91 : index
    %c0_150 = arith.constant 0 : index
    %119 = tpu.strided_load %arg11[%c91, %c0_150] {strides = array<i32: 2, 1>} : memref<338x16xf32, #tpu.memory_space<vmem>>, vector<5x16xf32>
    %c10_151 = arith.constant 10 : index
    %c192_152 = arith.constant 192 : index
    %120 = vector.load %arg12[%c10_151, %c192_152] : memref<50x256xf32, #tpu.memory_space<vmem>>, vector<5x16xf32>
    tpu.vector_store %arg12[%c10_151, %c192_152], %119 {strides = array<i32>} : memref<50x256xf32, #tpu.memory_space<vmem>>, vector<5x16xf32>,
    %c92 = arith.constant 92 : index
    %c0_153 = arith.constant 0 : index
    %121 = tpu.strided_load %arg11[%c92, %c0_153] {strides = array<i32: 2, 1>} : memref<338x16xf32, #tpu.memory_space<vmem>>, vector<5x16xf32>
    %c10_154 = arith.constant 10 : index
    %c208_155 = arith.constant 208 : index
    %122 = vector.load %arg12[%c10_154, %c208_155] : memref<50x256xf32, #tpu.memory_space<vmem>>, vector<5x16xf32>
    tpu.vector_store %arg12[%c10_154, %c208_155], %121 {strides = array<i32>} : memref<50x256xf32, #tpu.memory_space<vmem>>, vector<5x16xf32>,
    %c93 = arith.constant 93 : index
    %c0_156 = arith.constant 0 : index
    %123 = tpu.strided_load %arg11[%c93, %c0_156] {strides = array<i32: 2, 1>} : memref<338x16xf32, #tpu.memory_space<vmem>>, vector<5x16xf32>
    %c10_157 = arith.constant 10 : index
    %c224_158 = arith.constant 224 : index
    %124 = vector.load %arg12[%c10_157, %c224_158] : memref<50x256xf32, #tpu.memory_space<vmem>>, vector<5x16xf32>
    tpu.vector_store %arg12[%c10_157, %c224_158], %123 {strides = array<i32>} : memref<50x256xf32, #tpu.memory_space<vmem>>, vector<5x16xf32>,
    %c94 = arith.constant 94 : index
    %c0_159 = arith.constant 0 : index
    %125 = tpu.strided_load %arg11[%c94, %c0_159] {strides = array<i32: 2, 1>} : memref<338x16xf32, #tpu.memory_space<vmem>>, vector<5x16xf32>
    %c10_160 = arith.constant 10 : index
    %c240_161 = arith.constant 240 : index
    %126 = vector.load %arg12[%c10_160, %c240_161] : memref<50x256xf32, #tpu.memory_space<vmem>>, vector<5x16xf32>
    tpu.vector_store %arg12[%c10_160, %c240_161], %125 {strides = array<i32>} : memref<50x256xf32, #tpu.memory_space<vmem>>, vector<5x16xf32>,
    %c78_162 = arith.constant 78 : index
    %c0_163 = arith.constant 0 : index
    %127 = tpu.strided_load %arg11[%c78_162, %c0_163] {strides = array<i32: 2, 1>} : memref<338x16xf32, #tpu.memory_space<vmem>>, vector<5x16xf32>
    %c15_164 = arith.constant 15 : index
    %c0_165 = arith.constant 0 : index
    %128 = vector.load %arg12[%c15_164, %c0_165] : memref<50x256xf32, #tpu.memory_space<vmem>>, vector<5x16xf32>
    tpu.vector_store %arg12[%c15_164, %c0_165], %127 {strides = array<i32>} : memref<50x256xf32, #tpu.memory_space<vmem>>, vector<5x16xf32>,
    %c79_166 = arith.constant 79 : index
    %c0_167 = arith.constant 0 : index
    %129 = tpu.strided_load %arg11[%c79_166, %c0_167] {strides = array<i32: 2, 1>} : memref<338x16xf32, #tpu.memory_space<vmem>>, vector<5x16xf32>
    %c15_168 = arith.constant 15 : index
    %c16_169 = arith.constant 16 : index
    %130 = vector.load %arg12[%c15_168, %c16_169] : memref<50x256xf32, #tpu.memory_space<vmem>>, vector<5x16xf32>
    tpu.vector_store %arg12[%c15_168, %c16_169], %129 {strides = array<i32>} : memref<50x256xf32, #tpu.memory_space<vmem>>, vector<5x16xf32>,
    %c80_170 = arith.constant 80 : index
    %c0_171 = arith.constant 0 : index
    %131 = tpu.strided_load %arg11[%c80_170, %c0_171] {strides = array<i32: 2, 1>} : memref<338x16xf32, #tpu.memory_space<vmem>>, vector<5x16xf32>
    %c15_172 = arith.constant 15 : index
    %c32_173 = arith.constant 32 : index
    %132 = vector.load %arg12[%c15_172, %c32_173] : memref<50x256xf32, #tpu.memory_space<vmem>>, vector<5x16xf32>
    tpu.vector_store %arg12[%c15_172, %c32_173], %131 {strides = array<i32>} : memref<50x256xf32, #tpu.memory_space<vmem>>, vector<5x16xf32>,
    %c81_174 = arith.constant 81 : index
    %c0_175 = arith.constant 0 : index
    %133 = tpu.strided_load %arg11[%c81_174, %c0_175] {strides = array<i32: 2, 1>} : memref<338x16xf32, #tpu.memory_space<vmem>>, vector<5x16xf32>
    %c15_176 = arith.constant 15 : index
    %c48_177 = arith.constant 48 : index
    %134 = vector.load %arg12[%c15_176, %c48_177] : memref<50x256xf32, #tpu.memory_space<vmem>>, vector<5x16xf32>
    tpu.vector_store %arg12[%c15_176, %c48_177], %133 {strides = array<i32>} : memref<50x256xf32, #tpu.memory_space<vmem>>, vector<5x16xf32>,
    %c91_178 = arith.constant 91 : index
    %c0_179 = arith.constant 0 : index
    %135 = tpu.strided_load %arg11[%c91_178, %c0_179] {strides = array<i32: 2, 1>} : memref<338x16xf32, #tpu.memory_space<vmem>>, vector<5x16xf32>
    %c15_180 = arith.constant 15 : index
    %c64_181 = arith.constant 64 : index
    %136 = vector.load %arg12[%c15_180, %c64_181] : memref<50x256xf32, #tpu.memory_space<vmem>>, vector<5x16xf32>
    tpu.vector_store %arg12[%c15_180, %c64_181], %135 {strides = array<i32>} : memref<50x256xf32, #tpu.memory_space<vmem>>, vector<5x16xf32>,
    %c92_182 = arith.constant 92 : index
    %c0_183 = arith.constant 0 : index
    %137 = tpu.strided_load %arg11[%c92_182, %c0_183] {strides = array<i32: 2, 1>} : memref<338x16xf32, #tpu.memory_space<vmem>>, vector<5x16xf32>
    %c15_184 = arith.constant 15 : index
    %c80_185 = arith.constant 80 : index
    %138 = vector.load %arg12[%c15_184, %c80_185] : memref<50x256xf32, #tpu.memory_space<vmem>>, vector<5x16xf32>
    tpu.vector_store %arg12[%c15_184, %c80_185], %137 {strides = array<i32>} : memref<50x256xf32, #tpu.memory_space<vmem>>, vector<5x16xf32>,
    %c93_186 = arith.constant 93 : index
    %c0_187 = arith.constant 0 : index
    %139 = tpu.strided_load %arg11[%c93_186, %c0_187] {strides = array<i32: 2, 1>} : memref<338x16xf32, #tpu.memory_space<vmem>>, vector<5x16xf32>
    %c15_188 = arith.constant 15 : index
    %c96_189 = arith.constant 96 : index
    %140 = vector.load %arg12[%c15_188, %c96_189] : memref<50x256xf32, #tpu.memory_space<vmem>>, vector<5x16xf32>
    tpu.vector_store %arg12[%c15_188, %c96_189], %139 {strides = array<i32>} : memref<50x256xf32, #tpu.memory_space<vmem>>, vector<5x16xf32>,
    %c94_190 = arith.constant 94 : index
    %c0_191 = arith.constant 0 : index
    %141 = tpu.strided_load %arg11[%c94_190, %c0_191] {strides = array<i32: 2, 1>} : memref<338x16xf32, #tpu.memory_space<vmem>>, vector<5x16xf32>
    %c15_192 = arith.constant 15 : index
    %c112_193 = arith.constant 112 : index
    %142 = vector.load %arg12[%c15_192, %c112_193] : memref<50x256xf32, #tpu.memory_space<vmem>>, vector<5x16xf32>
    tpu.vector_store %arg12[%c15_192, %c112_193], %141 {strides = array<i32>} : memref<50x256xf32, #tpu.memory_space<vmem>>, vector<5x16xf32>,
    %c104 = arith.constant 104 : index
    %c0_194 = arith.constant 0 : index
    %143 = tpu.strided_load %arg11[%c104, %c0_194] {strides = array<i32: 2, 1>} : memref<338x16xf32, #tpu.memory_space<vmem>>, vector<5x16xf32>
    %c15_195 = arith.constant 15 : index
    %c128_196 = arith.constant 128 : index
    %144 = vector.load %arg12[%c15_195, %c128_196] : memref<50x256xf32, #tpu.memory_space<vmem>>, vector<5x16xf32>
    tpu.vector_store %arg12[%c15_195, %c128_196], %143 {strides = array<i32>} : memref<50x256xf32, #tpu.memory_space<vmem>>, vector<5x16xf32>,
    %c105 = arith.constant 105 : index
    %c0_197 = arith.constant 0 : index
    %145 = tpu.strided_load %arg11[%c105, %c0_197] {strides = array<i32: 2, 1>} : memref<338x16xf32, #tpu.memory_space<vmem>>, vector<5x16xf32>
    %c15_198 = arith.constant 15 : index
    %c144_199 = arith.constant 144 : index
    %146 = vector.load %arg12[%c15_198, %c144_199] : memref<50x256xf32, #tpu.memory_space<vmem>>, vector<5x16xf32>
    tpu.vector_store %arg12[%c15_198, %c144_199], %145 {strides = array<i32>} : memref<50x256xf32, #tpu.memory_space<vmem>>, vector<5x16xf32>,
    %c106 = arith.constant 106 : index
    %c0_200 = arith.constant 0 : index
    %147 = tpu.strided_load %arg11[%c106, %c0_200] {strides = array<i32: 2, 1>} : memref<338x16xf32, #tpu.memory_space<vmem>>, vector<5x16xf32>
    %c15_201 = arith.constant 15 : index
    %c160_202 = arith.constant 160 : index
    %148 = vector.load %arg12[%c15_201, %c160_202] : memref<50x256xf32, #tpu.memory_space<vmem>>, vector<5x16xf32>
    tpu.vector_store %arg12[%c15_201, %c160_202], %147 {strides = array<i32>} : memref<50x256xf32, #tpu.memory_space<vmem>>, vector<5x16xf32>,
    %c107 = arith.constant 107 : index
    %c0_203 = arith.constant 0 : index
    %149 = tpu.strided_load %arg11[%c107, %c0_203] {strides = array<i32: 2, 1>} : memref<338x16xf32, #tpu.memory_space<vmem>>, vector<5x16xf32>
    %c15_204 = arith.constant 15 : index
    %c176_205 = arith.constant 176 : index
    %150 = vector.load %arg12[%c15_204, %c176_205] : memref<50x256xf32, #tpu.memory_space<vmem>>, vector<5x16xf32>
    tpu.vector_store %arg12[%c15_204, %c176_205], %149 {strides = array<i32>} : memref<50x256xf32, #tpu.memory_space<vmem>>, vector<5x16xf32>,
    %c117 = arith.constant 117 : index
    %c0_206 = arith.constant 0 : index
    %151 = tpu.strided_load %arg11[%c117, %c0_206] {strides = array<i32: 2, 1>} : memref<338x16xf32, #tpu.memory_space<vmem>>, vector<5x16xf32>
    %c15_207 = arith.constant 15 : index
    %c192_208 = arith.constant 192 : index
    %152 = vector.load %arg12[%c15_207, %c192_208] : memref<50x256xf32, #tpu.memory_space<vmem>>, vector<5x16xf32>
    tpu.vector_store %arg12[%c15_207, %c192_208], %151 {strides = array<i32>} : memref<50x256xf32, #tpu.memory_space<vmem>>, vector<5x16xf32>,
    %c118 = arith.constant 118 : index
    %c0_209 = arith.constant 0 : index
    %153 = tpu.strided_load %arg11[%c118, %c0_209] {strides = array<i32: 2, 1>} : memref<338x16xf32, #tpu.memory_space<vmem>>, vector<5x16xf32>
    %c15_210 = arith.constant 15 : index
    %c208_211 = arith.constant 208 : index
    %154 = vector.load %arg12[%c15_210, %c208_211] : memref<50x256xf32, #tpu.memory_space<vmem>>, vector<5x16xf32>
    tpu.vector_store %arg12[%c15_210, %c208_211], %153 {strides = array<i32>} : memref<50x256xf32, #tpu.memory_space<vmem>>, vector<5x16xf32>,
    %c119 = arith.constant 119 : index
    %c0_212 = arith.constant 0 : index
    %155 = tpu.strided_load %arg11[%c119, %c0_212] {strides = array<i32: 2, 1>} : memref<338x16xf32, #tpu.memory_space<vmem>>, vector<5x16xf32>
    %c15_213 = arith.constant 15 : index
    %c224_214 = arith.constant 224 : index
    %156 = vector.load %arg12[%c15_213, %c224_214] : memref<50x256xf32, #tpu.memory_space<vmem>>, vector<5x16xf32>
    tpu.vector_store %arg12[%c15_213, %c224_214], %155 {strides = array<i32>} : memref<50x256xf32, #tpu.memory_space<vmem>>, vector<5x16xf32>,
    %c120 = arith.constant 120 : index
    %c0_215 = arith.constant 0 : index
    %157 = tpu.strided_load %arg11[%c120, %c0_215] {strides = array<i32: 2, 1>} : memref<338x16xf32, #tpu.memory_space<vmem>>, vector<5x16xf32>
    %c15_216 = arith.constant 15 : index
    %c240_217 = arith.constant 240 : index
    %158 = vector.load %arg12[%c15_216, %c240_217] : memref<50x256xf32, #tpu.memory_space<vmem>>, vector<5x16xf32>
    tpu.vector_store %arg12[%c15_216, %c240_217], %157 {strides = array<i32>} : memref<50x256xf32, #tpu.memory_space<vmem>>, vector<5x16xf32>,
    %c104_218 = arith.constant 104 : index
    %c0_219 = arith.constant 0 : index
    %159 = tpu.strided_load %arg11[%c104_218, %c0_219] {strides = array<i32: 2, 1>} : memref<338x16xf32, #tpu.memory_space<vmem>>, vector<5x16xf32>
    %c20 = arith.constant 20 : index
    %c0_220 = arith.constant 0 : index
    %160 = vector.load %arg12[%c20, %c0_220] : memref<50x256xf32, #tpu.memory_space<vmem>>, vector<5x16xf32>
    tpu.vector_store %arg12[%c20, %c0_220], %159 {strides = array<i32>} : memref<50x256xf32, #tpu.memory_space<vmem>>, vector<5x16xf32>,
    %c105_221 = arith.constant 105 : index
    %c0_222 = arith.constant 0 : index
    %161 = tpu.strided_load %arg11[%c105_221, %c0_222] {strides = array<i32: 2, 1>} : memref<338x16xf32, #tpu.memory_space<vmem>>, vector<5x16xf32>
    %c20_223 = arith.constant 20 : index
    %c16_224 = arith.constant 16 : index
    %162 = vector.load %arg12[%c20_223, %c16_224] : memref<50x256xf32, #tpu.memory_space<vmem>>, vector<5x16xf32>
    tpu.vector_store %arg12[%c20_223, %c16_224], %161 {strides = array<i32>} : memref<50x256xf32, #tpu.memory_space<vmem>>, vector<5x16xf32>,
    %c106_225 = arith.constant 106 : index
    %c0_226 = arith.constant 0 : index
    %163 = tpu.strided_load %arg11[%c106_225, %c0_226] {strides = array<i32: 2, 1>} : memref<338x16xf32, #tpu.memory_space<vmem>>, vector<5x16xf32>
    %c20_227 = arith.constant 20 : index
    %c32_228 = arith.constant 32 : index
    %164 = vector.load %arg12[%c20_227, %c32_228] : memref<50x256xf32, #tpu.memory_space<vmem>>, vector<5x16xf32>
    tpu.vector_store %arg12[%c20_227, %c32_228], %163 {strides = array<i32>} : memref<50x256xf32, #tpu.memory_space<vmem>>, vector<5x16xf32>,
    %c107_229 = arith.constant 107 : index
    %c0_230 = arith.constant 0 : index
    %165 = tpu.strided_load %arg11[%c107_229, %c0_230] {strides = array<i32: 2, 1>} : memref<338x16xf32, #tpu.memory_space<vmem>>, vector<5x16xf32>
    %c20_231 = arith.constant 20 : index
    %c48_232 = arith.constant 48 : index
    %166 = vector.load %arg12[%c20_231, %c48_232] : memref<50x256xf32, #tpu.memory_space<vmem>>, vector<5x16xf32>
    tpu.vector_store %arg12[%c20_231, %c48_232], %165 {strides = array<i32>} : memref<50x256xf32, #tpu.memory_space<vmem>>, vector<5x16xf32>,
    %c117_233 = arith.constant 117 : index
    %c0_234 = arith.constant 0 : index
    %167 = tpu.strided_load %arg11[%c117_233, %c0_234] {strides = array<i32: 2, 1>} : memref<338x16xf32, #tpu.memory_space<vmem>>, vector<5x16xf32>
    %c20_235 = arith.constant 20 : index
    %c64_236 = arith.constant 64 : index
    %168 = vector.load %arg12[%c20_235, %c64_236] : memref<50x256xf32, #tpu.memory_space<vmem>>, vector<5x16xf32>
    tpu.vector_store %arg12[%c20_235, %c64_236], %167 {strides = array<i32>} : memref<50x256xf32, #tpu.memory_space<vmem>>, vector<5x16xf32>,
    %c118_237 = arith.constant 118 : index
    %c0_238 = arith.constant 0 : index
    %169 = tpu.strided_load %arg11[%c118_237, %c0_238] {strides = array<i32: 2, 1>} : memref<338x16xf32, #tpu.memory_space<vmem>>, vector<5x16xf32>
    %c20_239 = arith.constant 20 : index
    %c80_240 = arith.constant 80 : index
    %170 = vector.load %arg12[%c20_239, %c80_240] : memref<50x256xf32, #tpu.memory_space<vmem>>, vector<5x16xf32>
    tpu.vector_store %arg12[%c20_239, %c80_240], %169 {strides = array<i32>} : memref<50x256xf32, #tpu.memory_space<vmem>>, vector<5x16xf32>,
    %c119_241 = arith.constant 119 : index
    %c0_242 = arith.constant 0 : index
    %171 = tpu.strided_load %arg11[%c119_241, %c0_242] {strides = array<i32: 2, 1>} : memref<338x16xf32, #tpu.memory_space<vmem>>, vector<5x16xf32>
    %c20_243 = arith.constant 20 : index
    %c96_244 = arith.constant 96 : index
    %172 = vector.load %arg12[%c20_243, %c96_244] : memref<50x256xf32, #tpu.memory_space<vmem>>, vector<5x16xf32>
    tpu.vector_store %arg12[%c20_243, %c96_244], %171 {strides = array<i32>} : memref<50x256xf32, #tpu.memory_space<vmem>>, vector<5x16xf32>,
    %c120_245 = arith.constant 120 : index
    %c0_246 = arith.constant 0 : index
    %173 = tpu.strided_load %arg11[%c120_245, %c0_246] {strides = array<i32: 2, 1>} : memref<338x16xf32, #tpu.memory_space<vmem>>, vector<5x16xf32>
    %c20_247 = arith.constant 20 : index
    %c112_248 = arith.constant 112 : index
    %174 = vector.load %arg12[%c20_247, %c112_248] : memref<50x256xf32, #tpu.memory_space<vmem>>, vector<5x16xf32>
    tpu.vector_store %arg12[%c20_247, %c112_248], %173 {strides = array<i32>} : memref<50x256xf32, #tpu.memory_space<vmem>>, vector<5x16xf32>,
    %c130 = arith.constant 130 : index
    %c0_249 = arith.constant 0 : index
    %175 = tpu.strided_load %arg11[%c130, %c0_249] {strides = array<i32: 2, 1>} : memref<338x16xf32, #tpu.memory_space<vmem>>, vector<5x16xf32>
    %c20_250 = arith.constant 20 : index
    %c128_251 = arith.constant 128 : index
    %176 = vector.load %arg12[%c20_250, %c128_251] : memref<50x256xf32, #tpu.memory_space<vmem>>, vector<5x16xf32>
    tpu.vector_store %arg12[%c20_250, %c128_251], %175 {strides = array<i32>} : memref<50x256xf32, #tpu.memory_space<vmem>>, vector<5x16xf32>,
    %c131 = arith.constant 131 : index
    %c0_252 = arith.constant 0 : index
    %177 = tpu.strided_load %arg11[%c131, %c0_252] {strides = array<i32: 2, 1>} : memref<338x16xf32, #tpu.memory_space<vmem>>, vector<5x16xf32>
    %c20_253 = arith.constant 20 : index
    %c144_254 = arith.constant 144 : index
    %178 = vector.load %arg12[%c20_253, %c144_254] : memref<50x256xf32, #tpu.memory_space<vmem>>, vector<5x16xf32>
    tpu.vector_store %arg12[%c20_253, %c144_254], %177 {strides = array<i32>} : memref<50x256xf32, #tpu.memory_space<vmem>>, vector<5x16xf32>,
    %c132 = arith.constant 132 : index
    %c0_255 = arith.constant 0 : index
    %179 = tpu.strided_load %arg11[%c132, %c0_255] {strides = array<i32: 2, 1>} : memref<338x16xf32, #tpu.memory_space<vmem>>, vector<5x16xf32>
    %c20_256 = arith.constant 20 : index
    %c160_257 = arith.constant 160 : index
    %180 = vector.load %arg12[%c20_256, %c160_257] : memref<50x256xf32, #tpu.memory_space<vmem>>, vector<5x16xf32>
    tpu.vector_store %arg12[%c20_256, %c160_257], %179 {strides = array<i32>} : memref<50x256xf32, #tpu.memory_space<vmem>>, vector<5x16xf32>,
    %c133 = arith.constant 133 : index
    %c0_258 = arith.constant 0 : index
    %181 = tpu.strided_load %arg11[%c133, %c0_258] {strides = array<i32: 2, 1>} : memref<338x16xf32, #tpu.memory_space<vmem>>, vector<5x16xf32>
    %c20_259 = arith.constant 20 : index
    %c176_260 = arith.constant 176 : index
    %182 = vector.load %arg12[%c20_259, %c176_260] : memref<50x256xf32, #tpu.memory_space<vmem>>, vector<5x16xf32>
    tpu.vector_store %arg12[%c20_259, %c176_260], %181 {strides = array<i32>} : memref<50x256xf32, #tpu.memory_space<vmem>>, vector<5x16xf32>,
    %c143 = arith.constant 143 : index
    %c0_261 = arith.constant 0 : index
    %183 = tpu.strided_load %arg11[%c143, %c0_261] {strides = array<i32: 2, 1>} : memref<338x16xf32, #tpu.memory_space<vmem>>, vector<5x16xf32>
    %c20_262 = arith.constant 20 : index
    %c192_263 = arith.constant 192 : index
    %184 = vector.load %arg12[%c20_262, %c192_263] : memref<50x256xf32, #tpu.memory_space<vmem>>, vector<5x16xf32>
    tpu.vector_store %arg12[%c20_262, %c192_263], %183 {strides = array<i32>} : memref<50x256xf32, #tpu.memory_space<vmem>>, vector<5x16xf32>,
    %c144_264 = arith.constant 144 : index
    %c0_265 = arith.constant 0 : index
    %185 = tpu.strided_load %arg11[%c144_264, %c0_265] {strides = array<i32: 2, 1>} : memref<338x16xf32, #tpu.memory_space<vmem>>, vector<5x16xf32>
    %c20_266 = arith.constant 20 : index
    %c208_267 = arith.constant 208 : index
    %186 = vector.load %arg12[%c20_266, %c208_267] : memref<50x256xf32, #tpu.memory_space<vmem>>, vector<5x16xf32>
    tpu.vector_store %arg12[%c20_266, %c208_267], %185 {strides = array<i32>} : memref<50x256xf32, #tpu.memory_space<vmem>>, vector<5x16xf32>,
    %c145 = arith.constant 145 : index
    %c0_268 = arith.constant 0 : index
    %187 = tpu.strided_load %arg11[%c145, %c0_268] {strides = array<i32: 2, 1>} : memref<338x16xf32, #tpu.memory_space<vmem>>, vector<5x16xf32>
    %c20_269 = arith.constant 20 : index
    %c224_270 = arith.constant 224 : index
    %188 = vector.load %arg12[%c20_269, %c224_270] : memref<50x256xf32, #tpu.memory_space<vmem>>, vector<5x16xf32>
    tpu.vector_store %arg12[%c20_269, %c224_270], %187 {strides = array<i32>} : memref<50x256xf32, #tpu.memory_space<vmem>>, vector<5x16xf32>,
    %c146 = arith.constant 146 : index
    %c0_271 = arith.constant 0 : index
    %189 = tpu.strided_load %arg11[%c146, %c0_271] {strides = array<i32: 2, 1>} : memref<338x16xf32, #tpu.memory_space<vmem>>, vector<5x16xf32>
    %c20_272 = arith.constant 20 : index
    %c240_273 = arith.constant 240 : index
    %190 = vector.load %arg12[%c20_272, %c240_273] : memref<50x256xf32, #tpu.memory_space<vmem>>, vector<5x16xf32>
    tpu.vector_store %arg12[%c20_272, %c240_273], %189 {strides = array<i32>} : memref<50x256xf32, #tpu.memory_space<vmem>>, vector<5x16xf32>,
    %c169 = arith.constant 169 : index
    %c0_274 = arith.constant 0 : index
    %191 = tpu.strided_load %arg11[%c169, %c0_274] {strides = array<i32: 2, 1>} : memref<338x16xf32, #tpu.memory_space<vmem>>, vector<5x16xf32>
    %c25 = arith.constant 25 : index
    %c0_275 = arith.constant 0 : index
    %192 = vector.load %arg12[%c25, %c0_275] : memref<50x256xf32, #tpu.memory_space<vmem>>, vector<5x16xf32>
    tpu.vector_store %arg12[%c25, %c0_275], %191 {strides = array<i32>} : memref<50x256xf32, #tpu.memory_space<vmem>>, vector<5x16xf32>,
    %c170 = arith.constant 170 : index
    %c0_276 = arith.constant 0 : index
    %193 = tpu.strided_load %arg11[%c170, %c0_276] {strides = array<i32: 2, 1>} : memref<338x16xf32, #tpu.memory_space<vmem>>, vector<5x16xf32>
    %c25_277 = arith.constant 25 : index
    %c16_278 = arith.constant 16 : index
    %194 = vector.load %arg12[%c25_277, %c16_278] : memref<50x256xf32, #tpu.memory_space<vmem>>, vector<5x16xf32>
    tpu.vector_store %arg12[%c25_277, %c16_278], %193 {strides = array<i32>} : memref<50x256xf32, #tpu.memory_space<vmem>>, vector<5x16xf32>,
    %c171 = arith.constant 171 : index
    %c0_279 = arith.constant 0 : index
    %195 = tpu.strided_load %arg11[%c171, %c0_279] {strides = array<i32: 2, 1>} : memref<338x16xf32, #tpu.memory_space<vmem>>, vector<5x16xf32>
    %c25_280 = arith.constant 25 : index
    %c32_281 = arith.constant 32 : index
    %196 = vector.load %arg12[%c25_280, %c32_281] : memref<50x256xf32, #tpu.memory_space<vmem>>, vector<5x16xf32>
    tpu.vector_store %arg12[%c25_280, %c32_281], %195 {strides = array<i32>} : memref<50x256xf32, #tpu.memory_space<vmem>>, vector<5x16xf32>,
    %c172 = arith.constant 172 : index
    %c0_282 = arith.constant 0 : index
    %197 = tpu.strided_load %arg11[%c172, %c0_282] {strides = array<i32: 2, 1>} : memref<338x16xf32, #tpu.memory_space<vmem>>, vector<5x16xf32>
    %c25_283 = arith.constant 25 : index
    %c48_284 = arith.constant 48 : index
    %198 = vector.load %arg12[%c25_283, %c48_284] : memref<50x256xf32, #tpu.memory_space<vmem>>, vector<5x16xf32>
    tpu.vector_store %arg12[%c25_283, %c48_284], %197 {strides = array<i32>} : memref<50x256xf32, #tpu.memory_space<vmem>>, vector<5x16xf32>,
    %c182 = arith.constant 182 : index
    %c0_285 = arith.constant 0 : index
    %199 = tpu.strided_load %arg11[%c182, %c0_285] {strides = array<i32: 2, 1>} : memref<338x16xf32, #tpu.memory_space<vmem>>, vector<5x16xf32>
    %c25_286 = arith.constant 25 : index
    %c64_287 = arith.constant 64 : index
    %200 = vector.load %arg12[%c25_286, %c64_287] : memref<50x256xf32, #tpu.memory_space<vmem>>, vector<5x16xf32>
    tpu.vector_store %arg12[%c25_286, %c64_287], %199 {strides = array<i32>} : memref<50x256xf32, #tpu.memory_space<vmem>>, vector<5x16xf32>,
    %c183 = arith.constant 183 : index
    %c0_288 = arith.constant 0 : index
    %201 = tpu.strided_load %arg11[%c183, %c0_288] {strides = array<i32: 2, 1>} : memref<338x16xf32, #tpu.memory_space<vmem>>, vector<5x16xf32>
    %c25_289 = arith.constant 25 : index
    %c80_290 = arith.constant 80 : index
    %202 = vector.load %arg12[%c25_289, %c80_290] : memref<50x256xf32, #tpu.memory_space<vmem>>, vector<5x16xf32>
    tpu.vector_store %arg12[%c25_289, %c80_290], %201 {strides = array<i32>} : memref<50x256xf32, #tpu.memory_space<vmem>>, vector<5x16xf32>,
    %c184 = arith.constant 184 : index
    %c0_291 = arith.constant 0 : index
    %203 = tpu.strided_load %arg11[%c184, %c0_291] {strides = array<i32: 2, 1>} : memref<338x16xf32, #tpu.memory_space<vmem>>, vector<5x16xf32>
    %c25_292 = arith.constant 25 : index
    %c96_293 = arith.constant 96 : index
    %204 = vector.load %arg12[%c25_292, %c96_293] : memref<50x256xf32, #tpu.memory_space<vmem>>, vector<5x16xf32>
    tpu.vector_store %arg12[%c25_292, %c96_293], %203 {strides = array<i32>} : memref<50x256xf32, #tpu.memory_space<vmem>>, vector<5x16xf32>,
    %c185 = arith.constant 185 : index
    %c0_294 = arith.constant 0 : index
    %205 = tpu.strided_load %arg11[%c185, %c0_294] {strides = array<i32: 2, 1>} : memref<338x16xf32, #tpu.memory_space<vmem>>, vector<5x16xf32>
    %c25_295 = arith.constant 25 : index
    %c112_296 = arith.constant 112 : index
    %206 = vector.load %arg12[%c25_295, %c112_296] : memref<50x256xf32, #tpu.memory_space<vmem>>, vector<5x16xf32>
    tpu.vector_store %arg12[%c25_295, %c112_296], %205 {strides = array<i32>} : memref<50x256xf32, #tpu.memory_space<vmem>>, vector<5x16xf32>,
    %c195 = arith.constant 195 : index
    %c0_297 = arith.constant 0 : index
    %207 = tpu.strided_load %arg11[%c195, %c0_297] {strides = array<i32: 2, 1>} : memref<338x16xf32, #tpu.memory_space<vmem>>, vector<5x16xf32>
    %c25_298 = arith.constant 25 : index
    %c128_299 = arith.constant 128 : index
    %208 = vector.load %arg12[%c25_298, %c128_299] : memref<50x256xf32, #tpu.memory_space<vmem>>, vector<5x16xf32>
    tpu.vector_store %arg12[%c25_298, %c128_299], %207 {strides = array<i32>} : memref<50x256xf32, #tpu.memory_space<vmem>>, vector<5x16xf32>,
    %c196 = arith.constant 196 : index
    %c0_300 = arith.constant 0 : index
    %209 = tpu.strided_load %arg11[%c196, %c0_300] {strides = array<i32: 2, 1>} : memref<338x16xf32, #tpu.memory_space<vmem>>, vector<5x16xf32>
    %c25_301 = arith.constant 25 : index
    %c144_302 = arith.constant 144 : index
    %210 = vector.load %arg12[%c25_301, %c144_302] : memref<50x256xf32, #tpu.memory_space<vmem>>, vector<5x16xf32>
    tpu.vector_store %arg12[%c25_301, %c144_302], %209 {strides = array<i32>} : memref<50x256xf32, #tpu.memory_space<vmem>>, vector<5x16xf32>,
    %c197 = arith.constant 197 : index
    %c0_303 = arith.constant 0 : index
    %211 = tpu.strided_load %arg11[%c197, %c0_303] {strides = array<i32: 2, 1>} : memref<338x16xf32, #tpu.memory_space<vmem>>, vector<5x16xf32>
    %c25_304 = arith.constant 25 : index
    %c160_305 = arith.constant 160 : index
    %212 = vector.load %arg12[%c25_304, %c160_305] : memref<50x256xf32, #tpu.memory_space<vmem>>, vector<5x16xf32>
    tpu.vector_store %arg12[%c25_304, %c160_305], %211 {strides = array<i32>} : memref<50x256xf32, #tpu.memory_space<vmem>>, vector<5x16xf32>,
    %c198 = arith.constant 198 : index
    %c0_306 = arith.constant 0 : index
    %213 = tpu.strided_load %arg11[%c198, %c0_306] {strides = array<i32: 2, 1>} : memref<338x16xf32, #tpu.memory_space<vmem>>, vector<5x16xf32>
    %c25_307 = arith.constant 25 : index
    %c176_308 = arith.constant 176 : index
    %214 = vector.load %arg12[%c25_307, %c176_308] : memref<50x256xf32, #tpu.memory_space<vmem>>, vector<5x16xf32>
    tpu.vector_store %arg12[%c25_307, %c176_308], %213 {strides = array<i32>} : memref<50x256xf32, #tpu.memory_space<vmem>>, vector<5x16xf32>,
    %c208_309 = arith.constant 208 : index
    %c0_310 = arith.constant 0 : index
    %215 = tpu.strided_load %arg11[%c208_309, %c0_310] {strides = array<i32: 2, 1>} : memref<338x16xf32, #tpu.memory_space<vmem>>, vector<5x16xf32>
    %c25_311 = arith.constant 25 : index
    %c192_312 = arith.constant 192 : index
    %216 = vector.load %arg12[%c25_311, %c192_312] : memref<50x256xf32, #tpu.memory_space<vmem>>, vector<5x16xf32>
    tpu.vector_store %arg12[%c25_311, %c192_312], %215 {strides = array<i32>} : memref<50x256xf32, #tpu.memory_space<vmem>>, vector<5x16xf32>,
    %c209 = arith.constant 209 : index
    %c0_313 = arith.constant 0 : index
    %217 = tpu.strided_load %arg11[%c209, %c0_313] {strides = array<i32: 2, 1>} : memref<338x16xf32, #tpu.memory_space<vmem>>, vector<5x16xf32>
    %c25_314 = arith.constant 25 : index
    %c208_315 = arith.constant 208 : index
    %218 = vector.load %arg12[%c25_314, %c208_315] : memref<50x256xf32, #tpu.memory_space<vmem>>, vector<5x16xf32>
    tpu.vector_store %arg12[%c25_314, %c208_315], %217 {strides = array<i32>} : memref<50x256xf32, #tpu.memory_space<vmem>>, vector<5x16xf32>,
    %c210 = arith.constant 210 : index
    %c0_316 = arith.constant 0 : index
    %219 = tpu.strided_load %arg11[%c210, %c0_316] {strides = array<i32: 2, 1>} : memref<338x16xf32, #tpu.memory_space<vmem>>, vector<5x16xf32>
    %c25_317 = arith.constant 25 : index
    %c224_318 = arith.constant 224 : index
    %220 = vector.load %arg12[%c25_317, %c224_318] : memref<50x256xf32, #tpu.memory_space<vmem>>, vector<5x16xf32>
    tpu.vector_store %arg12[%c25_317, %c224_318], %219 {strides = array<i32>} : memref<50x256xf32, #tpu.memory_space<vmem>>, vector<5x16xf32>,
    %c211 = arith.constant 211 : index
    %c0_319 = arith.constant 0 : index
    %221 = tpu.strided_load %arg11[%c211, %c0_319] {strides = array<i32: 2, 1>} : memref<338x16xf32, #tpu.memory_space<vmem>>, vector<5x16xf32>
    %c25_320 = arith.constant 25 : index
    %c240_321 = arith.constant 240 : index
    %222 = vector.load %arg12[%c25_320, %c240_321] : memref<50x256xf32, #tpu.memory_space<vmem>>, vector<5x16xf32>
    tpu.vector_store %arg12[%c25_320, %c240_321], %221 {strides = array<i32>} : memref<50x256xf32, #tpu.memory_space<vmem>>, vector<5x16xf32>,
    %c195_322 = arith.constant 195 : index
    %c0_323 = arith.constant 0 : index
    %223 = tpu.strided_load %arg11[%c195_322, %c0_323] {strides = array<i32: 2, 1>} : memref<338x16xf32, #tpu.memory_space<vmem>>, vector<5x16xf32>
    %c30 = arith.constant 30 : index
    %c0_324 = arith.constant 0 : index
    %224 = vector.load %arg12[%c30, %c0_324] : memref<50x256xf32, #tpu.memory_space<vmem>>, vector<5x16xf32>
    tpu.vector_store %arg12[%c30, %c0_324], %223 {strides = array<i32>} : memref<50x256xf32, #tpu.memory_space<vmem>>, vector<5x16xf32>,
    %c196_325 = arith.constant 196 : index
    %c0_326 = arith.constant 0 : index
    %225 = tpu.strided_load %arg11[%c196_325, %c0_326] {strides = array<i32: 2, 1>} : memref<338x16xf32, #tpu.memory_space<vmem>>, vector<5x16xf32>
    %c30_327 = arith.constant 30 : index
    %c16_328 = arith.constant 16 : index
    %226 = vector.load %arg12[%c30_327, %c16_328] : memref<50x256xf32, #tpu.memory_space<vmem>>, vector<5x16xf32>
    tpu.vector_store %arg12[%c30_327, %c16_328], %225 {strides = array<i32>} : memref<50x256xf32, #tpu.memory_space<vmem>>, vector<5x16xf32>,
    %c197_329 = arith.constant 197 : index
    %c0_330 = arith.constant 0 : index
    %227 = tpu.strided_load %arg11[%c197_329, %c0_330] {strides = array<i32: 2, 1>} : memref<338x16xf32, #tpu.memory_space<vmem>>, vector<5x16xf32>
    %c30_331 = arith.constant 30 : index
    %c32_332 = arith.constant 32 : index
    %228 = vector.load %arg12[%c30_331, %c32_332] : memref<50x256xf32, #tpu.memory_space<vmem>>, vector<5x16xf32>
    tpu.vector_store %arg12[%c30_331, %c32_332], %227 {strides = array<i32>} : memref<50x256xf32, #tpu.memory_space<vmem>>, vector<5x16xf32>,
    %c198_333 = arith.constant 198 : index
    %c0_334 = arith.constant 0 : index
    %229 = tpu.strided_load %arg11[%c198_333, %c0_334] {strides = array<i32: 2, 1>} : memref<338x16xf32, #tpu.memory_space<vmem>>, vector<5x16xf32>
    %c30_335 = arith.constant 30 : index
    %c48_336 = arith.constant 48 : index
    %230 = vector.load %arg12[%c30_335, %c48_336] : memref<50x256xf32, #tpu.memory_space<vmem>>, vector<5x16xf32>
    tpu.vector_store %arg12[%c30_335, %c48_336], %229 {strides = array<i32>} : memref<50x256xf32, #tpu.memory_space<vmem>>, vector<5x16xf32>,
    %c208_337 = arith.constant 208 : index
    %c0_338 = arith.constant 0 : index
    %231 = tpu.strided_load %arg11[%c208_337, %c0_338] {strides = array<i32: 2, 1>} : memref<338x16xf32, #tpu.memory_space<vmem>>, vector<5x16xf32>
    %c30_339 = arith.constant 30 : index
    %c64_340 = arith.constant 64 : index
    %232 = vector.load %arg12[%c30_339, %c64_340] : memref<50x256xf32, #tpu.memory_space<vmem>>, vector<5x16xf32>
    tpu.vector_store %arg12[%c30_339, %c64_340], %231 {strides = array<i32>} : memref<50x256xf32, #tpu.memory_space<vmem>>, vector<5x16xf32>,
    %c209_341 = arith.constant 209 : index
    %c0_342 = arith.constant 0 : index
    %233 = tpu.strided_load %arg11[%c209_341, %c0_342] {strides = array<i32: 2, 1>} : memref<338x16xf32, #tpu.memory_space<vmem>>, vector<5x16xf32>
    %c30_343 = arith.constant 30 : index
    %c80_344 = arith.constant 80 : index
    %234 = vector.load %arg12[%c30_343, %c80_344] : memref<50x256xf32, #tpu.memory_space<vmem>>, vector<5x16xf32>
    tpu.vector_store %arg12[%c30_343, %c80_344], %233 {strides = array<i32>} : memref<50x256xf32, #tpu.memory_space<vmem>>, vector<5x16xf32>,
    %c210_345 = arith.constant 210 : index
    %c0_346 = arith.constant 0 : index
    %235 = tpu.strided_load %arg11[%c210_345, %c0_346] {strides = array<i32: 2, 1>} : memref<338x16xf32, #tpu.memory_space<vmem>>, vector<5x16xf32>
    %c30_347 = arith.constant 30 : index
    %c96_348 = arith.constant 96 : index
    %236 = vector.load %arg12[%c30_347, %c96_348] : memref<50x256xf32, #tpu.memory_space<vmem>>, vector<5x16xf32>
    tpu.vector_store %arg12[%c30_347, %c96_348], %235 {strides = array<i32>} : memref<50x256xf32, #tpu.memory_space<vmem>>, vector<5x16xf32>,
    %c211_349 = arith.constant 211 : index
    %c0_350 = arith.constant 0 : index
    %237 = tpu.strided_load %arg11[%c211_349, %c0_350] {strides = array<i32: 2, 1>} : memref<338x16xf32, #tpu.memory_space<vmem>>, vector<5x16xf32>
    %c30_351 = arith.constant 30 : index
    %c112_352 = arith.constant 112 : index
    %238 = vector.load %arg12[%c30_351, %c112_352] : memref<50x256xf32, #tpu.memory_space<vmem>>, vector<5x16xf32>
    tpu.vector_store %arg12[%c30_351, %c112_352], %237 {strides = array<i32>} : memref<50x256xf32, #tpu.memory_space<vmem>>, vector<5x16xf32>,
    %c221 = arith.constant 221 : index
    %c0_353 = arith.constant 0 : index
    %239 = tpu.strided_load %arg11[%c221, %c0_353] {strides = array<i32: 2, 1>} : memref<338x16xf32, #tpu.memory_space<vmem>>, vector<5x16xf32>
    %c30_354 = arith.constant 30 : index
    %c128_355 = arith.constant 128 : index
    %240 = vector.load %arg12[%c30_354, %c128_355] : memref<50x256xf32, #tpu.memory_space<vmem>>, vector<5x16xf32>
    tpu.vector_store %arg12[%c30_354, %c128_355], %239 {strides = array<i32>} : memref<50x256xf32, #tpu.memory_space<vmem>>, vector<5x16xf32>,
    %c222 = arith.constant 222 : index
    %c0_356 = arith.constant 0 : index
    %241 = tpu.strided_load %arg11[%c222, %c0_356] {strides = array<i32: 2, 1>} : memref<338x16xf32, #tpu.memory_space<vmem>>, vector<5x16xf32>
    %c30_357 = arith.constant 30 : index
    %c144_358 = arith.constant 144 : index
    %242 = vector.load %arg12[%c30_357, %c144_358] : memref<50x256xf32, #tpu.memory_space<vmem>>, vector<5x16xf32>
    tpu.vector_store %arg12[%c30_357, %c144_358], %241 {strides = array<i32>} : memref<50x256xf32, #tpu.memory_space<vmem>>, vector<5x16xf32>,
    %c223 = arith.constant 223 : index
    %c0_359 = arith.constant 0 : index
    %243 = tpu.strided_load %arg11[%c223, %c0_359] {strides = array<i32: 2, 1>} : memref<338x16xf32, #tpu.memory_space<vmem>>, vector<5x16xf32>
    %c30_360 = arith.constant 30 : index
    %c160_361 = arith.constant 160 : index
    %244 = vector.load %arg12[%c30_360, %c160_361] : memref<50x256xf32, #tpu.memory_space<vmem>>, vector<5x16xf32>
    tpu.vector_store %arg12[%c30_360, %c160_361], %243 {strides = array<i32>} : memref<50x256xf32, #tpu.memory_space<vmem>>, vector<5x16xf32>,
    %c224_362 = arith.constant 224 : index
    %c0_363 = arith.constant 0 : index
    %245 = tpu.strided_load %arg11[%c224_362, %c0_363] {strides = array<i32: 2, 1>} : memref<338x16xf32, #tpu.memory_space<vmem>>, vector<5x16xf32>
    %c30_364 = arith.constant 30 : index
    %c176_365 = arith.constant 176 : index
    %246 = vector.load %arg12[%c30_364, %c176_365] : memref<50x256xf32, #tpu.memory_space<vmem>>, vector<5x16xf32>
    tpu.vector_store %arg12[%c30_364, %c176_365], %245 {strides = array<i32>} : memref<50x256xf32, #tpu.memory_space<vmem>>, vector<5x16xf32>,
    %c234 = arith.constant 234 : index
    %c0_366 = arith.constant 0 : index
    %247 = tpu.strided_load %arg11[%c234, %c0_366] {strides = array<i32: 2, 1>} : memref<338x16xf32, #tpu.memory_space<vmem>>, vector<5x16xf32>
    %c30_367 = arith.constant 30 : index
    %c192_368 = arith.constant 192 : index
    %248 = vector.load %arg12[%c30_367, %c192_368] : memref<50x256xf32, #tpu.memory_space<vmem>>, vector<5x16xf32>
    tpu.vector_store %arg12[%c30_367, %c192_368], %247 {strides = array<i32>} : memref<50x256xf32, #tpu.memory_space<vmem>>, vector<5x16xf32>,
    %c235 = arith.constant 235 : index
    %c0_369 = arith.constant 0 : index
    %249 = tpu.strided_load %arg11[%c235, %c0_369] {strides = array<i32: 2, 1>} : memref<338x16xf32, #tpu.memory_space<vmem>>, vector<5x16xf32>
    %c30_370 = arith.constant 30 : index
    %c208_371 = arith.constant 208 : index
    %250 = vector.load %arg12[%c30_370, %c208_371] : memref<50x256xf32, #tpu.memory_space<vmem>>, vector<5x16xf32>
    tpu.vector_store %arg12[%c30_370, %c208_371], %249 {strides = array<i32>} : memref<50x256xf32, #tpu.memory_space<vmem>>, vector<5x16xf32>,
    %c236 = arith.constant 236 : index
    %c0_372 = arith.constant 0 : index
    %251 = tpu.strided_load %arg11[%c236, %c0_372] {strides = array<i32: 2, 1>} : memref<338x16xf32, #tpu.memory_space<vmem>>, vector<5x16xf32>
    %c30_373 = arith.constant 30 : index
    %c224_374 = arith.constant 224 : index
    %252 = vector.load %arg12[%c30_373, %c224_374] : memref<50x256xf32, #tpu.memory_space<vmem>>, vector<5x16xf32>
    tpu.vector_store %arg12[%c30_373, %c224_374], %251 {strides = array<i32>} : memref<50x256xf32, #tpu.memory_space<vmem>>, vector<5x16xf32>,
    %c237 = arith.constant 237 : index
    %c0_375 = arith.constant 0 : index
    %253 = tpu.strided_load %arg11[%c237, %c0_375] {strides = array<i32: 2, 1>} : memref<338x16xf32, #tpu.memory_space<vmem>>, vector<5x16xf32>
    %c30_376 = arith.constant 30 : index
    %c240_377 = arith.constant 240 : index
    %254 = vector.load %arg12[%c30_376, %c240_377] : memref<50x256xf32, #tpu.memory_space<vmem>>, vector<5x16xf32>
    tpu.vector_store %arg12[%c30_376, %c240_377], %253 {strides = array<i32>} : memref<50x256xf32, #tpu.memory_space<vmem>>, vector<5x16xf32>,
    %c221_378 = arith.constant 221 : index
    %c0_379 = arith.constant 0 : index
    %255 = tpu.strided_load %arg11[%c221_378, %c0_379] {strides = array<i32: 2, 1>} : memref<338x16xf32, #tpu.memory_space<vmem>>, vector<5x16xf32>
    %c35 = arith.constant 35 : index
    %c0_380 = arith.constant 0 : index
    %256 = vector.load %arg12[%c35, %c0_380] : memref<50x256xf32, #tpu.memory_space<vmem>>, vector<5x16xf32>
    tpu.vector_store %arg12[%c35, %c0_380], %255 {strides = array<i32>} : memref<50x256xf32, #tpu.memory_space<vmem>>, vector<5x16xf32>,
    %c222_381 = arith.constant 222 : index
    %c0_382 = arith.constant 0 : index
    %257 = tpu.strided_load %arg11[%c222_381, %c0_382] {strides = array<i32: 2, 1>} : memref<338x16xf32, #tpu.memory_space<vmem>>, vector<5x16xf32>
    %c35_383 = arith.constant 35 : index
    %c16_384 = arith.constant 16 : index
    %258 = vector.load %arg12[%c35_383, %c16_384] : memref<50x256xf32, #tpu.memory_space<vmem>>, vector<5x16xf32>
    tpu.vector_store %arg12[%c35_383, %c16_384], %257 {strides = array<i32>} : memref<50x256xf32, #tpu.memory_space<vmem>>, vector<5x16xf32>,
    %c223_385 = arith.constant 223 : index
    %c0_386 = arith.constant 0 : index
    %259 = tpu.strided_load %arg11[%c223_385, %c0_386] {strides = array<i32: 2, 1>} : memref<338x16xf32, #tpu.memory_space<vmem>>, vector<5x16xf32>
    %c35_387 = arith.constant 35 : index
    %c32_388 = arith.constant 32 : index
    %260 = vector.load %arg12[%c35_387, %c32_388] : memref<50x256xf32, #tpu.memory_space<vmem>>, vector<5x16xf32>
    tpu.vector_store %arg12[%c35_387, %c32_388], %259 {strides = array<i32>} : memref<50x256xf32, #tpu.memory_space<vmem>>, vector<5x16xf32>,
    %c224_389 = arith.constant 224 : index
    %c0_390 = arith.constant 0 : index
    %261 = tpu.strided_load %arg11[%c224_389, %c0_390] {strides = array<i32: 2, 1>} : memref<338x16xf32, #tpu.memory_space<vmem>>, vector<5x16xf32>
    %c35_391 = arith.constant 35 : index
    %c48_392 = arith.constant 48 : index
    %262 = vector.load %arg12[%c35_391, %c48_392] : memref<50x256xf32, #tpu.memory_space<vmem>>, vector<5x16xf32>
    tpu.vector_store %arg12[%c35_391, %c48_392], %261 {strides = array<i32>} : memref<50x256xf32, #tpu.memory_space<vmem>>, vector<5x16xf32>,
    %c234_393 = arith.constant 234 : index
    %c0_394 = arith.constant 0 : index
    %263 = tpu.strided_load %arg11[%c234_393, %c0_394] {strides = array<i32: 2, 1>} : memref<338x16xf32, #tpu.memory_space<vmem>>, vector<5x16xf32>
    %c35_395 = arith.constant 35 : index
    %c64_396 = arith.constant 64 : index
    %264 = vector.load %arg12[%c35_395, %c64_396] : memref<50x256xf32, #tpu.memory_space<vmem>>, vector<5x16xf32>
    tpu.vector_store %arg12[%c35_395, %c64_396], %263 {strides = array<i32>} : memref<50x256xf32, #tpu.memory_space<vmem>>, vector<5x16xf32>,
    %c235_397 = arith.constant 235 : index
    %c0_398 = arith.constant 0 : index
    %265 = tpu.strided_load %arg11[%c235_397, %c0_398] {strides = array<i32: 2, 1>} : memref<338x16xf32, #tpu.memory_space<vmem>>, vector<5x16xf32>
    %c35_399 = arith.constant 35 : index
    %c80_400 = arith.constant 80 : index
    %266 = vector.load %arg12[%c35_399, %c80_400] : memref<50x256xf32, #tpu.memory_space<vmem>>, vector<5x16xf32>
    tpu.vector_store %arg12[%c35_399, %c80_400], %265 {strides = array<i32>} : memref<50x256xf32, #tpu.memory_space<vmem>>, vector<5x16xf32>,
    %c236_401 = arith.constant 236 : index
    %c0_402 = arith.constant 0 : index
    %267 = tpu.strided_load %arg11[%c236_401, %c0_402] {strides = array<i32: 2, 1>} : memref<338x16xf32, #tpu.memory_space<vmem>>, vector<5x16xf32>
    %c35_403 = arith.constant 35 : index
    %c96_404 = arith.constant 96 : index
    %268 = vector.load %arg12[%c35_403, %c96_404] : memref<50x256xf32, #tpu.memory_space<vmem>>, vector<5x16xf32>
    tpu.vector_store %arg12[%c35_403, %c96_404], %267 {strides = array<i32>} : memref<50x256xf32, #tpu.memory_space<vmem>>, vector<5x16xf32>,
    %c237_405 = arith.constant 237 : index
    %c0_406 = arith.constant 0 : index
    %269 = tpu.strided_load %arg11[%c237_405, %c0_406] {strides = array<i32: 2, 1>} : memref<338x16xf32, #tpu.memory_space<vmem>>, vector<5x16xf32>
    %c35_407 = arith.constant 35 : index
    %c112_408 = arith.constant 112 : index
    %270 = vector.load %arg12[%c35_407, %c112_408] : memref<50x256xf32, #tpu.memory_space<vmem>>, vector<5x16xf32>
    tpu.vector_store %arg12[%c35_407, %c112_408], %269 {strides = array<i32>} : memref<50x256xf32, #tpu.memory_space<vmem>>, vector<5x16xf32>,
    %c247 = arith.constant 247 : index
    %c0_409 = arith.constant 0 : index
    %271 = tpu.strided_load %arg11[%c247, %c0_409] {strides = array<i32: 2, 1>} : memref<338x16xf32, #tpu.memory_space<vmem>>, vector<5x16xf32>
    %c35_410 = arith.constant 35 : index
    %c128_411 = arith.constant 128 : index
    %272 = vector.load %arg12[%c35_410, %c128_411] : memref<50x256xf32, #tpu.memory_space<vmem>>, vector<5x16xf32>
    tpu.vector_store %arg12[%c35_410, %c128_411], %271 {strides = array<i32>} : memref<50x256xf32, #tpu.memory_space<vmem>>, vector<5x16xf32>,
    %c248 = arith.constant 248 : index
    %c0_412 = arith.constant 0 : index
    %273 = tpu.strided_load %arg11[%c248, %c0_412] {strides = array<i32: 2, 1>} : memref<338x16xf32, #tpu.memory_space<vmem>>, vector<5x16xf32>
    %c35_413 = arith.constant 35 : index
    %c144_414 = arith.constant 144 : index
    %274 = vector.load %arg12[%c35_413, %c144_414] : memref<50x256xf32, #tpu.memory_space<vmem>>, vector<5x16xf32>
    tpu.vector_store %arg12[%c35_413, %c144_414], %273 {strides = array<i32>} : memref<50x256xf32, #tpu.memory_space<vmem>>, vector<5x16xf32>,
    %c249 = arith.constant 249 : index
    %c0_415 = arith.constant 0 : index
    %275 = tpu.strided_load %arg11[%c249, %c0_415] {strides = array<i32: 2, 1>} : memref<338x16xf32, #tpu.memory_space<vmem>>, vector<5x16xf32>
    %c35_416 = arith.constant 35 : index
    %c160_417 = arith.constant 160 : index
    %276 = vector.load %arg12[%c35_416, %c160_417] : memref<50x256xf32, #tpu.memory_space<vmem>>, vector<5x16xf32>
    tpu.vector_store %arg12[%c35_416, %c160_417], %275 {strides = array<i32>} : memref<50x256xf32, #tpu.memory_space<vmem>>, vector<5x16xf32>,
    %c250 = arith.constant 250 : index
    %c0_418 = arith.constant 0 : index
    %277 = tpu.strided_load %arg11[%c250, %c0_418] {strides = array<i32: 2, 1>} : memref<338x16xf32, #tpu.memory_space<vmem>>, vector<5x16xf32>
    %c35_419 = arith.constant 35 : index
    %c176_420 = arith.constant 176 : index
    %278 = vector.load %arg12[%c35_419, %c176_420] : memref<50x256xf32, #tpu.memory_space<vmem>>, vector<5x16xf32>
    tpu.vector_store %arg12[%c35_419, %c176_420], %277 {strides = array<i32>} : memref<50x256xf32, #tpu.memory_space<vmem>>, vector<5x16xf32>,
    %c260 = arith.constant 260 : index
    %c0_421 = arith.constant 0 : index
    %279 = tpu.strided_load %arg11[%c260, %c0_421] {strides = array<i32: 2, 1>} : memref<338x16xf32, #tpu.memory_space<vmem>>, vector<5x16xf32>
    %c35_422 = arith.constant 35 : index
    %c192_423 = arith.constant 192 : index
    %280 = vector.load %arg12[%c35_422, %c192_423] : memref<50x256xf32, #tpu.memory_space<vmem>>, vector<5x16xf32>
    tpu.vector_store %arg12[%c35_422, %c192_423], %279 {strides = array<i32>} : memref<50x256xf32, #tpu.memory_space<vmem>>, vector<5x16xf32>,
    %c261 = arith.constant 261 : index
    %c0_424 = arith.constant 0 : index
    %281 = tpu.strided_load %arg11[%c261, %c0_424] {strides = array<i32: 2, 1>} : memref<338x16xf32, #tpu.memory_space<vmem>>, vector<5x16xf32>
    %c35_425 = arith.constant 35 : index
    %c208_426 = arith.constant 208 : index
    %282 = vector.load %arg12[%c35_425, %c208_426] : memref<50x256xf32, #tpu.memory_space<vmem>>, vector<5x16xf32>
    tpu.vector_store %arg12[%c35_425, %c208_426], %281 {strides = array<i32>} : memref<50x256xf32, #tpu.memory_space<vmem>>, vector<5x16xf32>,
    %c262 = arith.constant 262 : index
    %c0_427 = arith.constant 0 : index
    %283 = tpu.strided_load %arg11[%c262, %c0_427] {strides = array<i32: 2, 1>} : memref<338x16xf32, #tpu.memory_space<vmem>>, vector<5x16xf32>
    %c35_428 = arith.constant 35 : index
    %c224_429 = arith.constant 224 : index
    %284 = vector.load %arg12[%c35_428, %c224_429] : memref<50x256xf32, #tpu.memory_space<vmem>>, vector<5x16xf32>
    tpu.vector_store %arg12[%c35_428, %c224_429], %283 {strides = array<i32>} : memref<50x256xf32, #tpu.memory_space<vmem>>, vector<5x16xf32>,
    %c263 = arith.constant 263 : index
    %c0_430 = arith.constant 0 : index
    %285 = tpu.strided_load %arg11[%c263, %c0_430] {strides = array<i32: 2, 1>} : memref<338x16xf32, #tpu.memory_space<vmem>>, vector<5x16xf32>
    %c35_431 = arith.constant 35 : index
    %c240_432 = arith.constant 240 : index
    %286 = vector.load %arg12[%c35_431, %c240_432] : memref<50x256xf32, #tpu.memory_space<vmem>>, vector<5x16xf32>
    tpu.vector_store %arg12[%c35_431, %c240_432], %285 {strides = array<i32>} : memref<50x256xf32, #tpu.memory_space<vmem>>, vector<5x16xf32>,
    %c247_433 = arith.constant 247 : index
    %c0_434 = arith.constant 0 : index
    %287 = tpu.strided_load %arg11[%c247_433, %c0_434] {strides = array<i32: 2, 1>} : memref<338x16xf32, #tpu.memory_space<vmem>>, vector<5x16xf32>
    %c40_435 = arith.constant 40 : index
    %c0_436 = arith.constant 0 : index
    %288 = vector.load %arg12[%c40_435, %c0_436] : memref<50x256xf32, #tpu.memory_space<vmem>>, vector<5x16xf32>
    tpu.vector_store %arg12[%c40_435, %c0_436], %287 {strides = array<i32>} : memref<50x256xf32, #tpu.memory_space<vmem>>, vector<5x16xf32>,
    %c248_437 = arith.constant 248 : index
    %c0_438 = arith.constant 0 : index
    %289 = tpu.strided_load %arg11[%c248_437, %c0_438] {strides = array<i32: 2, 1>} : memref<338x16xf32, #tpu.memory_space<vmem>>, vector<5x16xf32>
    %c40_439 = arith.constant 40 : index
    %c16_440 = arith.constant 16 : index
    %290 = vector.load %arg12[%c40_439, %c16_440] : memref<50x256xf32, #tpu.memory_space<vmem>>, vector<5x16xf32>
    tpu.vector_store %arg12[%c40_439, %c16_440], %289 {strides = array<i32>} : memref<50x256xf32, #tpu.memory_space<vmem>>, vector<5x16xf32>,
    %c249_441 = arith.constant 249 : index
    %c0_442 = arith.constant 0 : index
    %291 = tpu.strided_load %arg11[%c249_441, %c0_442] {strides = array<i32: 2, 1>} : memref<338x16xf32, #tpu.memory_space<vmem>>, vector<5x16xf32>
    %c40_443 = arith.constant 40 : index
    %c32_444 = arith.constant 32 : index
    %292 = vector.load %arg12[%c40_443, %c32_444] : memref<50x256xf32, #tpu.memory_space<vmem>>, vector<5x16xf32>
    tpu.vector_store %arg12[%c40_443, %c32_444], %291 {strides = array<i32>} : memref<50x256xf32, #tpu.memory_space<vmem>>, vector<5x16xf32>,
    %c250_445 = arith.constant 250 : index
    %c0_446 = arith.constant 0 : index
    %293 = tpu.strided_load %arg11[%c250_445, %c0_446] {strides = array<i32: 2, 1>} : memref<338x16xf32, #tpu.memory_space<vmem>>, vector<5x16xf32>
    %c40_447 = arith.constant 40 : index
    %c48_448 = arith.constant 48 : index
    %294 = vector.load %arg12[%c40_447, %c48_448] : memref<50x256xf32, #tpu.memory_space<vmem>>, vector<5x16xf32>
    tpu.vector_store %arg12[%c40_447, %c48_448], %293 {strides = array<i32>} : memref<50x256xf32, #tpu.memory_space<vmem>>, vector<5x16xf32>,
    %c260_449 = arith.constant 260 : index
    %c0_450 = arith.constant 0 : index
    %295 = tpu.strided_load %arg11[%c260_449, %c0_450] {strides = array<i32: 2, 1>} : memref<338x16xf32, #tpu.memory_space<vmem>>, vector<5x16xf32>
    %c40_451 = arith.constant 40 : index
    %c64_452 = arith.constant 64 : index
    %296 = vector.load %arg12[%c40_451, %c64_452] : memref<50x256xf32, #tpu.memory_space<vmem>>, vector<5x16xf32>
    tpu.vector_store %arg12[%c40_451, %c64_452], %295 {strides = array<i32>} : memref<50x256xf32, #tpu.memory_space<vmem>>, vector<5x16xf32>,
    %c261_453 = arith.constant 261 : index
    %c0_454 = arith.constant 0 : index
    %297 = tpu.strided_load %arg11[%c261_453, %c0_454] {strides = array<i32: 2, 1>} : memref<338x16xf32, #tpu.memory_space<vmem>>, vector<5x16xf32>
    %c40_455 = arith.constant 40 : index
    %c80_456 = arith.constant 80 : index
    %298 = vector.load %arg12[%c40_455, %c80_456] : memref<50x256xf32, #tpu.memory_space<vmem>>, vector<5x16xf32>
    tpu.vector_store %arg12[%c40_455, %c80_456], %297 {strides = array<i32>} : memref<50x256xf32, #tpu.memory_space<vmem>>, vector<5x16xf32>,
    %c262_457 = arith.constant 262 : index
    %c0_458 = arith.constant 0 : index
    %299 = tpu.strided_load %arg11[%c262_457, %c0_458] {strides = array<i32: 2, 1>} : memref<338x16xf32, #tpu.memory_space<vmem>>, vector<5x16xf32>
    %c40_459 = arith.constant 40 : index
    %c96_460 = arith.constant 96 : index
    %300 = vector.load %arg12[%c40_459, %c96_460] : memref<50x256xf32, #tpu.memory_space<vmem>>, vector<5x16xf32>
    tpu.vector_store %arg12[%c40_459, %c96_460], %299 {strides = array<i32>} : memref<50x256xf32, #tpu.memory_space<vmem>>, vector<5x16xf32>,
    %c263_461 = arith.constant 263 : index
    %c0_462 = arith.constant 0 : index
    %301 = tpu.strided_load %arg11[%c263_461, %c0_462] {strides = array<i32: 2, 1>} : memref<338x16xf32, #tpu.memory_space<vmem>>, vector<5x16xf32>
    %c40_463 = arith.constant 40 : index
    %c112_464 = arith.constant 112 : index
    %302 = vector.load %arg12[%c40_463, %c112_464] : memref<50x256xf32, #tpu.memory_space<vmem>>, vector<5x16xf32>
    tpu.vector_store %arg12[%c40_463, %c112_464], %301 {strides = array<i32>} : memref<50x256xf32, #tpu.memory_space<vmem>>, vector<5x16xf32>,
    %c273 = arith.constant 273 : index
    %c0_465 = arith.constant 0 : index
    %303 = tpu.strided_load %arg11[%c273, %c0_465] {strides = array<i32: 2, 1>} : memref<338x16xf32, #tpu.memory_space<vmem>>, vector<5x16xf32>
    %c40_466 = arith.constant 40 : index
    %c128_467 = arith.constant 128 : index
    %304 = vector.load %arg12[%c40_466, %c128_467] : memref<50x256xf32, #tpu.memory_space<vmem>>, vector<5x16xf32>
    tpu.vector_store %arg12[%c40_466, %c128_467], %303 {strides = array<i32>} : memref<50x256xf32, #tpu.memory_space<vmem>>, vector<5x16xf32>,
    %c274 = arith.constant 274 : index
    %c0_468 = arith.constant 0 : index
    %305 = tpu.strided_load %arg11[%c274, %c0_468] {strides = array<i32: 2, 1>} : memref<338x16xf32, #tpu.memory_space<vmem>>, vector<5x16xf32>
    %c40_469 = arith.constant 40 : index
    %c144_470 = arith.constant 144 : index
    %306 = vector.load %arg12[%c40_469, %c144_470] : memref<50x256xf32, #tpu.memory_space<vmem>>, vector<5x16xf32>
    tpu.vector_store %arg12[%c40_469, %c144_470], %305 {strides = array<i32>} : memref<50x256xf32, #tpu.memory_space<vmem>>, vector<5x16xf32>,
    %c275 = arith.constant 275 : index
    %c0_471 = arith.constant 0 : index
    %307 = tpu.strided_load %arg11[%c275, %c0_471] {strides = array<i32: 2, 1>} : memref<338x16xf32, #tpu.memory_space<vmem>>, vector<5x16xf32>
    %c40_472 = arith.constant 40 : index
    %c160_473 = arith.constant 160 : index
    %308 = vector.load %arg12[%c40_472, %c160_473] : memref<50x256xf32, #tpu.memory_space<vmem>>, vector<5x16xf32>
    tpu.vector_store %arg12[%c40_472, %c160_473], %307 {strides = array<i32>} : memref<50x256xf32, #tpu.memory_space<vmem>>, vector<5x16xf32>,
    %c276 = arith.constant 276 : index
    %c0_474 = arith.constant 0 : index
    %309 = tpu.strided_load %arg11[%c276, %c0_474] {strides = array<i32: 2, 1>} : memref<338x16xf32, #tpu.memory_space<vmem>>, vector<5x16xf32>
    %c40_475 = arith.constant 40 : index
    %c176_476 = arith.constant 176 : index
    %310 = vector.load %arg12[%c40_475, %c176_476] : memref<50x256xf32, #tpu.memory_space<vmem>>, vector<5x16xf32>
    tpu.vector_store %arg12[%c40_475, %c176_476], %309 {strides = array<i32>} : memref<50x256xf32, #tpu.memory_space<vmem>>, vector<5x16xf32>,
    %c286 = arith.constant 286 : index
    %c0_477 = arith.constant 0 : index
    %311 = tpu.strided_load %arg11[%c286, %c0_477] {strides = array<i32: 2, 1>} : memref<338x16xf32, #tpu.memory_space<vmem>>, vector<5x16xf32>
    %c40_478 = arith.constant 40 : index
    %c192_479 = arith.constant 192 : index
    %312 = vector.load %arg12[%c40_478, %c192_479] : memref<50x256xf32, #tpu.memory_space<vmem>>, vector<5x16xf32>
    tpu.vector_store %arg12[%c40_478, %c192_479], %311 {strides = array<i32>} : memref<50x256xf32, #tpu.memory_space<vmem>>, vector<5x16xf32>,
    %c287 = arith.constant 287 : index
    %c0_480 = arith.constant 0 : index
    %313 = tpu.strided_load %arg11[%c287, %c0_480] {strides = array<i32: 2, 1>} : memref<338x16xf32, #tpu.memory_space<vmem>>, vector<5x16xf32>
    %c40_481 = arith.constant 40 : index
    %c208_482 = arith.constant 208 : index
    %314 = vector.load %arg12[%c40_481, %c208_482] : memref<50x256xf32, #tpu.memory_space<vmem>>, vector<5x16xf32>
    tpu.vector_store %arg12[%c40_481, %c208_482], %313 {strides = array<i32>} : memref<50x256xf32, #tpu.memory_space<vmem>>, vector<5x16xf32>,
    %c288 = arith.constant 288 : index
    %c0_483 = arith.constant 0 : index
    %315 = tpu.strided_load %arg11[%c288, %c0_483] {strides = array<i32: 2, 1>} : memref<338x16xf32, #tpu.memory_space<vmem>>, vector<5x16xf32>
    %c40_484 = arith.constant 40 : index
    %c224_485 = arith.constant 224 : index
    %316 = vector.load %arg12[%c40_484, %c224_485] : memref<50x256xf32, #tpu.memory_space<vmem>>, vector<5x16xf32>
    tpu.vector_store %arg12[%c40_484, %c224_485], %315 {strides = array<i32>} : memref<50x256xf32, #tpu.memory_space<vmem>>, vector<5x16xf32>,
    %c289 = arith.constant 289 : index
    %c0_486 = arith.constant 0 : index
    %317 = tpu.strided_load %arg11[%c289, %c0_486] {strides = array<i32: 2, 1>} : memref<338x16xf32, #tpu.memory_space<vmem>>, vector<5x16xf32>
    %c40_487 = arith.constant 40 : index
    %c240_488 = arith.constant 240 : index
    %318 = vector.load %arg12[%c40_487, %c240_488] : memref<50x256xf32, #tpu.memory_space<vmem>>, vector<5x16xf32>
    tpu.vector_store %arg12[%c40_487, %c240_488], %317 {strides = array<i32>} : memref<50x256xf32, #tpu.memory_space<vmem>>, vector<5x16xf32>,
    %c273_489 = arith.constant 273 : index
    %c0_490 = arith.constant 0 : index
    %319 = tpu.strided_load %arg11[%c273_489, %c0_490] {strides = array<i32: 2, 1>} : memref<338x16xf32, #tpu.memory_space<vmem>>, vector<5x16xf32>
    %c45 = arith.constant 45 : index
    %c0_491 = arith.constant 0 : index
    %320 = vector.load %arg12[%c45, %c0_491] : memref<50x256xf32, #tpu.memory_space<vmem>>, vector<5x16xf32>
    tpu.vector_store %arg12[%c45, %c0_491], %319 {strides = array<i32>} : memref<50x256xf32, #tpu.memory_space<vmem>>, vector<5x16xf32>,
    %c274_492 = arith.constant 274 : index
    %c0_493 = arith.constant 0 : index
    %321 = tpu.strided_load %arg11[%c274_492, %c0_493] {strides = array<i32: 2, 1>} : memref<338x16xf32, #tpu.memory_space<vmem>>, vector<5x16xf32>
    %c45_494 = arith.constant 45 : index
    %c16_495 = arith.constant 16 : index
    %322 = vector.load %arg12[%c45_494, %c16_495] : memref<50x256xf32, #tpu.memory_space<vmem>>, vector<5x16xf32>
    tpu.vector_store %arg12[%c45_494, %c16_495], %321 {strides = array<i32>} : memref<50x256xf32, #tpu.memory_space<vmem>>, vector<5x16xf32>,
    %c275_496 = arith.constant 275 : index
    %c0_497 = arith.constant 0 : index
    %323 = tpu.strided_load %arg11[%c275_496, %c0_497] {strides = array<i32: 2, 1>} : memref<338x16xf32, #tpu.memory_space<vmem>>, vector<5x16xf32>
    %c45_498 = arith.constant 45 : index
    %c32_499 = arith.constant 32 : index
    %324 = vector.load %arg12[%c45_498, %c32_499] : memref<50x256xf32, #tpu.memory_space<vmem>>, vector<5x16xf32>
    tpu.vector_store %arg12[%c45_498, %c32_499], %323 {strides = array<i32>} : memref<50x256xf32, #tpu.memory_space<vmem>>, vector<5x16xf32>,
    %c276_500 = arith.constant 276 : index
    %c0_501 = arith.constant 0 : index
    %325 = tpu.strided_load %arg11[%c276_500, %c0_501] {strides = array<i32: 2, 1>} : memref<338x16xf32, #tpu.memory_space<vmem>>, vector<5x16xf32>
    %c45_502 = arith.constant 45 : index
    %c48_503 = arith.constant 48 : index
    %326 = vector.load %arg12[%c45_502, %c48_503] : memref<50x256xf32, #tpu.memory_space<vmem>>, vector<5x16xf32>
    tpu.vector_store %arg12[%c45_502, %c48_503], %325 {strides = array<i32>} : memref<50x256xf32, #tpu.memory_space<vmem>>, vector<5x16xf32>,
    %c286_504 = arith.constant 286 : index
    %c0_505 = arith.constant 0 : index
    %327 = tpu.strided_load %arg11[%c286_504, %c0_505] {strides = array<i32: 2, 1>} : memref<338x16xf32, #tpu.memory_space<vmem>>, vector<5x16xf32>
    %c45_506 = arith.constant 45 : index
    %c64_507 = arith.constant 64 : index
    %328 = vector.load %arg12[%c45_506, %c64_507] : memref<50x256xf32, #tpu.memory_space<vmem>>, vector<5x16xf32>
    tpu.vector_store %arg12[%c45_506, %c64_507], %327 {strides = array<i32>} : memref<50x256xf32, #tpu.memory_space<vmem>>, vector<5x16xf32>,
    %c287_508 = arith.constant 287 : index
    %c0_509 = arith.constant 0 : index
    %329 = tpu.strided_load %arg11[%c287_508, %c0_509] {strides = array<i32: 2, 1>} : memref<338x16xf32, #tpu.memory_space<vmem>>, vector<5x16xf32>
    %c45_510 = arith.constant 45 : index
    %c80_511 = arith.constant 80 : index
    %330 = vector.load %arg12[%c45_510, %c80_511] : memref<50x256xf32, #tpu.memory_space<vmem>>, vector<5x16xf32>
    tpu.vector_store %arg12[%c45_510, %c80_511], %329 {strides = array<i32>} : memref<50x256xf32, #tpu.memory_space<vmem>>, vector<5x16xf32>,
    %c288_512 = arith.constant 288 : index
    %c0_513 = arith.constant 0 : index
    %331 = tpu.strided_load %arg11[%c288_512, %c0_513] {strides = array<i32: 2, 1>} : memref<338x16xf32, #tpu.memory_space<vmem>>, vector<5x16xf32>
    %c45_514 = arith.constant 45 : index
    %c96_515 = arith.constant 96 : index
    %332 = vector.load %arg12[%c45_514, %c96_515] : memref<50x256xf32, #tpu.memory_space<vmem>>, vector<5x16xf32>
    tpu.vector_store %arg12[%c45_514, %c96_515], %331 {strides = array<i32>} : memref<50x256xf32, #tpu.memory_space<vmem>>, vector<5x16xf32>,
    %c289_516 = arith.constant 289 : index
    %c0_517 = arith.constant 0 : index
    %333 = tpu.strided_load %arg11[%c289_516, %c0_517] {strides = array<i32: 2, 1>} : memref<338x16xf32, #tpu.memory_space<vmem>>, vector<5x16xf32>
    %c45_518 = arith.constant 45 : index
    %c112_519 = arith.constant 112 : index
    %334 = vector.load %arg12[%c45_518, %c112_519] : memref<50x256xf32, #tpu.memory_space<vmem>>, vector<5x16xf32>
    tpu.vector_store %arg12[%c45_518, %c112_519], %333 {strides = array<i32>} : memref<50x256xf32, #tpu.memory_space<vmem>>, vector<5x16xf32>,
    %c299 = arith.constant 299 : index
    %c0_520 = arith.constant 0 : index
    %335 = tpu.strided_load %arg11[%c299, %c0_520] {strides = array<i32: 2, 1>} : memref<338x16xf32, #tpu.memory_space<vmem>>, vector<5x16xf32>
    %c45_521 = arith.constant 45 : index
    %c128_522 = arith.constant 128 : index
    %336 = vector.load %arg12[%c45_521, %c128_522] : memref<50x256xf32, #tpu.memory_space<vmem>>, vector<5x16xf32>
    tpu.vector_store %arg12[%c45_521, %c128_522], %335 {strides = array<i32>} : memref<50x256xf32, #tpu.memory_space<vmem>>, vector<5x16xf32>,
    %c300 = arith.constant 300 : index
    %c0_523 = arith.constant 0 : index
    %337 = tpu.strided_load %arg11[%c300, %c0_523] {strides = array<i32: 2, 1>} : memref<338x16xf32, #tpu.memory_space<vmem>>, vector<5x16xf32>
    %c45_524 = arith.constant 45 : index
    %c144_525 = arith.constant 144 : index
    %338 = vector.load %arg12[%c45_524, %c144_525] : memref<50x256xf32, #tpu.memory_space<vmem>>, vector<5x16xf32>
    tpu.vector_store %arg12[%c45_524, %c144_525], %337 {strides = array<i32>} : memref<50x256xf32, #tpu.memory_space<vmem>>, vector<5x16xf32>,
    %c301 = arith.constant 301 : index
    %c0_526 = arith.constant 0 : index
    %339 = tpu.strided_load %arg11[%c301, %c0_526] {strides = array<i32: 2, 1>} : memref<338x16xf32, #tpu.memory_space<vmem>>, vector<5x16xf32>
    %c45_527 = arith.constant 45 : index
    %c160_528 = arith.constant 160 : index
    %340 = vector.load %arg12[%c45_527, %c160_528] : memref<50x256xf32, #tpu.memory_space<vmem>>, vector<5x16xf32>
    tpu.vector_store %arg12[%c45_527, %c160_528], %339 {strides = array<i32>} : memref<50x256xf32, #tpu.memory_space<vmem>>, vector<5x16xf32>,
    %c302 = arith.constant 302 : index
    %c0_529 = arith.constant 0 : index
    %341 = tpu.strided_load %arg11[%c302, %c0_529] {strides = array<i32: 2, 1>} : memref<338x16xf32, #tpu.memory_space<vmem>>, vector<5x16xf32>
    %c45_530 = arith.constant 45 : index
    %c176_531 = arith.constant 176 : index
    %342 = vector.load %arg12[%c45_530, %c176_531] : memref<50x256xf32, #tpu.memory_space<vmem>>, vector<5x16xf32>
    tpu.vector_store %arg12[%c45_530, %c176_531], %341 {strides = array<i32>} : memref<50x256xf32, #tpu.memory_space<vmem>>, vector<5x16xf32>,
    %c312 = arith.constant 312 : index
    %c0_532 = arith.constant 0 : index
    %343 = tpu.strided_load %arg11[%c312, %c0_532] {strides = array<i32: 2, 1>} : memref<338x16xf32, #tpu.memory_space<vmem>>, vector<5x16xf32>
    %c45_533 = arith.constant 45 : index
    %c192_534 = arith.constant 192 : index
    %344 = vector.load %arg12[%c45_533, %c192_534] : memref<50x256xf32, #tpu.memory_space<vmem>>, vector<5x16xf32>
    tpu.vector_store %arg12[%c45_533, %c192_534], %343 {strides = array<i32>} : memref<50x256xf32, #tpu.memory_space<vmem>>, vector<5x16xf32>,
    %c313 = arith.constant 313 : index
    %c0_535 = arith.constant 0 : index
    %345 = tpu.strided_load %arg11[%c313, %c0_535] {strides = array<i32: 2, 1>} : memref<338x16xf32, #tpu.memory_space<vmem>>, vector<5x16xf32>
    %c45_536 = arith.constant 45 : index
    %c208_537 = arith.constant 208 : index
    %346 = vector.load %arg12[%c45_536, %c208_537] : memref<50x256xf32, #tpu.memory_space<vmem>>, vector<5x16xf32>
    tpu.vector_store %arg12[%c45_536, %c208_537], %345 {strides = array<i32>} : memref<50x256xf32, #tpu.memory_space<vmem>>, vector<5x16xf32>,
    %c314 = arith.constant 314 : index
    %c0_538 = arith.constant 0 : index
    %347 = tpu.strided_load %arg11[%c314, %c0_538] {strides = array<i32: 2, 1>} : memref<338x16xf32, #tpu.memory_space<vmem>>, vector<5x16xf32>
    %c45_539 = arith.constant 45 : index
    %c224_540 = arith.constant 224 : index
    %348 = vector.load %arg12[%c45_539, %c224_540] : memref<50x256xf32, #tpu.memory_space<vmem>>, vector<5x16xf32>
    tpu.vector_store %arg12[%c45_539, %c224_540], %347 {strides = array<i32>} : memref<50x256xf32, #tpu.memory_space<vmem>>, vector<5x16xf32>,
    %c315 = arith.constant 315 : index
    %c0_541 = arith.constant 0 : index
    %349 = tpu.strided_load %arg11[%c315, %c0_541] {strides = array<i32: 2, 1>} : memref<338x16xf32, #tpu.memory_space<vmem>>, vector<5x16xf32>
    %c45_542 = arith.constant 45 : index
    %c240_543 = arith.constant 240 : index
    %350 = vector.load %arg12[%c45_542, %c240_543] : memref<50x256xf32, #tpu.memory_space<vmem>>, vector<5x16xf32>
    tpu.vector_store %arg12[%c45_542, %c240_543], %349 {strides = array<i32>} : memref<50x256xf32, #tpu.memory_space<vmem>>, vector<5x16xf32>,
    %c0_544 = arith.constant 0 : index
    %c0_545 = arith.constant 0 : index
    %351 = vector.load %arg12[%c0_544, %c0_545] : memref<50x256xf32, #tpu.memory_space<vmem>>, vector<50x256xf32>
    %352 = arith.truncf %351 : vector<50x256xf32> to vector<50x256xbf16>
    %c0_546 = arith.constant 0 : index
    %c0_547 = arith.constant 0 : index
    %353 = vector.load %arg5[%c0_546, %c0_547] : memref<256x32xbf16, #tpu.memory_space<vmem>>, vector<256x32xbf16>
    %cst_548 = arith.constant dense<0.000000e+00> : vector<50x32xf32>
    %354 = tpu.matmul %352, %353, %cst_548 {dimension_numbers = #tpu.dot_dimension_numbers<[1], [0], [0], [1], [0, 0, 1, 1], [], []>} : vector<50x256xbf16>, vector<256x32xbf16>, vector<50x32xf32> -> vector<50x32xf32>
    %c0_549 = arith.constant 0 : index
    %c0_550 = arith.constant 0 : index
    %355 = vector.load %arg6[%c0_549, %c0_550] : memref<1x32xf32, #tpu.memory_space<vmem>>, vector<1x32xf32>
    %c0_551 = arith.constant 0 : index
    %c0_552 = arith.constant 0 : index
    %356 = vector.load %arg7[%c0_551, %c0_552] : memref<1x32xf32, #tpu.memory_space<vmem>>, vector<1x32xf32>
    %cst_553 = arith.constant dense<0.000000e+00> : vector<32xf32>
    %357 = vector.multi_reduction <add>, %354, %cst_553 [0] : vector<50x32xf32> to vector<32xf32>
    %358 = vector.shape_cast %357 : vector<32xf32> to vector<1x32xf32>
    %359 = arith.mulf %354, %354 : vector<50x32xf32>
    %cst_554 = arith.constant dense<0.000000e+00> : vector<32xf32>
    %360 = vector.multi_reduction <add>, %359, %cst_554 [0] : vector<50x32xf32> to vector<32xf32>
    %361 = vector.shape_cast %360 : vector<32xf32> to vector<1x32xf32>
    %cst_555 = arith.constant 2.000000e-02 : f32
    %362 = vector.broadcast %cst_555 : f32 to vector<1x32xf32>
    %363 = arith.mulf %358, %362 : vector<1x32xf32>
    %cst_556 = arith.constant 2.000000e-02 : f32
    %364 = vector.broadcast %cst_556 : f32 to vector<1x32xf32>
    %365 = arith.mulf %361, %364 : vector<1x32xf32>
    %366 = arith.mulf %363, %363 : vector<1x32xf32>
    %367 = arith.subf %365, %366 : vector<1x32xf32>
    %cst_557 = arith.constant 0.000000e+00 : f32
    %368 = vector.broadcast %cst_557 : f32 to vector<1x32xf32>
    %369 = arith.maximumf %367, %368 : vector<1x32xf32>
    %cst_558 = arith.constant 9.99999974E-6 : f32
    %370 = vector.broadcast %cst_558 : f32 to vector<1x32xf32>
    %371 = arith.addf %369, %370 : vector<1x32xf32>
    %372 = math.rsqrt %371 : vector<1x32xf32>
    %373 = arith.mulf %355, %372 : vector<1x32xf32>
    %374 = arith.mulf %363, %373 : vector<1x32xf32>
    %375 = arith.subf %356, %374 : vector<1x32xf32>
    %376 = vector.broadcast %373 : vector<1x32xf32> to vector<50x32xf32>
    %377 = arith.mulf %354, %376 : vector<50x32xf32>
    %378 = vector.broadcast %375 : vector<1x32xf32> to vector<50x32xf32>
    %379 = arith.addf %377, %378 : vector<50x32xf32>
    %cst_559 = arith.constant 0.000000e+00 : f32
    %380 = vector.broadcast %cst_559 : f32 to vector<50x32xf32>
    %381 = arith.maximumf %379, %380 : vector<50x32xf32>
    %c0_560 = arith.constant 0 : index
    %c0_561 = arith.constant 0 : index
    %382 = vector.load %arg13[%c0_560, %c0_561] : memref<50x32xf32, #tpu.memory_space<vmem>>, vector<50x32xf32>
    tpu.vector_store %arg13[%c0_560, %c0_561], %381 {strides = array<i32>} : memref<50x32xf32, #tpu.memory_space<vmem>>, vector<50x32xf32>,
    %c0_562 = arith.constant 0 : index
    %c0_563 = arith.constant 0 : index
    %383 = tpu.strided_load %arg13[%c0_562, %c0_563] {strides = array<i32: 2, 1>} : memref<50x32xf32, #tpu.memory_space<vmem>>, vector<1x32xf32>
    %c0_564 = arith.constant 0 : index
    %c0_565 = arith.constant 0 : index
    %384 = vector.load %arg14[%c0_564, %c0_565] : memref<2x512xf32, #tpu.memory_space<vmem>>, vector<1x32xf32>
    tpu.vector_store %arg14[%c0_564, %c0_565], %383 {strides = array<i32>} : memref<2x512xf32, #tpu.memory_space<vmem>>, vector<1x32xf32>,
    %c1_566 = arith.constant 1 : index
    %c0_567 = arith.constant 0 : index
    %385 = tpu.strided_load %arg13[%c1_566, %c0_567] {strides = array<i32: 2, 1>} : memref<50x32xf32, #tpu.memory_space<vmem>>, vector<1x32xf32>
    %c0_568 = arith.constant 0 : index
    %c32_569 = arith.constant 32 : index
    %386 = vector.load %arg14[%c0_568, %c32_569] : memref<2x512xf32, #tpu.memory_space<vmem>>, vector<1x32xf32>
    tpu.vector_store %arg14[%c0_568, %c32_569], %385 {strides = array<i32>} : memref<2x512xf32, #tpu.memory_space<vmem>>, vector<1x32xf32>,
    %c2_570 = arith.constant 2 : index
    %c0_571 = arith.constant 0 : index
    %387 = tpu.strided_load %arg13[%c2_570, %c0_571] {strides = array<i32: 2, 1>} : memref<50x32xf32, #tpu.memory_space<vmem>>, vector<1x32xf32>
    %c0_572 = arith.constant 0 : index
    %c64_573 = arith.constant 64 : index
    %388 = vector.load %arg14[%c0_572, %c64_573] : memref<2x512xf32, #tpu.memory_space<vmem>>, vector<1x32xf32>
    tpu.vector_store %arg14[%c0_572, %c64_573], %387 {strides = array<i32>} : memref<2x512xf32, #tpu.memory_space<vmem>>, vector<1x32xf32>,
    %c3_574 = arith.constant 3 : index
    %c0_575 = arith.constant 0 : index
    %389 = tpu.strided_load %arg13[%c3_574, %c0_575] {strides = array<i32: 2, 1>} : memref<50x32xf32, #tpu.memory_space<vmem>>, vector<1x32xf32>
    %c0_576 = arith.constant 0 : index
    %c96_577 = arith.constant 96 : index
    %390 = vector.load %arg14[%c0_576, %c96_577] : memref<2x512xf32, #tpu.memory_space<vmem>>, vector<1x32xf32>
    tpu.vector_store %arg14[%c0_576, %c96_577], %389 {strides = array<i32>} : memref<2x512xf32, #tpu.memory_space<vmem>>, vector<1x32xf32>,
    %c5_578 = arith.constant 5 : index
    %c0_579 = arith.constant 0 : index
    %391 = tpu.strided_load %arg13[%c5_578, %c0_579] {strides = array<i32: 2, 1>} : memref<50x32xf32, #tpu.memory_space<vmem>>, vector<1x32xf32>
    %c0_580 = arith.constant 0 : index
    %c128_581 = arith.constant 128 : index
    %392 = vector.load %arg14[%c0_580, %c128_581] : memref<2x512xf32, #tpu.memory_space<vmem>>, vector<1x32xf32>
    tpu.vector_store %arg14[%c0_580, %c128_581], %391 {strides = array<i32>} : memref<2x512xf32, #tpu.memory_space<vmem>>, vector<1x32xf32>,
    %c6 = arith.constant 6 : index
    %c0_582 = arith.constant 0 : index
    %393 = tpu.strided_load %arg13[%c6, %c0_582] {strides = array<i32: 2, 1>} : memref<50x32xf32, #tpu.memory_space<vmem>>, vector<1x32xf32>
    %c0_583 = arith.constant 0 : index
    %c160_584 = arith.constant 160 : index
    %394 = vector.load %arg14[%c0_583, %c160_584] : memref<2x512xf32, #tpu.memory_space<vmem>>, vector<1x32xf32>
    tpu.vector_store %arg14[%c0_583, %c160_584], %393 {strides = array<i32>} : memref<2x512xf32, #tpu.memory_space<vmem>>, vector<1x32xf32>,
    %c7 = arith.constant 7 : index
    %c0_585 = arith.constant 0 : index
    %395 = tpu.strided_load %arg13[%c7, %c0_585] {strides = array<i32: 2, 1>} : memref<50x32xf32, #tpu.memory_space<vmem>>, vector<1x32xf32>
    %c0_586 = arith.constant 0 : index
    %c192_587 = arith.constant 192 : index
    %396 = vector.load %arg14[%c0_586, %c192_587] : memref<2x512xf32, #tpu.memory_space<vmem>>, vector<1x32xf32>
    tpu.vector_store %arg14[%c0_586, %c192_587], %395 {strides = array<i32>} : memref<2x512xf32, #tpu.memory_space<vmem>>, vector<1x32xf32>,
    %c8 = arith.constant 8 : index
    %c0_588 = arith.constant 0 : index
    %397 = tpu.strided_load %arg13[%c8, %c0_588] {strides = array<i32: 2, 1>} : memref<50x32xf32, #tpu.memory_space<vmem>>, vector<1x32xf32>
    %c0_589 = arith.constant 0 : index
    %c224_590 = arith.constant 224 : index
    %398 = vector.load %arg14[%c0_589, %c224_590] : memref<2x512xf32, #tpu.memory_space<vmem>>, vector<1x32xf32>
    tpu.vector_store %arg14[%c0_589, %c224_590], %397 {strides = array<i32>} : memref<2x512xf32, #tpu.memory_space<vmem>>, vector<1x32xf32>,
    %c10_591 = arith.constant 10 : index
    %c0_592 = arith.constant 0 : index
    %399 = tpu.strided_load %arg13[%c10_591, %c0_592] {strides = array<i32: 2, 1>} : memref<50x32xf32, #tpu.memory_space<vmem>>, vector<1x32xf32>
    %c0_593 = arith.constant 0 : index
    %c256 = arith.constant 256 : index
    %400 = vector.load %arg14[%c0_593, %c256] : memref<2x512xf32, #tpu.memory_space<vmem>>, vector<1x32xf32>
    tpu.vector_store %arg14[%c0_593, %c256], %399 {strides = array<i32>} : memref<2x512xf32, #tpu.memory_space<vmem>>, vector<1x32xf32>,
    %c11 = arith.constant 11 : index
    %c0_594 = arith.constant 0 : index
    %401 = tpu.strided_load %arg13[%c11, %c0_594] {strides = array<i32: 2, 1>} : memref<50x32xf32, #tpu.memory_space<vmem>>, vector<1x32xf32>
    %c0_595 = arith.constant 0 : index
    %c288_596 = arith.constant 288 : index
    %402 = vector.load %arg14[%c0_595, %c288_596] : memref<2x512xf32, #tpu.memory_space<vmem>>, vector<1x32xf32>
    tpu.vector_store %arg14[%c0_595, %c288_596], %401 {strides = array<i32>} : memref<2x512xf32, #tpu.memory_space<vmem>>, vector<1x32xf32>,
    %c12 = arith.constant 12 : index
    %c0_597 = arith.constant 0 : index
    %403 = tpu.strided_load %arg13[%c12, %c0_597] {strides = array<i32: 2, 1>} : memref<50x32xf32, #tpu.memory_space<vmem>>, vector<1x32xf32>
    %c0_598 = arith.constant 0 : index
    %c320 = arith.constant 320 : index
    %404 = vector.load %arg14[%c0_598, %c320] : memref<2x512xf32, #tpu.memory_space<vmem>>, vector<1x32xf32>
    tpu.vector_store %arg14[%c0_598, %c320], %403 {strides = array<i32>} : memref<2x512xf32, #tpu.memory_space<vmem>>, vector<1x32xf32>,
    %c13_599 = arith.constant 13 : index
    %c0_600 = arith.constant 0 : index
    %405 = tpu.strided_load %arg13[%c13_599, %c0_600] {strides = array<i32: 2, 1>} : memref<50x32xf32, #tpu.memory_space<vmem>>, vector<1x32xf32>
    %c0_601 = arith.constant 0 : index
    %c352 = arith.constant 352 : index
    %406 = vector.load %arg14[%c0_601, %c352] : memref<2x512xf32, #tpu.memory_space<vmem>>, vector<1x32xf32>
    tpu.vector_store %arg14[%c0_601, %c352], %405 {strides = array<i32>} : memref<2x512xf32, #tpu.memory_space<vmem>>, vector<1x32xf32>,
    %c15_602 = arith.constant 15 : index
    %c0_603 = arith.constant 0 : index
    %407 = tpu.strided_load %arg13[%c15_602, %c0_603] {strides = array<i32: 2, 1>} : memref<50x32xf32, #tpu.memory_space<vmem>>, vector<1x32xf32>
    %c0_604 = arith.constant 0 : index
    %c384 = arith.constant 384 : index
    %408 = vector.load %arg14[%c0_604, %c384] : memref<2x512xf32, #tpu.memory_space<vmem>>, vector<1x32xf32>
    tpu.vector_store %arg14[%c0_604, %c384], %407 {strides = array<i32>} : memref<2x512xf32, #tpu.memory_space<vmem>>, vector<1x32xf32>,
    %c16_605 = arith.constant 16 : index
    %c0_606 = arith.constant 0 : index
    %409 = tpu.strided_load %arg13[%c16_605, %c0_606] {strides = array<i32: 2, 1>} : memref<50x32xf32, #tpu.memory_space<vmem>>, vector<1x32xf32>
    %c0_607 = arith.constant 0 : index
    %c416 = arith.constant 416 : index
    %410 = vector.load %arg14[%c0_607, %c416] : memref<2x512xf32, #tpu.memory_space<vmem>>, vector<1x32xf32>
    tpu.vector_store %arg14[%c0_607, %c416], %409 {strides = array<i32>} : memref<2x512xf32, #tpu.memory_space<vmem>>, vector<1x32xf32>,
    %c17 = arith.constant 17 : index
    %c0_608 = arith.constant 0 : index
    %411 = tpu.strided_load %arg13[%c17, %c0_608] {strides = array<i32: 2, 1>} : memref<50x32xf32, #tpu.memory_space<vmem>>, vector<1x32xf32>
    %c0_609 = arith.constant 0 : index
    %c448 = arith.constant 448 : index
    %412 = vector.load %arg14[%c0_609, %c448] : memref<2x512xf32, #tpu.memory_space<vmem>>, vector<1x32xf32>
    tpu.vector_store %arg14[%c0_609, %c448], %411 {strides = array<i32>} : memref<2x512xf32, #tpu.memory_space<vmem>>, vector<1x32xf32>,
    %c18 = arith.constant 18 : index
    %c0_610 = arith.constant 0 : index
    %413 = tpu.strided_load %arg13[%c18, %c0_610] {strides = array<i32: 2, 1>} : memref<50x32xf32, #tpu.memory_space<vmem>>, vector<1x32xf32>
    %c0_611 = arith.constant 0 : index
    %c480 = arith.constant 480 : index
    %414 = vector.load %arg14[%c0_611, %c480] : memref<2x512xf32, #tpu.memory_space<vmem>>, vector<1x32xf32>
    tpu.vector_store %arg14[%c0_611, %c480], %413 {strides = array<i32>} : memref<2x512xf32, #tpu.memory_space<vmem>>, vector<1x32xf32>,
    %c25_612 = arith.constant 25 : index
    %c0_613 = arith.constant 0 : index
    %415 = tpu.strided_load %arg13[%c25_612, %c0_613] {strides = array<i32: 2, 1>} : memref<50x32xf32, #tpu.memory_space<vmem>>, vector<1x32xf32>
    %c1_614 = arith.constant 1 : index
    %c0_615 = arith.constant 0 : index
    %416 = vector.load %arg14[%c1_614, %c0_615] : memref<2x512xf32, #tpu.memory_space<vmem>>, vector<1x32xf32>
    tpu.vector_store %arg14[%c1_614, %c0_615], %415 {strides = array<i32>} : memref<2x512xf32, #tpu.memory_space<vmem>>, vector<1x32xf32>,
    %c26_616 = arith.constant 26 : index
    %c0_617 = arith.constant 0 : index
    %417 = tpu.strided_load %arg13[%c26_616, %c0_617] {strides = array<i32: 2, 1>} : memref<50x32xf32, #tpu.memory_space<vmem>>, vector<1x32xf32>
    %c1_618 = arith.constant 1 : index
    %c32_619 = arith.constant 32 : index
    %418 = vector.load %arg14[%c1_618, %c32_619] : memref<2x512xf32, #tpu.memory_space<vmem>>, vector<1x32xf32>
    tpu.vector_store %arg14[%c1_618, %c32_619], %417 {strides = array<i32>} : memref<2x512xf32, #tpu.memory_space<vmem>>, vector<1x32xf32>,
    %c27_620 = arith.constant 27 : index
    %c0_621 = arith.constant 0 : index
    %419 = tpu.strided_load %arg13[%c27_620, %c0_621] {strides = array<i32: 2, 1>} : memref<50x32xf32, #tpu.memory_space<vmem>>, vector<1x32xf32>
    %c1_622 = arith.constant 1 : index
    %c64_623 = arith.constant 64 : index
    %420 = vector.load %arg14[%c1_622, %c64_623] : memref<2x512xf32, #tpu.memory_space<vmem>>, vector<1x32xf32>
    tpu.vector_store %arg14[%c1_622, %c64_623], %419 {strides = array<i32>} : memref<2x512xf32, #tpu.memory_space<vmem>>, vector<1x32xf32>,
    %c28_624 = arith.constant 28 : index
    %c0_625 = arith.constant 0 : index
    %421 = tpu.strided_load %arg13[%c28_624, %c0_625] {strides = array<i32: 2, 1>} : memref<50x32xf32, #tpu.memory_space<vmem>>, vector<1x32xf32>
    %c1_626 = arith.constant 1 : index
    %c96_627 = arith.constant 96 : index
    %422 = vector.load %arg14[%c1_626, %c96_627] : memref<2x512xf32, #tpu.memory_space<vmem>>, vector<1x32xf32>
    tpu.vector_store %arg14[%c1_626, %c96_627], %421 {strides = array<i32>} : memref<2x512xf32, #tpu.memory_space<vmem>>, vector<1x32xf32>,
    %c30_628 = arith.constant 30 : index
    %c0_629 = arith.constant 0 : index
    %423 = tpu.strided_load %arg13[%c30_628, %c0_629] {strides = array<i32: 2, 1>} : memref<50x32xf32, #tpu.memory_space<vmem>>, vector<1x32xf32>
    %c1_630 = arith.constant 1 : index
    %c128_631 = arith.constant 128 : index
    %424 = vector.load %arg14[%c1_630, %c128_631] : memref<2x512xf32, #tpu.memory_space<vmem>>, vector<1x32xf32>
    tpu.vector_store %arg14[%c1_630, %c128_631], %423 {strides = array<i32>} : memref<2x512xf32, #tpu.memory_space<vmem>>, vector<1x32xf32>,
    %c31 = arith.constant 31 : index
    %c0_632 = arith.constant 0 : index
    %425 = tpu.strided_load %arg13[%c31, %c0_632] {strides = array<i32: 2, 1>} : memref<50x32xf32, #tpu.memory_space<vmem>>, vector<1x32xf32>
    %c1_633 = arith.constant 1 : index
    %c160_634 = arith.constant 160 : index
    %426 = vector.load %arg14[%c1_633, %c160_634] : memref<2x512xf32, #tpu.memory_space<vmem>>, vector<1x32xf32>
    tpu.vector_store %arg14[%c1_633, %c160_634], %425 {strides = array<i32>} : memref<2x512xf32, #tpu.memory_space<vmem>>, vector<1x32xf32>,
    %c32_635 = arith.constant 32 : index
    %c0_636 = arith.constant 0 : index
    %427 = tpu.strided_load %arg13[%c32_635, %c0_636] {strides = array<i32: 2, 1>} : memref<50x32xf32, #tpu.memory_space<vmem>>, vector<1x32xf32>
    %c1_637 = arith.constant 1 : index
    %c192_638 = arith.constant 192 : index
    %428 = vector.load %arg14[%c1_637, %c192_638] : memref<2x512xf32, #tpu.memory_space<vmem>>, vector<1x32xf32>
    tpu.vector_store %arg14[%c1_637, %c192_638], %427 {strides = array<i32>} : memref<2x512xf32, #tpu.memory_space<vmem>>, vector<1x32xf32>,
    %c33 = arith.constant 33 : index
    %c0_639 = arith.constant 0 : index
    %429 = tpu.strided_load %arg13[%c33, %c0_639] {strides = array<i32: 2, 1>} : memref<50x32xf32, #tpu.memory_space<vmem>>, vector<1x32xf32>
    %c1_640 = arith.constant 1 : index
    %c224_641 = arith.constant 224 : index
    %430 = vector.load %arg14[%c1_640, %c224_641] : memref<2x512xf32, #tpu.memory_space<vmem>>, vector<1x32xf32>
    tpu.vector_store %arg14[%c1_640, %c224_641], %429 {strides = array<i32>} : memref<2x512xf32, #tpu.memory_space<vmem>>, vector<1x32xf32>,
    %c35_642 = arith.constant 35 : index
    %c0_643 = arith.constant 0 : index
    %431 = tpu.strided_load %arg13[%c35_642, %c0_643] {strides = array<i32: 2, 1>} : memref<50x32xf32, #tpu.memory_space<vmem>>, vector<1x32xf32>
    %c1_644 = arith.constant 1 : index
    %c256_645 = arith.constant 256 : index
    %432 = vector.load %arg14[%c1_644, %c256_645] : memref<2x512xf32, #tpu.memory_space<vmem>>, vector<1x32xf32>
    tpu.vector_store %arg14[%c1_644, %c256_645], %431 {strides = array<i32>} : memref<2x512xf32, #tpu.memory_space<vmem>>, vector<1x32xf32>,
    %c36 = arith.constant 36 : index
    %c0_646 = arith.constant 0 : index
    %433 = tpu.strided_load %arg13[%c36, %c0_646] {strides = array<i32: 2, 1>} : memref<50x32xf32, #tpu.memory_space<vmem>>, vector<1x32xf32>
    %c1_647 = arith.constant 1 : index
    %c288_648 = arith.constant 288 : index
    %434 = vector.load %arg14[%c1_647, %c288_648] : memref<2x512xf32, #tpu.memory_space<vmem>>, vector<1x32xf32>
    tpu.vector_store %arg14[%c1_647, %c288_648], %433 {strides = array<i32>} : memref<2x512xf32, #tpu.memory_space<vmem>>, vector<1x32xf32>,
    %c37 = arith.constant 37 : index
    %c0_649 = arith.constant 0 : index
    %435 = tpu.strided_load %arg13[%c37, %c0_649] {strides = array<i32: 2, 1>} : memref<50x32xf32, #tpu.memory_space<vmem>>, vector<1x32xf32>
    %c1_650 = arith.constant 1 : index
    %c320_651 = arith.constant 320 : index
    %436 = vector.load %arg14[%c1_650, %c320_651] : memref<2x512xf32, #tpu.memory_space<vmem>>, vector<1x32xf32>
    tpu.vector_store %arg14[%c1_650, %c320_651], %435 {strides = array<i32>} : memref<2x512xf32, #tpu.memory_space<vmem>>, vector<1x32xf32>,
    %c38 = arith.constant 38 : index
    %c0_652 = arith.constant 0 : index
    %437 = tpu.strided_load %arg13[%c38, %c0_652] {strides = array<i32: 2, 1>} : memref<50x32xf32, #tpu.memory_space<vmem>>, vector<1x32xf32>
    %c1_653 = arith.constant 1 : index
    %c352_654 = arith.constant 352 : index
    %438 = vector.load %arg14[%c1_653, %c352_654] : memref<2x512xf32, #tpu.memory_space<vmem>>, vector<1x32xf32>
    tpu.vector_store %arg14[%c1_653, %c352_654], %437 {strides = array<i32>} : memref<2x512xf32, #tpu.memory_space<vmem>>, vector<1x32xf32>,
    %c40_655 = arith.constant 40 : index
    %c0_656 = arith.constant 0 : index
    %439 = tpu.strided_load %arg13[%c40_655, %c0_656] {strides = array<i32: 2, 1>} : memref<50x32xf32, #tpu.memory_space<vmem>>, vector<1x32xf32>
    %c1_657 = arith.constant 1 : index
    %c384_658 = arith.constant 384 : index
    %440 = vector.load %arg14[%c1_657, %c384_658] : memref<2x512xf32, #tpu.memory_space<vmem>>, vector<1x32xf32>
    tpu.vector_store %arg14[%c1_657, %c384_658], %439 {strides = array<i32>} : memref<2x512xf32, #tpu.memory_space<vmem>>, vector<1x32xf32>,
    %c41_659 = arith.constant 41 : index
    %c0_660 = arith.constant 0 : index
    %441 = tpu.strided_load %arg13[%c41_659, %c0_660] {strides = array<i32: 2, 1>} : memref<50x32xf32, #tpu.memory_space<vmem>>, vector<1x32xf32>
    %c1_661 = arith.constant 1 : index
    %c416_662 = arith.constant 416 : index
    %442 = vector.load %arg14[%c1_661, %c416_662] : memref<2x512xf32, #tpu.memory_space<vmem>>, vector<1x32xf32>
    tpu.vector_store %arg14[%c1_661, %c416_662], %441 {strides = array<i32>} : memref<2x512xf32, #tpu.memory_space<vmem>>, vector<1x32xf32>,
    %c42_663 = arith.constant 42 : index
    %c0_664 = arith.constant 0 : index
    %443 = tpu.strided_load %arg13[%c42_663, %c0_664] {strides = array<i32: 2, 1>} : memref<50x32xf32, #tpu.memory_space<vmem>>, vector<1x32xf32>
    %c1_665 = arith.constant 1 : index
    %c448_666 = arith.constant 448 : index
    %444 = vector.load %arg14[%c1_665, %c448_666] : memref<2x512xf32, #tpu.memory_space<vmem>>, vector<1x32xf32>
    tpu.vector_store %arg14[%c1_665, %c448_666], %443 {strides = array<i32>} : memref<2x512xf32, #tpu.memory_space<vmem>>, vector<1x32xf32>,
    %c43 = arith.constant 43 : index
    %c0_667 = arith.constant 0 : index
    %445 = tpu.strided_load %arg13[%c43, %c0_667] {strides = array<i32: 2, 1>} : memref<50x32xf32, #tpu.memory_space<vmem>>, vector<1x32xf32>
    %c1_668 = arith.constant 1 : index
    %c480_669 = arith.constant 480 : index
    %446 = vector.load %arg14[%c1_668, %c480_669] : memref<2x512xf32, #tpu.memory_space<vmem>>, vector<1x32xf32>
    tpu.vector_store %arg14[%c1_668, %c480_669], %445 {strides = array<i32>} : memref<2x512xf32, #tpu.memory_space<vmem>>, vector<1x32xf32>,
    %c0_670 = arith.constant 0 : index
    %c0_671 = arith.constant 0 : index
    %447 = vector.load %arg14[%c0_670, %c0_671] : memref<2x512xf32, #tpu.memory_space<vmem>>, vector<2x512xf32>
    %448 = arith.truncf %447 : vector<2x512xf32> to vector<2x512xbf16>
    %c0_672 = arith.constant 0 : index
    %c0_673 = arith.constant 0 : index
    %449 = vector.load %arg8[%c0_672, %c0_673] : memref<512x64xbf16, #tpu.memory_space<vmem>>, vector<512x64xbf16>
    %cst_674 = arith.constant dense<0.000000e+00> : vector<2x64xf32>
    %450 = tpu.matmul %448, %449, %cst_674 {dimension_numbers = #tpu.dot_dimension_numbers<[1], [0], [0], [1], [0, 0, 1, 1], [], []>} : vector<2x512xbf16>, vector<512x64xbf16>, vector<2x64xf32> -> vector<2x64xf32>
    %c0_675 = arith.constant 0 : index
    %c0_676 = arith.constant 0 : index
    %451 = vector.load %arg9[%c0_675, %c0_676] : memref<1x64xf32, #tpu.memory_space<vmem>>, vector<1x64xf32>
    %452 = vector.broadcast %451 : vector<1x64xf32> to vector<2x64xf32>
    %453 = arith.addf %450, %452 : vector<2x64xf32>
    %454 = tpu.iota {dimensions = array<i32: 1>} : vector<2x64xi32>
    %c32_i32 = arith.constant 32 : i32
    %455 = vector.broadcast %c32_i32 : i32 to vector<2x64xi32>
    %456 = arith.cmpi sge, %454, %455 : vector<2x64xi32>
    %cst_677 = arith.constant 0.000000e+00 : f32
    %457 = vector.broadcast %cst_677 : f32 to vector<2x64xf32>
    %458 = arith.select %456, %453, %457 : vector<2x64xi1>, vector<2x64xf32>
    %cst_678 = arith.constant 5.000000e-01 : f32
    %459 = vector.broadcast %cst_678 : f32 to vector<2x64xf32>
    %460 = arith.mulf %459, %458 : vector<2x64xf32>
    %461 = math.exp %460 : vector<2x64xf32>
    %462 = arith.select %456, %461, %453 : vector<2x64xi1>, vector<2x64xf32>
    %c0_679 = arith.constant 0 : index
    %c0_680 = arith.constant 0 : index
    %463 = vector.load %arg10[%c0_679, %c0_680] : memref<2x64xf32, #tpu.memory_space<vmem>>, vector<2x64xf32>
    tpu.vector_store %arg10[%c0_679, %c0_680], %462 {strides = array<i32>} : memref<2x64xf32, #tpu.memory_space<vmem>>, vector<2x64xf32>,
    return
  }
  func.func @transform_0(%arg0: i32) -> (i32, i32) {
    %c0_i32 = arith.constant 0 : i32
    %c0_i32_0 = arith.constant 0 : i32
    %c0_i32_1 = arith.constant 0 : i32
    return %c0_i32, %c0_i32_0 : i32, i32
  }
  func.func @transform_1(%arg0: i32) -> (i32, i32) {
    %c0_i32 = arith.constant 0 : i32
    %c0_i32_0 = arith.constant 0 : i32
    %c0_i32_1 = arith.constant 0 : i32
    return %c0_i32, %c0_i32_0 : i32, i32
  }
  func.func @transform_2(%arg0: i32) -> (i32, i32) {
    %c0_i32 = arith.constant 0 : i32
    %c0_i32_0 = arith.constant 0 : i32
    %c0_i32_1 = arith.constant 0 : i32
    return %c0_i32, %c0_i32_0 : i32, i32
  }
  func.func @transform_3(%arg0: i32) -> (i32, i32) {
    %c0_i32 = arith.constant 0 : i32
    %c0_i32_0 = arith.constant 0 : i32
    %c0_i32_1 = arith.constant 0 : i32
    return %c0_i32, %c0_i32_0 : i32, i32
  }
  func.func @transform_4(%arg0: i32) -> (i32, i32) {
    %c0_i32 = arith.constant 0 : i32
    %c0_i32_0 = arith.constant 0 : i32
    %c0_i32_1 = arith.constant 0 : i32
    return %c0_i32, %c0_i32_0 : i32, i32
  }
  func.func @transform_5(%arg0: i32) -> (i32, i32) {
    %c0_i32 = arith.constant 0 : i32
    %c0_i32_0 = arith.constant 0 : i32
    %c0_i32_1 = arith.constant 0 : i32
    return %c0_i32, %c0_i32_0 : i32, i32
  }
  func.func @transform_6(%arg0: i32) -> (i32, i32) {
    %c0_i32 = arith.constant 0 : i32
    %c0_i32_0 = arith.constant 0 : i32
    %c0_i32_1 = arith.constant 0 : i32
    return %c0_i32, %c0_i32_0 : i32, i32
  }
  func.func @transform_7(%arg0: i32) -> (i32, i32) {
    %c0_i32 = arith.constant 0 : i32
    %c0_i32_0 = arith.constant 0 : i32
    %c0_i32_1 = arith.constant 0 : i32
    return %c0_i32, %c0_i32_0 : i32, i32
  }
  func.func @transform_8(%arg0: i32) -> (i32, i32) {
    %c0_i32 = arith.constant 0 : i32
    %c0_i32_0 = arith.constant 0 : i32
    %c0_i32_1 = arith.constant 0 : i32
    return %c0_i32, %c0_i32_0 : i32, i32
  }
  func.func @transform_9(%arg0: i32) -> (i32, i32) {
    %c0_i32 = arith.constant 0 : i32
    %c0_i32_0 = arith.constant 0 : i32
    %c0_i32_1 = arith.constant 0 : i32
    return %c0_i32, %c0_i32_0 : i32, i32
  }
}

</mosaic_0001>

<bundles_post_ra>
// kernel: encoder_forward.1
= control target key start
LH: loop header
LB: loop body
LE: loop exit
PB: predicated region body
PF: predicated region fallthrough
CT: control target
= control target key end

     0   :  { %vm192_vm0 = vcmask 130048   ;;  %vm552_vm1 = vcmask 123904   ;;  %s3594_s14 = smov 48   ;;  %s3595_s15 = smov 64   ;;  %vm890_vm2 = vcmask 126976   ;;  %vm1151_vm3 = vcmask 129026   ;;  %s4910_s1 = inlined_call_operand.vmem [shape: bf16[16,16], index: 1, kind: input, shape index: {}]   ;;  %s4911_s0 = inlined_call_operand.vmem [shape: bf16[338,16], index: 0, kind: input, shape index: {}]   ;;  %s4912_s2 = inlined_call_operand.vmem [shape: f32[1,16], index: 2, kind: input, shape index: {}]   ;;  %s4913_s3 = inlined_call_operand.vmem [shape: f32[1,16], index: 3, kind: input, shape index: {}]   ;;  %s4914_s4 = inlined_call_operand.vmem [shape: bf16[256,32], index: 4, kind: input, shape index: {}]   ;;  %s4915_s7 = inlined_call_operand.vmem [shape: bf16[512,64], index: 7, kind: input, shape index: {}]   ;;  %s4916_s5 = inlined_call_operand.vmem [shape: f32[1,32], index: 5, kind: input, shape index: {}]   ;;  %s4917_s6 = inlined_call_operand.vmem [shape: f32[1,32], index: 6, kind: input, shape index: {}]   ;;  %s4918_s8 = inlined_call_operand.vmem [shape: f32[1,64], index: 8, kind: input, shape index: {}]   ;;  %s4919_s9 = inlined_call_operand.vmem [shape: f32[2,64], index: 9, kind: output, shape index: {}]  }
   0x1   :  { %v3514_v0 = vld [vmem:[%s4910_s1] sm:$0xff]   ;;  %v3516_v2 = vld [vmem:[%s4911_s0 + $0x8] sm:$0xff]   ;;  %v3517_v3 = vld [vmem:[%s4911_s0 + $0x10] sm:$0xff]   ;;  %s3596_s16 = smov 80   ;;  %s3597_s1 = smov 96   ;;  %vm1275_vm4 = vcmask 130055  }
   0x2   :  { %v3515_v1 = vld [vmem:[%s4911_s0] sm:$0xff]   ;;  %3460 = vmatprep.subr.bf16.mxu0 %v3514_v0  ;;  %v3518_v4 = vld [vmem:[%s4911_s0 + $0x18] sm:$0xff]   ;;  %v3520_v6 = vld [vmem:[%s4911_s0 + $0x28] sm:$0xff]   ;;  %s3598_s17 = smov 112   ;;  %vm1277_vm5 = vcmask 125952   ;;  %vm1004_vm6 = vcmask 130053  }
   0x3   :  { %3461 = vmatpush3.bf16.msra.mxu0 %v3514_v0  ;;  %3462 = vmatprep.mubr.msk.bf16.mxu0 %vm192_vm0, %v3515_v1  ;;  %v3519_v5 = vld [vmem:[%s4911_s0 + $0x20] sm:$0xff]   ;;  %v3521_v7 = vld [vmem:[%s4911_s0 + $0x30] sm:$0xff]   ;;  %v3522_v8 = vld [vmem:[%s4911_s0 + $0x38] sm:$0xff]   ;;  %vm898_vm7 = vcmask 258176   ;;  %vm906_vm8 = vcmask 389376   ;;  %vm914_vm9 = vcmask 520576  }
   0x4   :  { %v3523_v9 = vld [vmem:[%s4911_s0 + $0x40] sm:$0xff]   ;;  %v3524_v10 = vld [vmem:[%s4911_s0 + $0x48] sm:$0xff]   ;;  %v3525_v11 = vld [vmem:[%s4911_s0 + $0x50] sm:$0xff]   ;;  %vm922_vm10 = vcmask 651776   ;;  %vm930_vm11 = vcmask 782976   ;;  %vm938_vm12 = vcmask 914176  }
   0x5   :  { %v3526_v12 = vld [vmem:[%s4911_s0 + $0x58] sm:$0xff]   ;;  %v3527_v13 = vld [vmem:[%s4911_s0 + $0x60] sm:$0xff]   ;;  %v3528_v14 = vld [vmem:[%s4911_s0 + $0x68] sm:$0xff]   ;;  %vm1423_vm13 = vcmask 130052   ;;  %vm1425_vm14 = vcmask 122880   ;;  %vm1572_vm15 = vcmask 128001  }
   0x6   :  { %3463 = vmatmul.mubr.msk.bf16.vlgmr.msra.gmra.mrb[0].mxu0 %vm192_vm0, %v3516_v2  ;;  %v3529_v15 = vld [vmem:[%s4911_s0 + $0x70] sm:$0xff]   ;;  %v3530_v16 = vld [vmem:[%s4911_s0 + $0x78] sm:$0xff]   ;;  %v3531_v17 = vld [vmem:[%s4911_s0 + $0x80] sm:$0xff]  }
   0x7   :  { %3466 = vmatprep.mubr.msk.bf16.mxu0 %vm192_vm0, %v3517_v3  ;;  %v3532_v18 = vld [vmem:[%s4911_s0 + $0x88] sm:$0xff]   ;;  %v3533_v19 = vld [vmem:[%s4911_s0 + $0x90] sm:$0xff]   ;;  %v3534_v20 = vld [vmem:[%s4911_s0 + $0x98] sm:$0xff]  }
   0x8   :  { %v3535_v21 = vld [vmem:[%s4911_s0 + $0xa0] sm:$0xff]   ;;  %v3536_v22 = vld [vmem:[%s4911_s0 + $0xa8] ss:$0 sps:$4 sm:$0x11]  }
   0xe   :  { %3467 = vmatmul.mubr.msk.bf16.gmra.mrb[4].mxu0 %vm192_vm0, %v3518_v4 }
   0xf   :  { %3470 = vmatprep.mubr.msk.bf16.mxu0 %vm192_vm0, %v3519_v5 }
  0x16   :  { %3471 = vmatmul.mubr.msk.bf16.gmra.mrb[8].mxu0 %vm192_vm0, %v3520_v6 }
  0x17   :  { %3474 = vmatprep.mubr.msk.bf16.mxu0 %vm192_vm0, %v3521_v7 }
  0x1e   :  { %3475 = vmatmul.mubr.msk.bf16.gmra.mrb[12].mxu0 %vm192_vm0, %v3522_v8 }
  0x1f   :  { %3478 = vmatprep.mubr.msk.bf16.mxu0 %vm192_vm0, %v3523_v9 }
  0x26   :  { %3479 = vmatmul.mubr.msk.bf16.gmra.mrb[16].mxu0 %vm192_vm0, %v3524_v10 }
  0x27   :  { %3482 = vmatprep.mubr.msk.bf16.mxu0 %vm192_vm0, %v3525_v11 }
  0x2e   :  { %3483 = vmatmul.mubr.msk.bf16.gmra.mrb[20].mxu0 %vm192_vm0, %v3526_v12 }
  0x2f   :  { %3486 = vmatprep.mubr.msk.bf16.mxu0 %vm192_vm0, %v3527_v13 }
  0x36   :  { %3487 = vmatmul.mubr.msk.bf16.gmra.mrb[24].mxu0 %vm192_vm0, %v3528_v14 }
  0x37   :  { %3490 = vmatprep.mubr.msk.bf16.mxu0 %vm192_vm0, %v3529_v15 }
  0x3e   :  { %3491 = vmatmul.mubr.msk.bf16.gmra.mrb[28].mxu0 %vm192_vm0, %v3530_v16 }
  0x3f   :  { %3494 = vmatprep.mubr.msk.bf16.mxu0 %vm192_vm0, %v3531_v17 }
  0x46   :  { %3495 = vmatmul.mubr.msk.bf16.gmra.mrb[32].mxu0 %vm192_vm0, %v3532_v18 }
  0x47   :  { %3498 = vmatprep.mubr.msk.bf16.mxu0 %vm192_vm0, %v3533_v19 }
  0x4e   :  { %3499 = vmatmul.mubr.msk.bf16.gmra.mrb[36].mxu0 %vm192_vm0, %v3534_v20 }
  0x4f   :  { %3502 = vmatprep.mubr.msk.bf16.mxu0 %vm192_vm0, %v3535_v21 }
  0x56   :  { %3503 = vmatmul.mubr.msk.bf16.gmra.mrb[40].mxu0 %vm192_vm0, %v3536_v22 }
  0xd9   :  { %v3741_v23 = vpop.f32.mrb[0].mxu0 }
  0xda   :  { %v3743_v24 = vpop.f32.mrb[1].mxu0  ;;  %v563_v28 = vmul.f32 %v3741_v23, %v3741_v23  ;;  %v472_v33 = vsel %vm192_vm0, %v3741_v23, 0.0 }
  0xdb   :  { %v561_v25 = vmul.f32 %v3743_v24, %v3743_v24  ;;  %v3747_v26 = vpop.f32.mrb[2].mxu0  ;;  %v469_v29 = vsel %vm192_vm0, %v3743_v24, 0.0 }
  0xdc   :  { %v3749_v27 = vpop.f32.mrb[3].mxu0  ;;  %v564_v35 = vmul.f32 %v3747_v26, %v3747_v26  ;;  %v607_v39 = vsel %vm192_vm0, %v563_v28, 0.0  ;;  %v474_v40 = vsel %vm192_vm0, %v3747_v26, 0.0 }
  0xdd   :  { %v470_v30 = vsel %vm192_vm0, %v3749_v27, 0.0  ;;  %v562_v31 = vmul.f32 %v3749_v27, %v3749_v27  ;;  %v604_v34 = vsel %vm192_vm0, %v561_v25, 0.0 }
  0xde   :  { %v471_v32 = vadd.f32 %v470_v30, %v469_v29  ;;  %v609_v45 = vsel %vm192_vm0, %v564_v35, 0.0 }
  0xdf   :  { %v605_v36 = vsel %vm192_vm0, %v562_v31, 0.0 }
  0xe0   :  { %v473_v37 = vadd.f32 %v472_v33, %v471_v32  ;;  %v606_v38 = vadd.f32 %v605_v36, %v604_v34 }
  0xe1   :  { %v3768_v41 = vpop.f32.mrb[4].mxu0 }
  0xe2   :  { %v608_v42 = vadd.f32 %v607_v39, %v606_v38  ;;  %v3770_v43 = vpop.f32.mrb[5].mxu0  ;;  %v475_v44 = vadd.f32 %v474_v40, %v473_v37  ;;  %v567_v52 = vmul.f32 %v3768_v41, %v3768_v41  ;;  %v480_v58 = vsel %vm192_vm0, %v3768_v41, 0.0 }
  0xe3   :  { %v476_v46 = vsel %vm192_vm0, %v3770_v43, 0.0  ;;  %v565_v47 = vmul.f32 %v3770_v43, %v3770_v43  ;;  %v3777_v48 = vpop.f32.mrb[6].mxu0 }
  0xe4   :  { %v477_v49 = vadd.f32 %v476_v46, %v475_v44  ;;  %v610_v50 = vadd.f32 %v609_v45, %v608_v42  ;;  %v3779_v51 = vpop.f32.mrb[7].mxu0  ;;  %v568_v59 = vmul.f32 %v3777_v48, %v3777_v48  ;;  %v615_v63 = vsel %vm192_vm0, %v567_v52, 0.0 }
  0xe5   :  { %v611_v53 = vsel %vm192_vm0, %v565_v47, 0.0  ;;  %v478_v54 = vsel %vm192_vm0, %v3779_v51, 0.0  ;;  %v566_v55 = vmul.f32 %v3779_v51, %v3779_v51  ;;  %v482_v0 = vsel %vm192_vm0, %v3777_v48, 0.0 }
  0xe6   :  { %v612_v56 = vadd.f32 %v611_v53, %v610_v50  ;;  %v479_v57 = vadd.f32 %v478_v54, %v477_v49  ;;  %v617_v5 = vsel %vm192_vm0, %v568_v59, 0.0 }
  0xe7   :  { %v613_v60 = vsel %vm192_vm0, %v566_v55, 0.0 }
  0xe8   :  { %v481_v61 = vadd.f32 %v480_v58, %v479_v57  ;;  %v614_v62 = vadd.f32 %v613_v60, %v612_v56 }
  0xe9   :  { %v3796_v1 = vpop.f32.mrb[8].mxu0 }
  0xea   :  { %v616_v2 = vadd.f32 %v615_v63, %v614_v62  ;;  %v3798_v3 = vpop.f32.mrb[9].mxu0  ;;  %v483_v4 = vadd.f32 %v482_v0, %v481_v61  ;;  %v571_v12 = vmul.f32 %v3796_v1, %v3796_v1  ;;  %v488_v18 = vsel %vm192_vm0, %v3796_v1, 0.0 }
  0xeb   :  { %v484_v6 = vsel %vm192_vm0, %v3798_v3, 0.0  ;;  %v569_v7 = vmul.f32 %v3798_v3, %v3798_v3  ;;  %v3805_v8 = vpop.f32.mrb[10].mxu0 }
  0xec   :  { %v485_v9 = vadd.f32 %v484_v6, %v483_v4  ;;  %v618_v10 = vadd.f32 %v617_v5, %v616_v2  ;;  %v3807_v11 = vpop.f32.mrb[11].mxu0  ;;  %v572_v19 = vmul.f32 %v3805_v8, %v3805_v8  ;;  %v623_v25 = vsel %vm192_vm0, %v571_v12, 0.0 }
  0xed   :  { %v619_v13 = vsel %vm192_vm0, %v569_v7, 0.0  ;;  %v486_v14 = vsel %vm192_vm0, %v3807_v11, 0.0  ;;  %v570_v15 = vmul.f32 %v3807_v11, %v3807_v11  ;;  %v490_v28 = vsel %vm192_vm0, %v3805_v8, 0.0 }
  0xee   :  { %v620_v16 = vadd.f32 %v619_v13, %v618_v10  ;;  %v487_v17 = vadd.f32 %v486_v14, %v485_v9  ;;  %v625_v33 = vsel %vm192_vm0, %v572_v19, 0.0 }
  0xef   :  { %v621_v20 = vsel %vm192_vm0, %v570_v15, 0.0 }
  0xf0   :  { %v489_v21 = vadd.f32 %v488_v18, %v487_v17  ;;  %v622_v22 = vadd.f32 %v621_v20, %v620_v16 }
  0xf1   :  { %v3824_v29 = vpop.f32.mrb[12].mxu0 }
  0xf2   :  { %v624_v30 = vadd.f32 %v623_v25, %v622_v22  ;;  %v3826_v31 = vpop.f32.mrb[13].mxu0  ;;  %v491_v32 = vadd.f32 %v490_v28, %v489_v21  ;;  %v575_v40 = vmul.f32 %v3824_v29, %v3824_v29  ;;  %v496_v49 = vsel %vm192_vm0, %v3824_v29, 0.0 }
  0xf3   :  { %v492_v34 = vsel %vm192_vm0, %v3826_v31, 0.0  ;;  %v573_v35 = vmul.f32 %v3826_v31, %v3826_v31  ;;  %v3833_v36 = vpop.f32.mrb[14].mxu0 }
  0xf4   :  { %v493_v37 = vadd.f32 %v492_v34, %v491_v32  ;;  %v626_v38 = vadd.f32 %v625_v33, %v624_v30  ;;  %v3835_v39 = vpop.f32.mrb[15].mxu0  ;;  %v576_v50 = vmul.f32 %v3833_v36, %v3833_v36  ;;  %v631_v55 = vsel %vm192_vm0, %v575_v40, 0.0 }
  0xf5   :  { %v627_v42 = vsel %vm192_vm0, %v573_v35, 0.0  ;;  %v494_v44 = vsel %vm192_vm0, %v3835_v39, 0.0  ;;  %v574_v45 = vmul.f32 %v3835_v39, %v3835_v39  ;;  %v498_v56 = vsel %vm192_vm0, %v3833_v36, 0.0 }
  0xf6   :  { %v628_v46 = vadd.f32 %v627_v42, %v626_v38  ;;  %v495_v47 = vadd.f32 %v494_v44, %v493_v37  ;;  %v633_v61 = vsel %vm192_vm0, %v576_v50, 0.0 }
  0xf7   :  { %v629_v52 = vsel %vm192_vm0, %v574_v45, 0.0 }
  0xf8   :  { %v497_v53 = vadd.f32 %v496_v49, %v495_v47  ;;  %v630_v54 = vadd.f32 %v629_v52, %v628_v46 }
  0xf9   :  { %v3852_v57 = vpop.f32.mrb[16].mxu0 }
  0xfa   :  { %v632_v58 = vadd.f32 %v631_v55, %v630_v54  ;;  %v3854_v59 = vpop.f32.mrb[17].mxu0  ;;  %v499_v60 = vadd.f32 %v498_v56, %v497_v53  ;;  %v579_v6 = vmul.f32 %v3852_v57, %v3852_v57  ;;  %v504_v14 = vsel %vm192_vm0, %v3852_v57, 0.0 }
  0xfb   :  { %v500_v62 = vsel %vm192_vm0, %v3854_v59, 0.0  ;;  %v577_v63 = vmul.f32 %v3854_v59, %v3854_v59  ;;  %v3861_v0 = vpop.f32.mrb[18].mxu0 }
  0xfc   :  { %v501_v2 = vadd.f32 %v500_v62, %v499_v60  ;;  %v634_v4 = vadd.f32 %v633_v61, %v632_v58  ;;  %v3863_v5 = vpop.f32.mrb[19].mxu0  ;;  %v580_v15 = vmul.f32 %v3861_v0, %v3861_v0  ;;  %v639_v19 = vsel %vm192_vm0, %v579_v6, 0.0 }
  0xfd   :  { %v635_v7 = vsel %vm192_vm0, %v577_v63, 0.0  ;;  %v502_v9 = vsel %vm192_vm0, %v3863_v5, 0.0  ;;  %v578_v10 = vmul.f32 %v3863_v5, %v3863_v5  ;;  %v506_v20 = vsel %vm192_vm0, %v3861_v0, 0.0 }
  0xfe   :  { %v636_v12 = vadd.f32 %v635_v7, %v634_v4  ;;  %v503_v13 = vadd.f32 %v502_v9, %v501_v2  ;;  %v641_v30 = vsel %vm192_vm0, %v580_v15, 0.0 }
  0xff   :  { %v637_v16 = vsel %vm192_vm0, %v578_v10, 0.0 }
 0x100   :  { %v505_v17 = vadd.f32 %v504_v14, %v503_v13  ;;  %v638_v18 = vadd.f32 %v637_v16, %v636_v12 }
 0x101   :  { %v3880_v21 = vpop.f32.mrb[20].mxu0 }
 0x102   :  { %v640_v22 = vadd.f32 %v639_v19, %v638_v18  ;;  %v373_v25 = vpop.f32.mrb[21].mxu0  ;;  %v507_v28 = vadd.f32 %v506_v20, %v505_v17  ;;  %v583_v40 = vmul.f32 %v3880_v21, %v3880_v21  ;;  %v512_v49 = vsel %vm192_vm0, %v3880_v21, 0.0 }
 0x103   :  { %v508_v32 = vsel %vm192_vm0, %v373_v25, 0.0  ;;  %v581_v33 = vmul.f32 %v373_v25, %v373_v25  ;;  %v3884_v34 = vpop.f32.mrb[22].mxu0 }
 0x104   :  { %v509_v35 = vadd.f32 %v508_v32, %v507_v28  ;;  %v642_v37 = vadd.f32 %v641_v30, %v640_v22  ;;  %v3886_v38 = vpop.f32.mrb[23].mxu0  ;;  %v584_v50 = vmul.f32 %v3884_v34, %v3884_v34  ;;  %v647_v55 = vsel %vm192_vm0, %v583_v40, 0.0 }
 0x105   :  { %v643_v42 = vsel %vm192_vm0, %v581_v33, 0.0  ;;  %v510_v44 = vsel %vm192_vm0, %v3886_v38, 0.0  ;;  %v582_v45 = vmul.f32 %v3886_v38, %v3886_v38  ;;  %v514_v56 = vsel %vm192_vm0, %v3884_v34, 0.0 }
 0x106   :  { %v644_v46 = vadd.f32 %v643_v42, %v642_v37  ;;  %v511_v47 = vadd.f32 %v510_v44, %v509_v35  ;;  %v649_v63 = vsel %vm192_vm0, %v584_v50, 0.0 }
 0x107   :  { %v645_v52 = vsel %vm192_vm0, %v582_v45, 0.0 }
 0x108   :  { %v513_v53 = vadd.f32 %v512_v49, %v511_v47  ;;  %v646_v54 = vadd.f32 %v645_v52, %v644_v46 }
 0x109   :  { %v3903_v58 = vpop.f32.mrb[24].mxu0 }
 0x10a   :  { %v648_v60 = vadd.f32 %v647_v55, %v646_v54  ;;  %v3905_v61 = vpop.f32.mrb[25].mxu0  ;;  %v515_v62 = vadd.f32 %v514_v56, %v513_v53  ;;  %v587_v12 = vmul.f32 %v3903_v58, %v3903_v58  ;;  %v520_v18 = vsel %vm192_vm0, %v3903_v58, 0.0 }
 0x10b   :  { %v516_v2 = vsel %vm192_vm0, %v3905_v61, 0.0  ;;  %v585_v4 = vmul.f32 %v3905_v61, %v3905_v61  ;;  %v3912_v6 = vpop.f32.mrb[26].mxu0 }
 0x10c   :  { %v517_v7 = vadd.f32 %v516_v2, %v515_v62  ;;  %v650_v9 = vadd.f32 %v649_v63, %v648_v60  ;;  %v3914_v10 = vpop.f32.mrb[27].mxu0  ;;  %v588_v19 = vmul.f32 %v3912_v6, %v3912_v6  ;;  %v655_v28 = vsel %vm192_vm0, %v587_v12, 0.0 }
 0x10d   :  { %v651_v13 = vsel %vm192_vm0, %v585_v4, 0.0  ;;  %v518_v14 = vsel %vm192_vm0, %v3914_v10, 0.0  ;;  %v586_v15 = vmul.f32 %v3914_v10, %v3914_v10  ;;  %v522_v30 = vsel %vm192_vm0, %v3912_v6, 0.0 }
 0x10e   :  { %v652_v16 = vadd.f32 %v651_v13, %v650_v9  ;;  %v519_v17 = vadd.f32 %v518_v14, %v517_v7  ;;  %v657_v40 = vsel %vm192_vm0, %v588_v19, 0.0 }
 0x10f   :  { %v653_v20 = vsel %vm192_vm0, %v586_v15, 0.0 }
 0x110   :  { %v521_v22 = vadd.f32 %v520_v18, %v519_v17  ;;  %v654_v25 = vadd.f32 %v653_v20, %v652_v16 }
 0x111   :  { %v3931_v32 = vpop.f32.mrb[28].mxu0 }
 0x112   :  { %v656_v33 = vadd.f32 %v655_v28, %v654_v25  ;;  %v3933_v35 = vpop.f32.mrb[29].mxu0  ;;  %v523_v37 = vadd.f32 %v522_v30, %v521_v22  ;;  %v591_v50 = vmul.f32 %v3931_v32, %v3931_v32  ;;  %v528_v60 = vsel %vm192_vm0, %v3931_v32, 0.0 }
 0x113   :  { %v524_v42 = vsel %vm192_vm0, %v3933_v35, 0.0  ;;  %v589_v44 = vmul.f32 %v3933_v35, %v3933_v35  ;;  %v3940_v45 = vpop.f32.mrb[30].mxu0 }
 0x114   :  { %v525_v46 = vadd.f32 %v524_v42, %v523_v37  ;;  %v658_v47 = vadd.f32 %v657_v40, %v656_v33  ;;  %v3942_v49 = vpop.f32.mrb[31].mxu0  ;;  %v592_v62 = vmul.f32 %v3940_v45, %v3940_v45  ;;  %v663_v7 = vsel %vm192_vm0, %v591_v50, 0.0 }
 0x115   :  { %v659_v52 = vsel %vm192_vm0, %v589_v44, 0.0  ;;  %v526_v53 = vsel %vm192_vm0, %v3942_v49, 0.0  ;;  %v590_v54 = vmul.f32 %v3942_v49, %v3942_v49  ;;  %v530_v9 = vsel %vm192_vm0, %v3940_v45, 0.0 }
 0x116   :  { %v660_v55 = vadd.f32 %v659_v52, %v658_v47  ;;  %v527_v56 = vadd.f32 %v526_v53, %v525_v46  ;;  %v665_v16 = vsel %vm192_vm0, %v592_v62, 0.0 }
 0x117   :  { %v661_v63 = vsel %vm192_vm0, %v590_v54, 0.0 }
 0x118   :  { %v529_v2 = vadd.f32 %v528_v60, %v527_v56  ;;  %v662_v4 = vadd.f32 %v661_v63, %v660_v55 }
 0x119   :  { %v3959_v12 = vpop.f32.mrb[32].mxu0 }
 0x11a   :  { %v664_v13 = vadd.f32 %v663_v7, %v662_v4  ;;  %v3961_v14 = vpop.f32.mrb[33].mxu0  ;;  %v531_v15 = vadd.f32 %v530_v9, %v529_v2  ;;  %v595_v28 = vmul.f32 %v3959_v12, %v3959_v12  ;;  %v536_v44 = vsel %vm192_vm0, %v3959_v12, 0.0 }
 0x11b   :  { %v532_v17 = vsel %vm192_vm0, %v3961_v14, 0.0  ;;  %v593_v18 = vmul.f32 %v3961_v14, %v3961_v14  ;;  %v3968_v19 = vpop.f32.mrb[34].mxu0 }
 0x11c   :  { %v533_v20 = vadd.f32 %v532_v17, %v531_v15  ;;  %v666_v22 = vadd.f32 %v665_v16, %v664_v13  ;;  %v3970_v25 = vpop.f32.mrb[35].mxu0  ;;  %v596_v46 = vmul.f32 %v3968_v19, %v3968_v19  ;;  %v671_v53 = vsel %vm192_vm0, %v595_v28, 0.0 }
 0x11d   :  { %v667_v30 = vsel %vm192_vm0, %v593_v18, 0.0  ;;  %v534_v33 = vsel %vm192_vm0, %v3970_v25, 0.0  ;;  %v594_v37 = vmul.f32 %v3970_v25, %v3970_v25  ;;  %v538_v54 = vsel %vm192_vm0, %v3968_v19, 0.0 }
 0x11e   :  { %v668_v40 = vadd.f32 %v667_v30, %v666_v22  ;;  %v535_v42 = vadd.f32 %v534_v33, %v533_v20  ;;  %v673_v63 = vsel %vm192_vm0, %v596_v46, 0.0 }
 0x11f   :  { %v669_v47 = vsel %vm192_vm0, %v594_v37, 0.0 }
 0x120   :  { %v537_v50 = vadd.f32 %v536_v44, %v535_v42  ;;  %v670_v52 = vadd.f32 %v669_v47, %v668_v40 }
 0x121   :  { %v3987_v55 = vpop.f32.mrb[36].mxu0 }
 0x122   :  { %v672_v56 = vadd.f32 %v671_v53, %v670_v52  ;;  %v3989_v60 = vpop.f32.mrb[37].mxu0  ;;  %v539_v62 = vadd.f32 %v538_v54, %v537_v50  ;;  %v599_v16 = vmul.f32 %v3987_v55, %v3987_v55  ;;  %v544_v30 = vsel %vm192_vm0, %v3987_v55, 0.0 }
 0x123   :  { %v540_v2 = vsel %vm192_vm0, %v3989_v60, 0.0  ;;  %v597_v4 = vmul.f32 %v3989_v60, %v3989_v60  ;;  %v3996_v7 = vpop.f32.mrb[38].mxu0 }
 0x124   :  { %v541_v9 = vadd.f32 %v540_v2, %v539_v62  ;;  %v674_v13 = vadd.f32 %v673_v63, %v672_v56  ;;  %v3998_v15 = vpop.f32.mrb[39].mxu0  ;;  %v600_v33 = vmul.f32 %v3996_v7, %v3996_v7  ;;  %v679_v44 = vsel %vm192_vm0, %v599_v16, 0.0 }
 0x125   :  { %v675_v17 = vsel %vm192_vm0, %v597_v4, 0.0  ;;  %v542_v18 = vsel %vm192_vm0, %v3998_v15, 0.0  ;;  %v598_v20 = vmul.f32 %v3998_v15, %v3998_v15  ;;  %v546_v46 = vsel %vm192_vm0, %v3996_v7, 0.0 }
 0x126   :  { %v676_v22 = vadd.f32 %v675_v17, %v674_v13  ;;  %v543_v28 = vadd.f32 %v542_v18, %v541_v9  ;;  %v681_v54 = vsel %vm192_vm0, %v600_v33, 0.0 }
 0x127   :  { %v677_v37 = vsel %vm192_vm0, %v598_v20, 0.0 }
 0x128   :  { %v545_v40 = vadd.f32 %v544_v30, %v543_v28  ;;  %v678_v42 = vadd.f32 %v677_v37, %v676_v22 }
 0x129   :  { %v3504_v47 = vpop.f32.mrb[40].mxu0 }
 0x12a   :  { %v680_v50 = vadd.f32 %v679_v44, %v678_v42  ;;  %v4015_v52 = vpop.f32.mrb[41].mxu0  ;;  %v547_v53 = vadd.f32 %v546_v46, %v545_v40  ;;  %v603_v13 = vmul.f32 %v3504_v47, %v3504_v47  ;;  %v553_v28 = vsel %vm552_vm1, %v3504_v47, 0.0 }
 0x12b   :  { %v548_v56 = vsel %vm192_vm0, %v4015_v52, 0.0  ;;  %v601_v62 = vmul.f32 %v4015_v52, %v4015_v52  ;;  %v3505_v63 = vpop.f32.mrb[42].mxu0 }
 0x12c   :  { %v549_v2 = vadd.f32 %v548_v56, %v547_v53  ;;  %v682_v4 = vadd.f32 %v681_v54, %v680_v50  ;;  %v456_v9 = vpop.f32.mrb[43].mxu0  ;;  %v687_v40 = vsel %vm552_vm1, %v603_v13, 0.0  ;;  %v706_v13 = vlaneseq }
 0x12d   :  { %v683_v16 = vsel %vm192_vm0, %v601_v62, 0.0  ;;  %v550_v17 = vsel %vm192_vm0, %v456_v9, 0.0  ;;  %v602_v18 = vmul.f32 %v456_v9, %v456_v9 }
 0x12e   :  { %v684_v20 = vadd.f32 %v683_v16, %v682_v4  ;;  %v551_v22 = vadd.f32 %v550_v17, %v549_v2 }
 0x12f   :  { %v685_v30 = vsel %vm192_vm0, %v602_v18, 0.0 }
 0x130   :  { %v554_v33 = vadd.f32 %v553_v28, %v551_v22  ;;  %v686_v37 = vadd.f32 %v685_v30, %v684_v20  ;;  %v4028_v30 = vshrl.u32 %v706_v13, 7 }
 0x132   :  { %v555_v42 = vrot.slane %v554_v33, 4  ;;  %v688_v44 = vadd.f32 %v687_v40, %v686_v37  ;;  %v4034_v37 = vsub.s32 0, %v4028_v30 }
 0x134   :  { %v556_v46 = vadd.f32 %v555_v42, %v554_v33  ;;  %v689_v50 = vrot.slane %v688_v44, 4  ;;  %v467_v33 = vld [vmem:[%s4912_s2] sm:$0x1]  ;;  %s3592_s2 = smov 32  }
 0x136   :  { %v557_v53 = vrot.slane %v556_v46, 2  ;;  %v690_v54 = vadd.f32 %v689_v50, %v688_v44  ;;  %v468_v44 = vld [vmem:[%s4913_s3] sm:$0x1]  ;;  %s3593_s3 = smov 16  }
 0x138   :  { %v558_v56 = vadd.f32 %v557_v53, %v556_v46  ;;  %v691_v62 = vrot.slane %v690_v54, 2 }
 0x13a   :  { %v559_v63 = vrot.slane %v558_v56, 1  ;;  %v692_v9 = vadd.f32 %v691_v62, %v690_v54 }
 0x13c   :  { %v560_v4 = vadd.f32 %v559_v63, %v558_v56  ;;  %v693_v2 = vrot.slane %v692_v9, 1 }
 0x13e   :  { %v694_v16 = vadd.f32 %v693_v2, %v692_v9  ;;  %v695_v47 = vmul.f32 0.00295858, %v560_v4 }
 0x140   :  { %v696_v17 = vmul.f32 0.00295858, %v694_v16  ;;  %v697_v18 = vmul.f32 %v695_v47, %v695_v47 }
 0x142   :  { %v698_v22 = vsub.f32 %v696_v17, %v697_v18 }
 0x144   :  { %v699_v20 = vmax.f32 %v698_v22, 0.0 }
 0x146   :  { %v700_v28 = vadd.f32 1e-05, %v699_v20 }
 0x148   :  { %3586 = vrsqrt.f32 %v700_v28 }
 0x152   :  { %v3587_v40 = vpop.eup %3586 }
 0x153   :  { %v702_v42 = vmul.f32 %v3587_v40, %v467_v33 }
 0x155   :  { %v703_v46 = vmul.f32 %v702_v42, %v695_v47  ;;  %v709_v50 = vrot.slane %v702_v42, %v4034_v37 }
 0x157   :  { %v704_v53 = vsub.f32 %v468_v44, %v703_v46  ;;  %v711_v54 = vmul.f32 %v709_v50, %v3743_v24  ;;  %v712_v56 = vmul.f32 %v709_v50, %v3749_v27  ;;  %v713_v62 = vmul.f32 %v3741_v23, %v709_v50 }
 0x158   :  { %v714_v63 = vmul.f32 %v3747_v26, %v709_v50  ;;  %v715_v9 = vmul.f32 %v709_v50, %v3770_v43  ;;  %v716_v4 = vmul.f32 %v709_v50, %v3779_v51  ;;  %v717_v16 = vmul.f32 %v3768_v41, %v709_v50 }
 0x159   :  { %v4047_v2 = vrot.slane %v704_v53, %v4034_v37  ;;  %v718_v47 = vmul.f32 %v3777_v48, %v709_v50  ;;  %v719_v17 = vmul.f32 %v709_v50, %v3798_v3  ;;  %v720_v24 = vmul.f32 %v709_v50, %v3807_v11 }
 0x15a   :  { %v721_v27 = vmul.f32 %v3796_v1, %v709_v50  ;;  %v722_v23 = vmul.f32 %v3805_v8, %v709_v50  ;;  %v723_v26 = vmul.f32 %v709_v50, %v3826_v31  ;;  %v724_v43 = vmul.f32 %v709_v50, %v3835_v39 }
 0x15b   :  { %v725_v51 = vmul.f32 %v3824_v29, %v709_v50  ;;  %v726_v18 = vmul.f32 %v3833_v36, %v709_v50  ;;  %v727_v41 = vmul.f32 %v709_v50, %v3854_v59  ;;  %v728_v48 = vmul.f32 %v709_v50, %v3863_v5 }
 0x15c   :  { %v729_v3 = vmul.f32 %v3852_v57, %v709_v50  ;;  %v730_v11 = vmul.f32 %v3861_v0, %v709_v50  ;;  %v732_v1 = vmul.f32 %v709_v50, %v3886_v38  ;;  %v733_v8 = vmul.f32 %v3880_v21, %v709_v50 }
 0x15d   :  { %v734_v31 = vmul.f32 %v3884_v34, %v709_v50  ;;  %v735_v39 = vmul.f32 %v709_v50, %v3905_v61  ;;  %v736_v29 = vmul.f32 %v709_v50, %v3914_v10  ;;  %v737_v36 = vmul.f32 %v3903_v58, %v709_v50 }
 0x15e   :  { %v738_v59 = vmul.f32 %v3912_v6, %v709_v50  ;;  %v739_v5 = vmul.f32 %v709_v50, %v3933_v35  ;;  %v740_v57 = vmul.f32 %v709_v50, %v3942_v49  ;;  %v741_v0 = vmul.f32 %v3931_v32, %v709_v50 }
 0x15f   :  { %v742_v38 = vmul.f32 %v3940_v45, %v709_v50  ;;  %v743_v21 = vmul.f32 %v709_v50, %v3961_v14  ;;  %v744_v34 = vmul.f32 %v709_v50, %v3970_v25  ;;  %v745_v61 = vmul.f32 %v3959_v12, %v709_v50 }
 0x160   :  { %v746_v10 = vmul.f32 %v3968_v19, %v709_v50  ;;  %v747_v58 = vmul.f32 %v709_v50, %v3989_v60  ;;  %v748_v6 = vmul.f32 %v709_v50, %v3998_v15  ;;  %v749_v35 = vmul.f32 %v3987_v55, %v709_v50 }
 0x161   :  { %v750_v49 = vmul.f32 %v3996_v7, %v709_v50  ;;  %v751_v32 = vmul.f32 %v709_v50, %v4015_v52  ;;  %v763_v45 = vadd.f32 %v4047_v2, %v714_v63  ;;  %v764_v14 = vadd.f32 %v4047_v2, %v715_v9 }
 0x162   :  { %v760_v25 = vadd.f32 %v4047_v2, %v711_v54  ;;  %v761_v12 = vadd.f32 %v4047_v2, %v712_v56  ;;  %v762_v19 = vadd.f32 %v4047_v2, %v713_v62  ;;  %v765_v60 = vadd.f32 %v4047_v2, %v716_v4 }
 0x163   :  { %v806_v22 = vmax.f32 %v763_v45, 0.0  ;;  %v766_v15 = vadd.f32 %v4047_v2, %v717_v16  ;;  %v4091_v55 = vadd.f32 %v4047_v2, %v718_v47  ;;  %v807_v7 = vmax.f32 %v764_v14, 0.0 }
 0x164   :  { %v4094_v52 = vadd.f32 %v4047_v2, %v719_v17  ;;  %v4097_v20 = vadd.f32 %v4047_v2, %v720_v24  ;;  %v4100_v28 = vadd.f32 %v4047_v2, %v721_v27  ;;  %v4104_v33 = vadd.f32 %v4047_v2, %v722_v23 }
 0x165   :  { %849 = vst.msk [vmem:[#allocation2 + $0x18] sm:$0xff] %vm192_vm0, %v806_v22  ;;  %v4107_v40 = vadd.f32 %v4047_v2, %v723_v26  ;;  %v4110_v42 = vadd.f32 %v4047_v2, %v724_v43  ;;  %v4113_v44 = vadd.f32 %v4047_v2, %v725_v51  ;;  %850 = vst.msk [vmem:[#allocation2 + $0x20] sm:$0xff] %vm192_vm0, %v807_v7 }
 0x166   :  { %v4117_v46 = vadd.f32 %v4047_v2, %v726_v18  ;;  %v4120_v50 = vadd.f32 %v4047_v2, %v727_v41  ;;  %v4123_v53 = vadd.f32 %v4047_v2, %v728_v48  ;;  %v4126_v54 = vadd.f32 %v4047_v2, %v729_v3 }
 0x167   :  { %v4129_v56 = vadd.f32 %v4047_v2, %v730_v11  ;;  %v4132_v62 = vadd.f32 %v4047_v2, %v732_v1  ;;  %v4135_v63 = vadd.f32 %v4047_v2, %v733_v8  ;;  %v4138_v9 = vadd.f32 %v4047_v2, %v734_v31 }
 0x168   :  { %v4141_v4 = vadd.f32 %v4047_v2, %v735_v39  ;;  %v4144_v16 = vadd.f32 %v4047_v2, %v736_v29  ;;  %v4147_v47 = vadd.f32 %v4047_v2, %v737_v36  ;;  %v4150_v17 = vadd.f32 %v4047_v2, %v738_v59 }
 0x169   :  { %v4153_v24 = vadd.f32 %v4047_v2, %v739_v5  ;;  %v4156_v27 = vadd.f32 %v4047_v2, %v740_v57  ;;  %v4159_v23 = vadd.f32 %v4047_v2, %v741_v0  ;;  %v4162_v26 = vadd.f32 %v4047_v2, %v742_v38 }
 0x16a   :  { %v4165_v43 = vadd.f32 %v4047_v2, %v743_v21  ;;  %v4168_v51 = vadd.f32 %v4047_v2, %v744_v34  ;;  %v4171_v18 = vadd.f32 %v4047_v2, %v745_v61  ;;  %v4174_v41 = vadd.f32 %v4047_v2, %v746_v10 }
 0x16b   :  { %v4177_v48 = vadd.f32 %v4047_v2, %v747_v58  ;;  %v4180_v3 = vadd.f32 %v4047_v2, %v748_v6  ;;  %v4183_v11 = vadd.f32 %v4047_v2, %v749_v35  ;;  %v4186_v1 = vadd.f32 %v4047_v2, %v750_v49 }
 0x16c   :  { %v4189_v8 = vadd.f32 %v4047_v2, %v751_v32  ;;  %v803_v31 = vmax.f32 %v760_v25, 0.0  ;;  %v959_v39 = vld [vmem:[#allocation2 + $0x1c] ss:$2 sm:$0x1f]  ;;  %v804_v36 = vmax.f32 %v761_v12, 0.0  ;;  %v805_v59 = vmax.f32 %v762_v19, 0.0 }
 0x16d   :  { %v952_v29 = vld [vmem:[#allocation2 + $0x1b] ss:$2 sm:$0x1f]  ;;  %961 = vrot.lane.b32.xlu1 %v959_v39, %s3592_s2  ;;  %v808_v5 = vmax.f32 %v765_v60, 0.0  ;;  %v809_v57 = vmax.f32 %v766_v15, 0.0  ;;  %v810_v0 = vmax.f32 %v4091_v55, 0.0 }
 0x16e   :  { %954 = vrot.lane.b32.xlu0 %v952_v29, %s3593_s3  ;;  %846 = vst.msk [vmem:[#allocation2] sm:$0xff] %vm192_vm0, %v803_v31  ;;  %v811_v2 = vmax.f32 %v4094_v52, 0.0  ;;  %v812_v38 = vmax.f32 %v4097_v20, 0.0  ;;  %v813_v21 = vmax.f32 %v4100_v28, 0.0  ;;  %v814_v34 = vmax.f32 %v4104_v33, 0.0  ;;  %847 = vst.msk [vmem:[#allocation2 + $0x8] sm:$0xff] %vm192_vm0, %v804_v36 }
 0x16f   :  { %v815_v61 = vmax.f32 %v4107_v40, 0.0  ;;  %v816_v10 = vmax.f32 %v4110_v42, 0.0  ;;  %v817_v58 = vmax.f32 %v4113_v44, 0.0  ;;  %848 = vst.msk [vmem:[#allocation2 + $0x10] sm:$0xff] %vm192_vm0, %v805_v59  ;;  %851 = vst.msk [vmem:[#allocation2 + $0x28] sm:$0xff] %vm192_vm0, %v808_v5  ;;  %v818_v6 = vmax.f32 %v4117_v46, 0.0 }
 0x170   :  { %852 = vst.msk [vmem:[#allocation2 + $0x30] sm:$0xff] %vm192_vm0, %v809_v57  ;;  %v819_v35 = vmax.f32 %v4120_v50, 0.0  ;;  %v820_v49 = vmax.f32 %v4123_v53, 0.0  ;;  %v821_v32 = vmax.f32 %v4126_v54, 0.0  ;;  %853 = vst.msk [vmem:[#allocation2 + $0x38] sm:$0xff] %vm192_vm0, %v810_v0  ;;  %v822_v45 = vmax.f32 %v4129_v56, 0.0 }
 0x171   :  { %854 = vst.msk [vmem:[#allocation2 + $0x40] sm:$0xff] %vm192_vm0, %v811_v2  ;;  %855 = vst.msk [vmem:[#allocation2 + $0x48] sm:$0xff] %vm192_vm0, %v812_v38  ;;  %v824_v14 = vmax.f32 %v4132_v62, 0.0  ;;  %v825_v25 = vmax.f32 %v4135_v63, 0.0  ;;  %v826_v12 = vmax.f32 %v4138_v9, 0.0  ;;  %v827_v19 = vmax.f32 %v4141_v4, 0.0 }
 0x172   :  { %856 = vst.msk [vmem:[#allocation2 + $0x50] sm:$0xff] %vm192_vm0, %v813_v21  ;;  %857 = vst.msk [vmem:[#allocation2 + $0x58] sm:$0xff] %vm192_vm0, %v814_v34  ;;  %v828_v22 = vmax.f32 %v4144_v16, 0.0  ;;  %v829_v60 = vmax.f32 %v4147_v47, 0.0  ;;  %v830_v15 = vmax.f32 %v4150_v17, 0.0  ;;  %v831_v55 = vmax.f32 %v4153_v24, 0.0 }
 0x173   :  { %858 = vst.msk [vmem:[#allocation2 + $0x60] sm:$0xff] %vm192_vm0, %v815_v61  ;;  %859 = vst.msk [vmem:[#allocation2 + $0x68] sm:$0xff] %vm192_vm0, %v816_v10  ;;  %v832_v7 = vmax.f32 %v4156_v27, 0.0  ;;  %v833_v52 = vmax.f32 %v4159_v23, 0.0  ;;  %v834_v20 = vmax.f32 %v4162_v26, 0.0  ;;  %v835_v28 = vmax.f32 %v4165_v43, 0.0 }
 0x174   :  { %860 = vst.msk [vmem:[#allocation2 + $0x70] sm:$0xff] %vm192_vm0, %v817_v58  ;;  %861 = vst.msk [vmem:[#allocation2 + $0x78] sm:$0xff] %vm192_vm0, %v818_v6  ;;  %v836_v33 = vmax.f32 %v4168_v51, 0.0  ;;  %v837_v40 = vmax.f32 %v4171_v18, 0.0  ;;  %v838_v42 = vmax.f32 %v4174_v41, 0.0  ;;  %v839_v44 = vmax.f32 %v4177_v48, 0.0 }
 0x175   :  { %862 = vst.msk [vmem:[#allocation2 + $0x80] sm:$0xff] %vm192_vm0, %v819_v35  ;;  %863 = vst.msk [vmem:[#allocation2 + $0x88] sm:$0xff] %vm192_vm0, %v820_v49  ;;  %v840_v46 = vmax.f32 %v4180_v3, 0.0  ;;  %v841_v50 = vmax.f32 %v4183_v11, 0.0  ;;  %v842_v53 = vmax.f32 %v4186_v1, 0.0  ;;  %v843_v54 = vmax.f32 %v4189_v8, 0.0 }
 0x176   :  { %864 = vst.msk [vmem:[#allocation2 + $0x90] sm:$0xff] %vm192_vm0, %v821_v32  ;;  %865 = vst.msk [vmem:[#allocation2 + $0x98] sm:$0xff] %vm192_vm0, %v822_v45  ;;  %v966_v56 = vld [vmem:[#allocation2 + $0x1d] ss:$2 sm:$0x1f] }
 0x177   :  { %867 = vst.msk [vmem:[#allocation2 + $0xa8] sm:$0xff] %vm192_vm0, %v824_v14  ;;  %868 = vst.msk [vmem:[#allocation2 + $0xb0] sm:$0xff] %vm192_vm0, %v825_v25  ;;  %968 = vrot.lane.b32.xlu1 %v966_v56, %s3594_s14  ;;  %v893_v62 = vld [vmem:[#allocation2 + $0x1] ss:$2 sm:$0x1f] }
 0x178   :  { %869 = vst.msk [vmem:[#allocation2 + $0xb8] sm:$0xff] %vm192_vm0, %v826_v12  ;;  %870 = vst.msk [vmem:[#allocation2 + $0xc0] sm:$0xff] %vm192_vm0, %v827_v19  ;;  %895 = vrot.lane.b32.xlu0 %v893_v62, %s3593_s3  ;;  %v973_v63 = vld [vmem:[#allocation2 + $0x27] ss:$2 sm:$0x1f] }
 0x179   :  { %871 = vst.msk [vmem:[#allocation2 + $0xc8] sm:$0xff] %vm192_vm0, %v828_v22  ;;  %872 = vst.msk [vmem:[#allocation2 + $0xd0] sm:$0xff] %vm192_vm0, %v829_v60  ;;  %v901_v9 = vld [vmem:[#allocation2 + $0x2] ss:$2 sm:$0x1f] }
 0x17a   :  { %873 = vst.msk [vmem:[#allocation2 + $0xd8] sm:$0xff] %vm192_vm0, %v830_v15  ;;  %874 = vst.msk [vmem:[#allocation2 + $0xe0] sm:$0xff] %vm192_vm0, %v831_v55  ;;  %v980_v4 = vld [vmem:[#allocation2 + $0x28] ss:$2 sm:$0x1f] }
 0x17b   :  { %875 = vst.msk [vmem:[#allocation2 + $0xe8] sm:$0xff] %vm192_vm0, %v832_v7  ;;  %876 = vst.msk [vmem:[#allocation2 + $0xf0] sm:$0xff] %vm192_vm0, %v833_v52  ;;  %975 = vrot.lane.b32.xlu1 %v973_v63, %s3595_s15  ;;  %v909_v16 = vld [vmem:[#allocation2 + $0x3] ss:$2 sm:$0x1f] }
 0x17c   :  { %877 = vst.msk [vmem:[#allocation2 + $0xf8] sm:$0xff] %vm192_vm0, %v834_v20  ;;  %878 = vst.msk [vmem:[#allocation2 + $0x100] sm:$0xff] %vm192_vm0, %v835_v28  ;;  %903 = vrot.lane.b32.xlu0 %v901_v9, %s3592_s2  ;;  %v987_v47 = vld [vmem:[#allocation2 + $0x29] ss:$2 sm:$0x1f] }
 0x17d   :  { %879 = vst.msk [vmem:[#allocation2 + $0x108] sm:$0xff] %vm192_vm0, %v836_v33  ;;  %880 = vst.msk [vmem:[#allocation2 + $0x110] sm:$0xff] %vm192_vm0, %v837_v40  ;;  %v917_v17 = vld [vmem:[#allocation2 + $0xd] ss:$2 sm:$0x1f] }
 0x17e   :  { %881 = vst.msk [vmem:[#allocation2 + $0x118] sm:$0xff] %vm192_vm0, %v838_v42  ;;  %882 = vst.msk [vmem:[#allocation2 + $0x120] sm:$0xff] %vm192_vm0, %v839_v44  ;;  %v994_v24 = vld [vmem:[#allocation2 + $0x2a] ss:$2 sm:$0x1f] }
 0x17f   :  { %883 = vst.msk [vmem:[#allocation2 + $0x128] sm:$0xff] %vm192_vm0, %v840_v46  ;;  %884 = vst.msk [vmem:[#allocation2 + $0x130] sm:$0xff] %vm192_vm0, %v841_v50  ;;  %982 = vrot.lane.b32.xlu1 %v980_v4, %s3596_s16  ;;  %v925_v27 = vld [vmem:[#allocation2 + $0xe] ss:$2 sm:$0x1f] }
 0x180   :  { %885 = vst.msk [vmem:[#allocation2 + $0x138] sm:$0xff] %vm192_vm0, %v842_v53  ;;  %886 = vst.msk [vmem:[#allocation2 + $0x140] sm:$0xff] %vm192_vm0, %v843_v54  ;;  %911 = vrot.lane.b32.xlu0 %v909_v16, %s3594_s14  ;;  %v933_v26 = vld [vmem:[#allocation2 + $0xf] ss:$2 sm:$0x1f]  ;;  %vm1703_vm0 = vcmask 130054  }
 0x181   :  { %v941_v51 = vld [vmem:[#allocation2 + $0x10] ss:$2 sm:$0x1f]  ;;  %v949_v39 = vld [vmem:[#allocation2 + $0x1a] ss:$2 sm:$0x1f] }
 0x182   :  { %v1216_v36 = vld [vmem:[#allocation2 + $0x4f] ss:$2 sm:$0x1f]  ;;  %950 = vst.msk [vmem:[#allocation3 + $0x8] sm:$0x1f] %vm890_vm2, %v949_v39 }
 0x183   :  { %989 = vrot.lane.b32.xlu1 %v987_v47, %s3597_s1  ;;  %v1973_v43 = vld [vmem:[#allocation2 + $0xf8] ss:$2 sm:$0x1f]  ;;  %v1979_v18 = vld [vmem:[#allocation2 + $0xf9] ss:$2 sm:$0x1f] }
 0x184   :  { %919 = vrot.lane.b32.xlu0 %v917_v17, %s3595_s15  ;;  %v1985_v48 = vld [vmem:[#allocation2 + $0xfa] ss:$2 sm:$0x1f]  ;;  %v1991_v11 = vld [vmem:[#allocation2 + $0x104] ss:$2 sm:$0x1f] }
 0x185   :  { %v2019_v23 = vld [vmem:[#allocation2 + $0x112] ss:$2 sm:$0x1f]  ;;  %v2026_v41 = vld [vmem:[#allocation2 + $0x113] ss:$2 sm:$0x1f] }
 0x186   :  { %v2033_v3 = vld [vmem:[#allocation2 + $0x114] ss:$2 sm:$0x1f]  ;;  %v2040_v1 = vld [vmem:[#allocation2 + $0x11e] ss:$2 sm:$0x1f] }
 0x187   :  { %996 = vrot.lane.b32.xlu1 %v994_v24, %s3598_s17  ;;  %v1997_v8 = vld [vmem:[#allocation2 + $0x105] ss:$2 sm:$0x1f]  ;;  %v2003_v29 = vld [vmem:[#allocation2 + $0x106] ss:$2 sm:$0x1f] }
 0x188   :  { %927 = vrot.lane.b32.xlu0 %v925_v27, %s3596_s16  ;;  %v2047_v31 = vld [vmem:[#allocation2 + $0x11f] ss:$2 sm:$0x1f]  ;;  %v2054_v59 = vld [vmem:[#allocation2 + $0x120] ss:$2 sm:$0x1f] }
 0x189   :  { %v889_v5 = vld [vmem:[#allocation2] ss:$2 sm:$0x1f]  ;;  %v1218_v57 = vrot.slane %v1216_v36, 6 }
 0x18a   :  { %891 = vst.msk [vmem:[#allocation3] sm:$0x1f] %vm890_vm2, %v889_v5  ;;  %v1357_v0 = vld [vmem:[#allocation2 + $0x69] ss:$2 sm:$0x1f] }
 0x18b   :  { %2021 = vrot.lane.b32.xlu1 %v2019_v23, %s3593_s3  ;;  %v1085_v2 = vld [vmem:[#allocation2 + $0x35] ss:$2 sm:$0x1f]  ;;  %v2061_v38 = vld [vmem:[#allocation2 + $0x121] ss:$2 sm:$0x1f] }
 0x18c   :  { %935 = vrot.lane.b32.xlu0 %v933_v26, %s3597_s1  ;;  %v1359_v21 = vrot.slane %v1357_v0, 1  ;;  %v1087_v34 = vrot.slane %v1085_v2, 3  ;;  %v1094_v61 = vld [vmem:[#allocation2 + $0x36] ss:$2 sm:$0x1f] }
 0x18d   :  { %v1007_v10 = vld [vmem:[#allocation2 + $0x1b] ss:$2 sm:$0x1f]  ;;  %v1096_v58 = vrot.slane %v1094_v61, 3 }
 0x18e   :  { %v1009_v6 = vrot.slane %v1007_v10, 3  ;;  %v2016_v35 = vld [vmem:[#allocation2 + $0x111] ss:$2 sm:$0x1f] }
 0x18f   :  { %1975 = vrot.lane.b32.xlu1 %v1973_v43, %s3593_s3  ;;  %v1224_v49 = vld [vmem:[#allocation2 + $0x50] ss:$2 sm:$0x1f]  ;;  %v1153_v32 = vld [vmem:[#allocation2 + $0x35] ss:$2 sm:$0x1f] }
 0x190   :  { %943 = vrot.lane.b32.xlu0 %v941_v51, %s3598_s17  ;;  %2017 = vst.msk [vmem:[#allocation3 + $0x58] sm:$0x1f] %vm890_vm2, %v2016_v35  ;;  %v1971_v45 = vld [vmem:[#allocation2 + $0xf7] ss:$2 sm:$0x1f]  ;;  %v1226_v14 = vrot.slane %v1224_v49, 6 }
 0x191   :  { %1972 = vst.msk [vmem:[#allocation3 + $0x50] sm:$0x1f] %vm890_vm2, %v1971_v45  ;;  %v1155_v25 = vrot.slane %v1153_v32, 6  ;;  %v1366_v12 = vld [vmem:[#allocation2 + $0x6a] ss:$2 sm:$0x1f] }
 0x192   :  { %v1279_v19 = vld [vmem:[#allocation2 + $0x4f] ss:$2 sm:$0x1f]  ;;  %v1368_v22 = vrot.slane %v1366_v12, 1  ;;  %v3538_v35 = vld [vmem:[%s4914_s4] sm:$0xff]   ;;  %vm1705_vm2 = vcmask 124928  }
 0x193   :  { %1981 = vrot.lane.b32.xlu1 %v1979_v18, %s3592_s2  ;;  %v1281_v60 = vrot.slane %v1279_v19, 1  ;;  %v1103_v15 = vld [vmem:[#allocation2 + $0x37] ss:$2 sm:$0x1f]  ;;  %v3539_v19 = vld [vmem:[%s4914_s4 + $0x48] sm:$0xff]  }
 0x194   :  { %2028 = vrot.lane.b32.xlu0 %v2026_v41, %s3592_s2  ;;  %v1017_v55 = vld [vmem:[#allocation2 + $0x1c] ss:$2 sm:$0x1f]  ;;  %v1105_v7 = vrot.slane %v1103_v15, 3 }
 0x195   :  { %v1019_v52 = vrot.slane %v1017_v55, 3  ;;  %v1232_v20 = vld [vmem:[#allocation2 + $0x51] ss:$2 sm:$0x1f] }
 0x196   :  { %v1161_v28 = vld [vmem:[#allocation2 + $0x36] ss:$2 sm:$0x1f]  ;;  %v1234_v42 = vrot.slane %v1232_v20, 6 }
 0x197   :  { %1987 = vrot.lane.b32.xlu1 %v1985_v48, %s3594_s14  ;;  %v1210_v33 = vld [vmem:[#allocation2 + $0x4e] ss:$2 sm:$0x1f]  ;;  %v1163_v44 = vrot.slane %v1161_v28, 6 }
 0x198   :  { %2035 = vrot.lane.b32.xlu0 %v2033_v3, %s3594_s14  ;;  %v1212_v40 = vrot.slane %v1210_v33, 6  ;;  %v1375_v46 = vld [vmem:[#allocation2 + $0x6b] ss:$2 sm:$0x1f] }
 0x199   :  { %v1289_v50 = vld [vmem:[#allocation2 + $0x50] ss:$2 sm:$0x1f]  ;;  %v1377_v63 = vrot.slane %v1375_v46, 1 }
 0x19a   :  { %1214 = vst.msk [vmem:[#allocation3 + $0x18] sm:$0x7c] %vm1151_vm3, %v1212_v40  ;;  %v1350_v53 = vld [vmem:[#allocation2 + $0x68] ss:$2 sm:$0x1f]  ;;  %v1291_v9 = vrot.slane %v1289_v50, 1 }
 0x19b   :  { %1993 = vrot.lane.b32.xlu1 %v1991_v11, %s3595_s15  ;;  %v1352_v54 = vrot.slane %v1350_v53, 1  ;;  %v1078_v56 = vld [vmem:[#allocation2 + $0x34] ss:$2 sm:$0x1f] }
 0x19c   :  { %2042 = vrot.lane.b32.xlu0 %v2040_v1, %s3595_s15  ;;  %v1080_v62 = vrot.slane %v1078_v56, 3  ;;  %v1112_v4 = vld [vmem:[#allocation2 + $0x41] ss:$2 sm:$0x1f]  ;;  %v3541_v28 = vld [vmem:[%s4914_s4 + $0x50] sm:$0xff]   ;;  %v3543_v46 = vld [vmem:[%s4914_s4 + $0x58] sm:$0xff]  }
 0x19d   :  { %1354 = vst.msk [vmem:[#allocation3 + $0x18] sm:$0x80] %vm1275_vm4, %v1352_v54  ;;  %v1000_v16 = vld [vmem:[#allocation2 + $0x1a] ss:$2 sm:$0x1f]  ;;  %v1114_v24 = vrot.slane %v1112_v4, 3 }
 0x19e   :  { %1355 = vst.msk [vmem:[#allocation3 + $0x28] sm:$0xf] %vm1277_vm5, %v1352_v54  ;;  %v1027_v47 = vld [vmem:[#allocation2 + $0x1d] ss:$2 sm:$0x1f]  ;;  %v1002_v17 = vrot.slane %v1000_v16, 3 }
 0x19f   :  { %1999 = vrot.lane.b32.xlu1 %v1997_v8, %s3596_s16  ;;  %1082 = vst.msk [vmem:[#allocation3 + $0x8] sm:$0xe0] %vm1004_vm6, %v1080_v62  ;;  %v1147_v27 = vld [vmem:[#allocation2 + $0x34] ss:$2 sm:$0x1f]  ;;  %v1029_v23 = vrot.slane %v1027_v47, 3 }
 0x1a0   :  { %2049 = vrot.lane.b32.xlu0 %v2047_v31, %s3596_s16  ;;  %1083 = vst.msk [vmem:[#allocation3 + $0x18] sm:$0x3] %vm552_vm1, %v1080_v62  ;;  %1006 = vst.msk [vmem:[#allocation3 + $0x10] sm:$0x3] %vm552_vm1, %v1002_v17  ;;  %v1149_v43 = vrot.slane %v1147_v27, 6  ;;  %v3542_v40 = vld [vmem:[%s4914_s4 + $0x10] sm:$0xff]  }
 0x1a1   :  { %1005 = vst.msk [vmem:[#allocation3] sm:$0xe0] %vm1004_vm6, %v1002_v17  ;;  %v1240_v26 = vld [vmem:[#allocation2 + $0x5b] ss:$2 sm:$0x1f] }
 0x1a2   :  { %v1169_v51 = vld [vmem:[#allocation2 + $0x37] ss:$2 sm:$0x1f]  ;;  %1152 = vst.msk [vmem:[#allocation3 + $0x10] sm:$0x7c] %vm1151_vm3, %v1149_v43  ;;  %v1242_v41 = vrot.slane %v1240_v26, 6 }
 0x1a3   :  { %2005 = vrot.lane.b32.xlu1 %v2003_v29, %s3597_s1  ;;  %v1271_v18 = vld [vmem:[#allocation2 + $0x4e] ss:$2 sm:$0x1f]  ;;  %v1171_v3 = vrot.slane %v1169_v51, 6  ;;  %v3544_v50 = vld [vmem:[%s4914_s4 + $0x18] sm:$0xff]   ;;  %v3545_v4 = vld [vmem:[%s4914_s4 + $0x60] sm:$0xff]  }
 0x1a4   :  { %2056 = vrot.lane.b32.xlu0 %v2054_v59, %s3597_s1  ;;  %v1273_v48 = vrot.slane %v1271_v18, 1  ;;  %v1384_v11 = vld [vmem:[#allocation2 + $0x75] ss:$2 sm:$0x1f]  ;;  %v3546_v17 = vld [vmem:[%s4914_s4 + $0x20] sm:$0xff]   ;;  %v3547_v26 = vld [vmem:[%s4914_s4 + $0x68] sm:$0xff]  }
 0x1a5   :  { %v1299_v1 = vld [vmem:[#allocation2 + $0x51] ss:$2 sm:$0x1f]  ;;  %v1386_v8 = vrot.slane %v1384_v11, 1  ;;  %v3548_v51 = vld [vmem:[%s4914_s4 + $0x28] sm:$0xff]   ;;  %vm4920_vm3 = vcmask 1045376  }
 0x1a6   :  { %1276 = vst.msk [vmem:[#allocation3 + $0x10] sm:$0x80] %vm1275_vm4, %v1273_v48  ;;  %v1301_v31 = vrot.slane %v1299_v1, 1  ;;  %v1121_v39 = vld [vmem:[#allocation2 + $0x42] ss:$2 sm:$0x1f] }
 0x1a7   :  { %1219 = vrot.lane.b32.xlu1 %v1218_v57, %s3593_s3  ;;  %1278 = vst.msk [vmem:[#allocation3 + $0x20] sm:$0xf] %vm1277_vm5, %v1273_v48  ;;  %v1037_v29 = vld [vmem:[#allocation2 + $0x27] ss:$2 sm:$0x1f]  ;;  %v1123_v36 = vrot.slane %v1121_v39, 3 }
 0x1a8   :  { %2063 = vrot.lane.b32.xlu0 %v2061_v38, %s3598_s17  ;;  %v1039_v59 = vrot.slane %v1037_v29, 3  ;;  %v1248_v5 = vld [vmem:[#allocation2 + $0x5c] ss:$2 sm:$0x1f]  ;;  %v3549_v39 = vld [vmem:[%s4914_s4 + $0x70] sm:$0xff]   ;;  %vm1851_vm4 = vcmask 130051  }
 0x1a9   :  { %v1177_v57 = vld [vmem:[#allocation2 + $0x41] ss:$2 sm:$0x1f]  ;;  %v1250_v0 = vrot.slane %v1248_v5, 6  ;;  %v3550_v29 = vld [vmem:[%s4914_s4 + $0x30] sm:$0xff]   ;;  %vm1285_vm5 = vcmask 261255  }
 0x1aa   :  { %v1179_v2 = vrot.slane %v1177_v57, 6  ;;  %v1393_v38 = vld [vmem:[#allocation2 + $0x76] ss:$2 sm:$0x1f] }
 0x1ab   :  { %1360 = vrot.lane.b32.xlu1 %v1359_v21, %s3593_s3  ;;  %v1309_v21 = vld [vmem:[#allocation2 + $0x5b] ss:$2 sm:$0x1f]  ;;  %v1411_v47 = vld [vmem:[#allocation2 + $0x78] ss:$2 sm:$0x1f] }
 0x1ac   :  { %1088 = vrot.lane.b32.xlu0 %v1087_v34, %s3593_s3  ;;  %v1395_v34 = vrot.slane %v1393_v38, 1  ;;  %v1311_v61 = vrot.slane %v1309_v21, 1  ;;  %v1130_v10 = vld [vmem:[#allocation2 + $0x43] ss:$2 sm:$0x1f]  ;;  %v1413_v43 = vrot.slane %v1411_v47, 1 }
 0x1ad   :  { %v1132_v49 = vrot.slane %v1130_v10, 3  ;;  %v1256_v45 = vld [vmem:[#allocation2 + $0x5d] ss:$2 sm:$0x1f] }
 0x1ae   :  { %v1402_v55 = vld [vmem:[#allocation2 + $0x77] ss:$2 sm:$0x1f]  ;;  %v1498_v18 = vld [vmem:[#allocation2 + $0x82] ss:$2 sm:$0x1f] }
 0x1af   :  { %1097 = vrot.lane.b32.xlu1 %v1096_v58, %s3592_s2  ;;  %v1047_v58 = vld [vmem:[#allocation2 + $0x28] ss:$2 sm:$0x1f]  ;;  %v1404_v20 = vrot.slane %v1402_v55, 1 }
 0x1b0   :  { %1010 = vrot.lane.b32.xlu0 %v1009_v6, %s3593_s3  ;;  %v3537_v6 = vld [vmem:[%s4914_s4 + $0x40] sm:$0xff]   ;;  %v1049_v32 = vrot.slane %v1047_v58, 3  ;;  %v1067_v48 = vld [vmem:[#allocation2 + $0x2a] ss:$2 sm:$0x1f]  ;;  %v3552_v58 = vld [vmem:[%s4914_s4 + $0x38] sm:$0xff]  }
 0x1b1   :  { %3376 = vmatprep.subr.bf16.mxu1 %v3537_v6  ;;  %v1069_v5 = vrot.slane %v1067_v48, 3  ;;  %v1847_v47 = vld [vmem:[#allocation2 + $0xdd] ss:$2 sm:$0x1f] }
 0x1b2   :  { %3377 = vmatpush3.bf16.msra.mxu1 %v3538_v35  ;;  %v1644_v35 = vld [vmem:[#allocation2 + $0xc4] ss:$2 sm:$0x1f] }
 0x1b3   :  { %1227 = vrot.lane.b32.xlu1 %v1226_v14, %s3592_s2  ;;  %v1185_v14 = vld [vmem:[#allocation2 + $0x42] ss:$2 sm:$0x1f]  ;;  %3378 = vmatprep.subr.bf16.mxu1 %v3539_v19 }
 0x1b4   :  { %1156 = vrot.lane.b32.xlu0 %v1155_v25, %s3593_s3  ;;  %v1187_v15 = vrot.slane %v1185_v14, 6  ;;  %v1785_v14 = vld [vmem:[#allocation2 + $0xde] ss:$2 sm:$0x1f] }
 0x1b7   :  { %1369 = vrot.lane.b32.xlu1 %v1368_v22, %s3592_s2  ;;  %v3540_v22 = vld [vmem:[%s4914_s4 + $0x8] sm:$0xff]  }
 0x1b8   :  { %1282 = vrot.lane.b32.xlu0 %v1281_v60, %s3593_s3  ;;  %v1258_v60 = vrot.slane %v1256_v45, 6  ;;  %3379 = vmatpush3.bf16.msra.mxu1 %v3540_v22  ;;  %v1646_v22 = vrot.slane %v1644_v35, 7 }
 0x1b9   :  { %3380 = vmatprep.subr.bf16.mxu1 %v3541_v28 }
 0x1bb   :  { %1106 = vrot.lane.b32.xlu1 %v1105_v7, %s3594_s14  ;;  %v1319_v7 = vld [vmem:[#allocation2 + $0x5c] ss:$2 sm:$0x1f] }
 0x1bc   :  { %1020 = vrot.lane.b32.xlu0 %v1019_v52, %s3592_s2  ;;  %v1139_v52 = vld [vmem:[#allocation2 + $0x44] ss:$2 sm:$0x1f]  ;;  %v1321_v33 = vrot.slane %v1319_v7, 1  ;;  %3381 = vmatpush3.bf16.msra.mxu1 %v3542_v40 }
 0x1bd   :  { %v1141_v54 = vrot.slane %v1139_v52, 3  ;;  %3382 = vmatprep.subr.bf16.mxu1 %v3543_v46  ;;  %v1427_v7 = vld [vmem:[#allocation2 + $0x69] ss:$2 sm:$0x1f] }
 0x1be   :  { %v1514_v52 = vld [vmem:[#allocation2 + $0x84] ss:$2 sm:$0x1f]  ;;  %v1429_v40 = vrot.slane %v1427_v7, 4 }
 0x1bf   :  { %1235 = vrot.lane.b32.xlu1 %v1234_v42, %s3594_s14  ;;  %v1057_v42 = vld [vmem:[#allocation2 + $0x29] ss:$2 sm:$0x1f]  ;;  %v1575_v46 = vld [vmem:[#allocation2 + $0xaa] ss:$2 sm:$0x1f] }
 0x1c0   :  { %1164 = vrot.lane.b32.xlu0 %v1163_v44, %s3592_s2  ;;  %v1264_v44 = vld [vmem:[#allocation2 + $0x5e] ss:$2 sm:$0x1f]  ;;  %v1059_v62 = vrot.slane %v1057_v42, 3  ;;  %3383 = vmatpush3.bf16.msra.mxu1 %v3544_v50  ;;  %v1516_v42 = vrot.slane %v1514_v52, 4 }
 0x1c1   :  { %3384 = vmatprep.subr.bf16.mxu1 %v3545_v4  ;;  %v1652_v50 = vld [vmem:[#allocation2 + $0xc5] ss:$2 sm:$0x1f]  ;;  %v1910_v4 = vld [vmem:[#allocation2 + $0xf7] ss:$2 sm:$0x1f] }
 0x1c3   :  { %1378 = vrot.lane.b32.xlu1 %v1377_v63, %s3594_s14  ;;  %v1193_v63 = vld [vmem:[#allocation2 + $0x43] ss:$2 sm:$0x1f] }
 0x1c4   :  { %1292 = vrot.lane.b32.xlu0 %v1291_v9, %s3592_s2  ;;  %v1266_v9 = vrot.slane %v1264_v44, 6  ;;  %v1195_v27 = vrot.slane %v1193_v63, 6  ;;  %3385 = vmatpush3.bf16.msra.mxu1 %v3546_v17  ;;  %v1849_v17 = vrot.slane %v1847_v47, 5 }
 0x1c5   :  { %3386 = vmatprep.subr.bf16.mxu1 %v3547_v26 }
 0x1c6   :  { %1852 = vst.msk [vmem:[#allocation3 + $0x40] sm:$0xf8] %vm1851_vm4, %v1849_v17 }
 0x1c7   :  { %1115 = vrot.lane.b32.xlu1 %v1114_v24, %s3595_s15 }
 0x1c8   :  { %1030 = vrot.lane.b32.xlu0 %v1029_v23, %s3594_s14  ;;  %v1329_v23 = vld [vmem:[#allocation2 + $0x5d] ss:$2 sm:$0x1f]  ;;  %3387 = vmatpush3.bf16.msra.mxu1 %v3548_v51 }
 0x1c9   :  { %v1331_v1 = vrot.slane %v1329_v23, 1  ;;  %3388 = vmatprep.subr.bf16.mxu1 %v3549_v39  ;;  %v1584_v39 = vld [vmem:[#allocation2 + $0xab] ss:$2 sm:$0x1f] }
 0x1cb   :  { %1243 = vrot.lane.b32.xlu1 %v1242_v41, %s3595_s15 }
 0x1cc   :  { %1172 = vrot.lane.b32.xlu0 %v1171_v3, %s3594_s14  ;;  %v1500_v3 = vrot.slane %v1498_v18, 4  ;;  %3389 = vmatpush3.bf16.msra.mxu1 %v3550_v29  ;;  %v1660_v29 = vld [vmem:[#allocation2 + $0xc6] ss:$2 sm:$0x1f] }
 0x1ce   :  { %1502 = vst.msk [vmem:[#allocation3 + $0x28] sm:$0xf0] %vm1423_vm13, %v1500_v3 }
 0x1cf   :  { %1387 = vrot.lane.b32.xlu1 %v1386_v8, %s3595_s15  ;;  %v1201_v8 = vld [vmem:[#allocation2 + $0x44] ss:$2 sm:$0x1f]  ;;  %1503 = vst.msk [vmem:[#allocation3 + $0x38] sm:$0x1] %vm1425_vm14, %v1500_v3 }
 0x1d0   :  { %1302 = vrot.lane.b32.xlu0 %v1301_v31, %s3594_s14  ;;  %v1339_v31 = vld [vmem:[#allocation2 + $0x5e] ss:$2 sm:$0x1f]  ;;  %v1203_v21 = vrot.slane %v1201_v8, 6 }
 0x1d1   :  { %v1341_v10 = vrot.slane %v1339_v31, 1  ;;  %v1523_v3 = vld [vmem:[#allocation2 + $0x85] ss:$2 sm:$0x1f] }
 0x1d2   :  { %v1525_v31 = vrot.slane %v1523_v3, 4 }
 0x1d3   :  { %1124 = vrot.lane.b32.xlu1 %v1123_v36, %s3596_s16  ;;  %v1638_v36 = vld [vmem:[#allocation2 + $0xc3] ss:$2 sm:$0x1f] }
 0x1d4   :  { %1040 = vrot.lane.b32.xlu0 %v1039_v59, %s3595_s15  ;;  %v1640_v57 = vrot.slane %v1638_v36, 7 }
 0x1d6   :  { %1642 = vst.msk [vmem:[#allocation3 + $0x38] sm:$0x3e] %vm1572_vm15, %v1640_v57  ;;  %v1662_v57 = vrot.slane %v1660_v29, 7 }
 0x1d7   :  { %1251 = vrot.lane.b32.xlu1 %v1250_v0, %s3596_s16  ;;  %v1778_v0 = vld [vmem:[#allocation2 + $0xdd] ss:$2 sm:$0x1f] }
 0x1d8   :  { %1180 = vrot.lane.b32.xlu0 %v1179_v2, %s3595_s15  ;;  %v3551_v2 = vld [vmem:[%s4914_s4 + $0x78] sm:$0xff]  }
 0x1d9   :  { %3390 = vmatprep.subr.bf16.mxu1 %v3551_v2  ;;  %v1803_v2 = vld [vmem:[#allocation2 + $0xe0] ss:$2 sm:$0x1f] }
 0x1da   :  { %3391 = vmatpush3.bf16.msra.mxu1 %v3552_v58  ;;  %v1532_v58 = vld [vmem:[#allocation2 + $0x8f] ss:$2 sm:$0x1f] }
 0x1db   :  { %1396 = vrot.lane.b32.xlu1 %v1395_v34, %s3596_s16  ;;  %v1780_v34 = vrot.slane %v1778_v0, 2  ;;  %v1717_v0 = vld [vmem:[#allocation2 + $0xc5] ss:$2 sm:$0x1f] }
 0x1dc   :  { %1312 = vrot.lane.b32.xlu0 %v1311_v61, %s3595_s15  ;;  %v1505_v61 = vld [vmem:[#allocation2 + $0x83] ss:$2 sm:$0x1f] }
 0x1dd   :  { %1782 = vst.msk [vmem:[#allocation3 + $0x38] sm:$0xc0] %vm1703_vm0, %v1780_v34  ;;  %v1507_v45 = vrot.slane %v1505_v61, 4  ;;  %v1805_v61 = vrot.slane %v1803_v2, 2 }
 0x1de   :  { %1783 = vst.msk [vmem:[#allocation3 + $0x48] sm:$0x7] %vm1705_vm2, %v1780_v34 }
 0x1df   :  { %1133 = vrot.lane.b32.xlu1 %v1132_v49, %s3597_s1  ;;  %v962_v25 = vpop.permute.xlu1 %961  ;;  %v1419_v49 = vld [vmem:[#allocation2 + $0x68] ss:$2 sm:$0x1f] }
 0x1e0   :  { %v955_v12 = vpop.permute.xlu0 %954  ;;  %1050 = vrot.lane.b32.xlu0 %v1049_v32, %s3596_s16 }
 0x1e1   :  { %957 = vst.msk [vmem:[#allocation3 + $0x8] sm:$0x1f] %vm898_vm7, %v955_v12  ;;  %v1568_v12 = vld [vmem:[#allocation2 + $0xa9] ss:$2 sm:$0x1f] }
 0x1e2   :  { %964 = vst.msk [vmem:[#allocation3 + $0x8] sm:$0x1f] %vm906_vm8, %v962_v25  ;;  %v1421_v25 = vrot.slane %v1419_v49, 4 }
 0x1e3   :  { %1259 = vrot.lane.b32.xlu1 %v1258_v60, %s3597_s1  ;;  %v1787_v60 = vrot.slane %v1785_v14, 2  ;;  %v1668_v14 = vld [vmem:[#allocation2 + $0xd0] ss:$2 sm:$0x1f] }
 0x1e4   :  { %1188 = vrot.lane.b32.xlu0 %v1187_v15, %s3596_s16  ;;  %1424 = vst.msk [vmem:[#allocation3 + $0x20] sm:$0xf0] %vm1423_vm13, %v1421_v25  ;;  %v1570_v15 = vrot.slane %v1568_v12, 7  ;;  %vm1297_vm13 = vcmask 388352  }
 0x1e5   :  { %1426 = vst.msk [vmem:[#allocation3 + $0x30] sm:$0x1] %vm1425_vm14, %v1421_v25  ;;  %vm1033_vm14 = vcmask 523653  }
 0x1e6   :  { %1573 = vst.msk [vmem:[#allocation3 + $0x30] sm:$0x3e] %vm1572_vm15, %v1570_v15  ;;  %v1812_v15 = vld [vmem:[#allocation2 + $0xea] ss:$2 sm:$0x1f]  ;;  %vm1035_vm15 = vcmask 517504  }
 0x1e7   :  { %1405 = vrot.lane.b32.xlu1 %v1404_v20, %s3597_s1  ;;  %v1699_v20 = vld [vmem:[#allocation2 + $0xc3] ss:$2 sm:$0x1f] }
 0x1e8   :  { %1322 = vrot.lane.b32.xlu0 %v1321_v33, %s3596_s16  ;;  %v1701_v28 = vrot.slane %v1699_v20, 2  ;;  %v1814_v20 = vrot.slane %v1812_v15, 2 }
 0x1e9   :  { %v969_v53 = vpop.permute.xlu1 %968 }
 0x1ea   :  { %971 = vst.msk [vmem:[#allocation3 + $0x8] sm:$0x1f] %vm914_vm9, %v969_v53  ;;  %v896_v56 = vpop.permute.xlu0 %895 }
 0x1eb   :  { %899 = vst.msk [vmem:[#allocation3] sm:$0x1f] %vm898_vm7, %v896_v56  ;;  %1142 = vrot.lane.b32.xlu1 %v1141_v54, %s3598_s17  ;;  %v1577_v54 = vrot.slane %v1575_v46, 7  ;;  %v1654_v56 = vrot.slane %v1652_v50, 7 }
 0x1ec   :  { %1060 = vrot.lane.b32.xlu0 %v1059_v62, %s3597_s1  ;;  %1704 = vst.msk [vmem:[#allocation3 + $0x30] sm:$0xc0] %vm1703_vm0, %v1701_v28  ;;  %v1707_v62 = vld [vmem:[#allocation2 + $0xc4] ss:$2 sm:$0x1f]  ;;  %vm1175_vm0 = vcmask 522626  }
 0x1ed   :  { %v976_v16 = vpop.permute.xlu1 %975  ;;  %1706 = vst.msk [vmem:[#allocation3 + $0x40] sm:$0x7] %vm1705_vm2, %v1701_v28  ;;  %v1709_v23 = vrot.slane %v1707_v62, 2  ;;  %v1457_v28 = vld [vmem:[#allocation2 + $0x75] ss:$2 sm:$0x1f] }
 0x1ee   :  { %978 = vst.msk [vmem:[#allocation3 + $0x8] sm:$0x1f] %vm922_vm10, %v976_v16  ;;  %v904_v24 = vpop.permute.xlu0 %903  ;;  %v1912_v16 = vrot.slane %v1910_v4, 5  ;;  %v1602_v50 = vld [vmem:[#allocation2 + $0xb6] ss:$2 sm:$0x1f] }
 0x1ef   :  { %907 = vst.msk [vmem:[#allocation3] sm:$0x1f] %vm906_vm8, %v904_v24  ;;  %1267 = vrot.lane.b32.xlu1 %v1266_v9, %s3598_s17  ;;  %v1794_v9 = vld [vmem:[#allocation2 + $0xdf] ss:$2 sm:$0x1f]  ;;  %vm1305_vm2 = vcmask 523655  }
 0x1f0   :  { %1196 = vrot.lane.b32.xlu0 %v1195_v27, %s3597_s1  ;;  %v2130_v24 = vld [vmem:[#allocation2 + $0x12b] ss:$2 sm:$0x1f]  ;;  %1914 = vst.msk [vmem:[#allocation3 + $0x48] sm:$0xf8] %vm1851_vm4, %v1912_v16  ;;  %v1796_v18 = vrot.slane %v1794_v9, 2 }
 0x1f1   :  { %v983_v41 = vpop.permute.xlu1 %982  ;;  %v2132_v26 = vrot.slane %v2130_v24, 3  ;;  %v1737_v9 = vld [vmem:[#allocation2 + $0xd0] ss:$2 sm:$0x1f]  ;;  %vm1307_vm4 = vcmask 519552  }
 0x1f2   :  { %985 = vst.msk [vmem:[#allocation3 + $0x8] sm:$0x1f] %vm930_vm11, %v983_v41  ;;  %v912_v11 = vpop.permute.xlu0 %911  ;;  %v1437_v41 = vld [vmem:[#allocation2 + $0x6a] ss:$2 sm:$0x1f]  ;;  %v1739_v47 = vrot.slane %v1737_v9, 2 }
 0x1f3   :  { %915 = vst.msk [vmem:[#allocation3] sm:$0x1f] %vm914_vm9, %v912_v11  ;;  %1414 = vrot.lane.b32.xlu1 %v1413_v43, %s3598_s17  ;;  %v2067_v43 = vld [vmem:[#allocation2 + $0x111] ss:$2 sm:$0x1f] }
 0x1f4   :  { %1332 = vrot.lane.b32.xlu0 %v1331_v1, %s3597_s1  ;;  %v2069_v48 = vrot.slane %v2067_v43, 3  ;;  %2134 = vst.msk [vmem:[#allocation3 + $0x58] sm:$0xe0] %vm1004_vm6, %v2132_v26  ;;  %v1439_v1 = vrot.slane %v1437_v41, 4 }
 0x1f5   :  { %v990_v59 = vpop.permute.xlu1 %989  ;;  %2135 = vst.msk [vmem:[#allocation3 + $0x68] sm:$0x3] %vm552_vm1, %v2132_v26  ;;  %v1821_v4 = vld [vmem:[#allocation2 + $0xeb] ss:$2 sm:$0x1f] }
 0x1f6   :  { %992 = vst.msk [vmem:[#allocation3 + $0x8] sm:$0x1f] %vm938_vm12, %v990_v59  ;;  %v920_v38 = vpop.permute.xlu0 %919  ;;  %v1586_v59 = vrot.slane %v1584_v39, 7  ;;  %v1823_v24 = vrot.slane %v1821_v4, 2 }
 0x1f7   :  { %923 = vst.msk [vmem:[#allocation3] sm:$0x1f] %vm922_vm10, %v920_v38  ;;  %1070 = vrot.lane.b32.xlu1 %v1069_v5, %s3598_s17  ;;  %v1611_v41 = vld [vmem:[#allocation2 + $0xb7] ss:$2 sm:$0x1f] }
 0x1f8   :  { %1204 = vrot.lane.b32.xlu0 %v1203_v21, %s3598_s17  ;;  %2071 = vst.msk [vmem:[#allocation3 + $0x50] sm:$0xe0] %vm1004_vm6, %v2069_v48  ;;  %v1719_v21 = vrot.slane %v1717_v0, 2  ;;  %vm1287_vm6 = vcmask 257152  }
 0x1f9   :  { %v997_v6 = vpop.permute.xlu1 %996  ;;  %2072 = vst.msk [vmem:[#allocation3 + $0x60] sm:$0x3] %vm552_vm1, %v2069_v48  ;;  %vm1159_vm1 = vcmask 260226   ;;  %v1684_v48 = vld [vmem:[#allocation2 + $0xd2] ss:$2 sm:$0x1f] }
 0x1fa   :  { %999 = vst.msk [vmem:[#allocation3 + $0x8] sm:$0x1f] %vm4920_vm3, %v997_v6  ;;  %v928_v32 = vpop.permute.xlu0 %927  ;;  %v1830_v39 = vld [vmem:[#allocation2 + $0xec] ss:$2 sm:$0x1f] }
 0x1fb   :  { %931 = vst.msk [vmem:[#allocation3] sm:$0x1f] %vm930_vm11, %v928_v32  ;;  %1342 = vrot.lane.b32.xlu1 %v1341_v10, %s3598_s17  ;;  %v1447_v10 = vld [vmem:[#allocation2 + $0x6b] ss:$2 sm:$0x1f]  ;;  %v1534_v32 = vrot.slane %v1532_v58, 4 }
 0x1fc   :  { %1508 = vrot.lane.b32.xlu0 %v1507_v45, %s3593_s3  ;;  %v1449_v35 = vrot.slane %v1447_v10, 4  ;;  %v1593_v45 = vld [vmem:[#allocation2 + $0xac] ss:$2 sm:$0x1f] }
 0x1fd   :  { %v2022_v19 = vpop.permute.xlu1 %2021  ;;  %v1595_v12 = vrot.slane %v1593_v45, 7  ;;  %v1559_v0 = vld [vmem:[#allocation2 + $0x92] ss:$2 sm:$0x1f] }
 0x1fe   :  { %2024 = vst.msk [vmem:[#allocation3 + $0x58] sm:$0x1f] %vm898_vm7, %v2022_v19  ;;  %v936_v55 = vpop.permute.xlu0 %935  ;;  %v1692_v10 = vld [vmem:[#allocation2 + $0xd3] ss:$2 sm:$0x1f] }
 0x1ff   :  { %939 = vst.msk [vmem:[#allocation3] sm:$0x1f] %vm938_vm12, %v936_v55  ;;  %1647 = vrot.lane.b32.xlu1 %v1646_v22, %s3593_s3  ;;  %v1670_v22 = vrot.slane %v1668_v14, 7  ;;  %v1839_v45 = vld [vmem:[#allocation2 + $0xed] ss:$2 sm:$0x1f] }
 0x200   :  { %1788 = vrot.lane.b32.xlu0 %v1787_v60, %s3593_s3  ;;  %v1727_v60 = vld [vmem:[#allocation2 + $0xc6] ss:$2 sm:$0x1f]  ;;  %v1924_v9 = vld [vmem:[#allocation2 + $0xf9] ss:$2 sm:$0x1f] }
 0x201   :  { %v1976_v33 = vpop.permute.xlu1 %1975  ;;  %v1729_v7 = vrot.slane %v1727_v60, 2  ;;  %v1629_v60 = vld [vmem:[#allocation2 + $0xb9] ss:$2 sm:$0x1f] }
 0x202   :  { %1978 = vst.msk [vmem:[#allocation3 + $0x50] sm:$0x1f] %vm898_vm7, %v1976_v33  ;;  %v944_v44 = vpop.permute.xlu0 %943  ;;  %vm1013_vm7 = vcmask 261253   ;;  %v1541_v33 = vld [vmem:[#allocation2 + $0x90] ss:$2 sm:$0x1f] }
 0x203   :  { %947 = vst.msk [vmem:[#allocation3] sm:$0x1f] %vm4920_vm3, %v944_v44  ;;  %1430 = vrot.lane.b32.xlu1 %v1429_v40, %s3593_s3  ;;  %v1543_v46 = vrot.slane %v1541_v33, 4 }
 0x204   :  { %1517 = vrot.lane.b32.xlu0 %v1516_v42, %s3592_s2  ;;  %v1459_v42 = vrot.slane %v1457_v28, 4  ;;  %v1916_v28 = vld [vmem:[#allocation2 + $0xf8] ss:$2 sm:$0x1f] }
 0x205   :  { %v1982_v53 = vpop.permute.xlu1 %1981 }
 0x206   :  { %1984 = vst.msk [vmem:[#allocation3 + $0x50] sm:$0x1f] %vm906_vm8, %v1982_v53  ;;  %v2029_v63 = vpop.permute.xlu0 %2028  ;;  %v1676_v53 = vld [vmem:[#allocation2 + $0xd1] ss:$2 sm:$0x1f] }
 0x207   :  { %2031 = vst.msk [vmem:[#allocation3 + $0x58] sm:$0x1f] %vm906_vm8, %v2029_v63  ;;  %1578 = vrot.lane.b32.xlu1 %v1577_v54, %s3593_s3  ;;  %vm1015_vm8 = vcmask 255104   ;;  %v1678_v63 = vrot.slane %v1676_v53, 7 }
 0x208   :  { %1655 = vrot.lane.b32.xlu0 %v1654_v56, %s3592_s2  ;;  %v1604_v56 = vrot.slane %v1602_v50, 7  ;;  %v2137_v50 = vld [vmem:[#allocation2 + $0x12c] ss:$2 sm:$0x1f] }
 0x209   :  { %v1988_v27 = vpop.permute.xlu1 %1987 }
 0x20a   :  { %1990 = vst.msk [vmem:[#allocation3 + $0x50] sm:$0x1f] %vm914_vm9, %v1988_v27  ;;  %v2036_v51 = vpop.permute.xlu0 %2035  ;;  %v1467_v27 = vld [vmem:[#allocation2 + $0x76] ss:$2 sm:$0x1f] }
 0x20b   :  { %2038 = vst.msk [vmem:[#allocation3 + $0x58] sm:$0x1f] %vm914_vm9, %v2036_v51  ;;  %1710 = vrot.lane.b32.xlu1 %v1709_v23, %s3593_s3  ;;  %vm1023_vm9 = vcmask 392453   ;;  %v1550_v23 = vld [vmem:[#allocation2 + $0x91] ss:$2 sm:$0x1f] }
 0x20c   :  { %1797 = vrot.lane.b32.xlu0 %v1796_v18, %s3592_s2  ;;  %v1469_v43 = vrot.slane %v1467_v27, 4  ;;  %v1552_v18 = vrot.slane %v1550_v23, 4  ;;  %v2146_v27 = vld [vmem:[#allocation2 + $0x12d] ss:$2 sm:$0x1f] }
 0x20d   :  { %v1994_v11 = vpop.permute.xlu1 %1993 }
 0x20e   :  { %1996 = vst.msk [vmem:[#allocation3 + $0x50] sm:$0x1f] %vm922_vm10, %v1994_v11  ;;  %v2043_v8 = vpop.permute.xlu0 %2042  ;;  %v1613_v11 = vrot.slane %v1611_v41, 7  ;;  %v1932_v41 = vld [vmem:[#allocation2 + $0xfa] ss:$2 sm:$0x1f] }
 0x20f   :  { %2045 = vst.msk [vmem:[#allocation3 + $0x58] sm:$0x1f] %vm922_vm10, %v2043_v8  ;;  %1440 = vrot.lane.b32.xlu1 %v1439_v1, %s3592_s2  ;;  %vm1025_vm10 = vcmask 386304   ;;  %v1686_v8 = vrot.slane %v1684_v48, 7 }
 0x210   :  { %1526 = vrot.lane.b32.xlu0 %v1525_v31, %s3594_s14  ;;  %v1747_v31 = vld [vmem:[#allocation2 + $0xd1] ss:$2 sm:$0x1f] }
 0x211   :  { %v2000_v36 = vpop.permute.xlu1 %1999 }
 0x212   :  { %2002 = vst.msk [vmem:[#allocation3 + $0x50] sm:$0x1f] %vm930_vm11, %v2000_v36  ;;  %v2050_v5 = vpop.permute.xlu0 %2049  ;;  %v1749_v36 = vrot.slane %v1747_v31, 2  ;;  %v2155_v31 = vld [vmem:[#allocation2 + $0x12e] ss:$2 sm:$0x1f] }
 0x213   :  { %2052 = vst.msk [vmem:[#allocation3 + $0x58] sm:$0x1f] %vm930_vm11, %v2050_v5  ;;  %1587 = vrot.lane.b32.xlu1 %v1586_v59, %s3592_s2  ;;  %vm1167_vm11 = vcmask 391426   ;;  %v1832_v5 = vrot.slane %v1830_v39, 2 }
 0x214   :  { %1663 = vrot.lane.b32.xlu0 %v1662_v57, %s3594_s14  ;;  %v1477_v57 = vld [vmem:[#allocation2 + $0x77] ss:$2 sm:$0x1f] }
 0x215   :  { %v2006_v38 = vpop.permute.xlu1 %2005 }
 0x216   :  { %2008 = vst.msk [vmem:[#allocation3 + $0x50] sm:$0x1f] %vm938_vm12, %v2006_v38  ;;  %v2057_v34 = vpop.permute.xlu0 %2056  ;;  %v1479_v38 = vrot.slane %v1477_v57, 4  ;;  %v1940_v57 = vld [vmem:[#allocation2 + $0x104] ss:$2 sm:$0x1f] }
 0x217   :  { %2059 = vst.msk [vmem:[#allocation3 + $0x58] sm:$0x1f] %vm938_vm12, %v2057_v34  ;;  %1720 = vrot.lane.b32.xlu1 %v1719_v21, %s3592_s2  ;;  %vm1295_vm12 = vcmask 392455   ;;  %v1561_v34 = vrot.slane %v1559_v0, 4 }
 0x218   :  { %1806 = vrot.lane.b32.xlu0 %v1805_v61, %s3594_s14  ;;  %v1620_v61 = vld [vmem:[#allocation2 + $0xb8] ss:$2 sm:$0x1f] }
 0x219   :  { %v1220_v6 = vpop.permute.xlu1 %1219 }
 0x21a   :  { %1222 = vst.msk [vmem:[#allocation3 + $0x18] sm:$0x7c] %vm1159_vm1, %v1220_v6  ;;  %v2064_v49 = vpop.permute.xlu0 %2063  ;;  %v1622_v6 = vrot.slane %v1620_v61, 7  ;;  %v2164_v61 = vld [vmem:[#allocation2 + $0x138] ss:$2 sm:$0x1f] }
 0x21b   :  { %2066 = vst.msk [vmem:[#allocation3 + $0x58] sm:$0x1f] %vm4920_vm3, %v2064_v49  ;;  %1450 = vrot.lane.b32.xlu1 %v1449_v35, %s3594_s14  ;;  %v1694_v49 = vrot.slane %v1692_v10, 7  ;;  %vm1327_vm3 = vcmask 781952  }
 0x21c   :  { %1535 = vrot.lane.b32.xlu0 %v1534_v32, %s3595_s15  ;;  %v1757_v32 = vld [vmem:[#allocation2 + $0xd2] ss:$2 sm:$0x1f] }
 0x21d   :  { %v1361_v25 = vpop.permute.xlu1 %1360 }
 0x21e   :  { %1363 = vst.msk [vmem:[#allocation3 + $0x18] sm:$0x80] %vm1285_vm5, %v1361_v25  ;;  %v1089_v19 = vpop.permute.xlu0 %1088 }
 0x21f   :  { %1364 = vst.msk [vmem:[#allocation3 + $0x28] sm:$0xf] %vm1287_vm6, %v1361_v25  ;;  %1596 = vrot.lane.b32.xlu1 %v1595_v12, %s3594_s14  ;;  %v1759_v25 = vrot.slane %v1757_v32, 2  ;;  %v1948_v32 = vld [vmem:[#allocation2 + $0x105] ss:$2 sm:$0x1f] }
 0x220   :  { %1091 = vst.msk [vmem:[#allocation3 + $0x8] sm:$0xe0] %vm1013_vm7, %v1089_v19  ;;  %1671 = vrot.lane.b32.xlu0 %v1670_v22, %s3595_s15  ;;  %v1487_v22 = vld [vmem:[#allocation2 + $0x78] ss:$2 sm:$0x1f] }
 0x221   :  { %1092 = vst.msk [vmem:[#allocation3 + $0x18] sm:$0x3] %vm1015_vm8, %v1089_v19  ;;  %v1098_v55 = vpop.permute.xlu1 %1097  ;;  %v1841_v19 = vrot.slane %v1839_v45, 2 }
 0x222   :  { %1100 = vst.msk [vmem:[#allocation3 + $0x8] sm:$0xe0] %vm1023_vm9, %v1098_v55  ;;  %v1011_v52 = vpop.permute.xlu0 %1010 }
 0x223   :  { %1101 = vst.msk [vmem:[#allocation3 + $0x18] sm:$0x3] %vm1025_vm10, %v1098_v55  ;;  %1730 = vrot.lane.b32.xlu1 %v1729_v7, %s3594_s14  ;;  %v1489_v55 = vrot.slane %v1487_v22, 4  ;;  %v1950_v22 = vrot.slane %v1948_v32, 5 }
 0x224   :  { %1014 = vst.msk [vmem:[#allocation3] sm:$0xe0] %vm1013_vm7, %v1011_v52  ;;  %1815 = vrot.lane.b32.xlu0 %v1814_v20, %s3595_s15  ;;  %v1767_v20 = vld [vmem:[#allocation2 + $0xd3] ss:$2 sm:$0x1f] }
 0x225   :  { %1016 = vst.msk [vmem:[#allocation3 + $0x10] sm:$0x3] %vm1015_vm8, %v1011_v52  ;;  %v1228_v40 = vpop.permute.xlu1 %1227  ;;  %v1631_v52 = vrot.slane %v1629_v60, 7 }
 0x226   :  { %1230 = vst.msk [vmem:[#allocation3 + $0x18] sm:$0x7c] %vm1167_vm11, %v1228_v40  ;;  %v1157_v44 = vpop.permute.xlu0 %1156  ;;  %v1769_v40 = vrot.slane %v1767_v20, 2 }
 0x227   :  { %1160 = vst.msk [vmem:[#allocation3 + $0x10] sm:$0x7c] %vm1159_vm1, %v1157_v44  ;;  %1460 = vrot.lane.b32.xlu1 %v1459_v42, %s3595_s15  ;;  %vm4928_vm1 = vcmask 654853   ;;  %v1918_v44 = vrot.slane %v1916_v28, 5 }
 0x228   :  { %1544 = vrot.lane.b32.xlu0 %v1543_v46, %s3596_s16  ;;  %v1853_v46 = vld [vmem:[#allocation2 + $0xde] ss:$2 sm:$0x1f] }
 0x229   :  { %v1370_v54 = vpop.permute.xlu1 %1369 }
 0x22a   :  { %1372 = vst.msk [vmem:[#allocation3 + $0x18] sm:$0x80] %vm1295_vm12, %v1370_v54  ;;  %v1283_v62 = vpop.permute.xlu0 %1282 }
 0x22b   :  { %1373 = vst.msk [vmem:[#allocation3 + $0x28] sm:$0xf] %vm1297_vm13, %v1370_v54  ;;  %1605 = vrot.lane.b32.xlu1 %v1604_v56, %s3595_s15  ;;  %v1855_v54 = vrot.slane %v1853_v46, 5 }
 0x22c   :  { %1286 = vst.msk [vmem:[#allocation3 + $0x10] sm:$0x80] %vm1285_vm5, %v1283_v62  ;;  %1679 = vrot.lane.b32.xlu0 %v1678_v63, %s3596_s16  ;;  %vm4921_vm5 = vcmask 648704   ;;  %v2073_v63 = vld [vmem:[#allocation2 + $0x112] ss:$2 sm:$0x1f] }
 0x22d   :  { %1288 = vst.msk [vmem:[#allocation3 + $0x20] sm:$0xf] %vm1287_vm6, %v1283_v62  ;;  %v1107_v16 = vpop.permute.xlu1 %1106  ;;  %vm1183_vm6 = vcmask 653826   ;;  %v2139_v62 = vrot.slane %v2137_v50, 3 }
 0x22e   :  { %1109 = vst.msk [vmem:[#allocation3 + $0x8] sm:$0xe0] %vm1033_vm14, %v1107_v16  ;;  %v1021_v17 = vpop.permute.xlu0 %1020 }
 0x22f   :  { %1110 = vst.msk [vmem:[#allocation3 + $0x18] sm:$0x3] %vm1035_vm15, %v1107_v16  ;;  %1740 = vrot.lane.b32.xlu1 %v1739_v47, %s3595_s15  ;;  %v2075_v16 = vrot.slane %v2073_v63, 3  ;;  %v2182_v63 = vld [vmem:[#allocation2 + $0x13a] ss:$2 sm:$0x1f] }
 0x230   :  { %1024 = vst.msk [vmem:[#allocation3] sm:$0xe0] %vm1023_vm9, %v1021_v17  ;;  %1824 = vrot.lane.b32.xlu0 %v1823_v24, %s3596_s16  ;;  %v1861_v24 = vld [vmem:[#allocation2 + $0xdf] ss:$2 sm:$0x1f] }
 0x231   :  { %1026 = vst.msk [vmem:[#allocation3 + $0x10] sm:$0x3] %vm1025_vm10, %v1021_v17  ;;  %v1236_v26 = vpop.permute.xlu1 %1235  ;;  %v1926_v17 = vrot.slane %v1924_v9, 5 }
 0x232   :  { %1238 = vst.msk [vmem:[#allocation3 + $0x18] sm:$0x7c] %vm1175_vm0, %v1236_v26  ;;  %v1165_v51 = vpop.permute.xlu0 %1164  ;;  %v1863_v26 = vrot.slane %v1861_v24, 5  ;;  %v1964_v24 = vld [vmem:[#allocation2 + $0x107] ss:$2 sm:$0x1f] }
 0x233   :  { %1168 = vst.msk [vmem:[#allocation3 + $0x10] sm:$0x7c] %vm1167_vm11, %v1165_v51  ;;  %1470 = vrot.lane.b32.xlu1 %v1469_v43, %s3596_s16  ;;  %vm1315_vm11 = vcmask 654855   ;;  %v2148_v51 = vrot.slane %v2146_v27, 3 }
 0x234   :  { %1553 = vrot.lane.b32.xlu0 %v1552_v18, %s3597_s1  ;;  %v2081_v18 = vld [vmem:[#allocation2 + $0x113] ss:$2 sm:$0x1f] }
 0x235   :  { %v1379_v3 = vpop.permute.xlu1 %1378 }
 0x236   :  { %1381 = vst.msk [vmem:[#allocation3 + $0x18] sm:$0x80] %vm1305_vm2, %v1379_v3  ;;  %v1293_v1 = vpop.permute.xlu0 %1292 }
 0x237   :  { %1382 = vst.msk [vmem:[#allocation3 + $0x28] sm:$0xf] %vm1307_vm4, %v1379_v3  ;;  %1614 = vrot.lane.b32.xlu1 %v1613_v11, %s3596_s16  ;;  %v2083_v3 = vrot.slane %v2081_v18, 3  ;;  %v2191_v18 = vld [vmem:[#allocation2 + $0x13b] ss:$2 sm:$0x1f] }
 0x238   :  { %1296 = vst.msk [vmem:[#allocation3 + $0x10] sm:$0x80] %vm1295_vm12, %v1293_v1  ;;  %1687 = vrot.lane.b32.xlu0 %v1686_v8, %s3597_s1  ;;  %vm1317_vm12 = vcmask 650752   ;;  %v1869_v8 = vld [vmem:[#allocation2 + $0xe0] ss:$2 sm:$0x1f] }
 0x239   :  { %1298 = vst.msk [vmem:[#allocation3 + $0x20] sm:$0xf] %vm1297_vm13, %v1293_v1  ;;  %v1116_v29 = vpop.permute.xlu1 %1115  ;;  %vm4922_vm13 = vcmask 786053   ;;  %v1934_v1 = vrot.slane %v1932_v41, 5 }
 0x23a   :  { %1118 = vst.msk [vmem:[#allocation3 + $0x8] sm:$0xe0] %vm4928_vm1, %v1116_v29  ;;  %v1031_v59 = vpop.permute.xlu0 %1030 }
 0x23b   :  { %1119 = vst.msk [vmem:[#allocation3 + $0x18] sm:$0x3] %vm4921_vm5, %v1116_v29  ;;  %1750 = vrot.lane.b32.xlu1 %v1749_v36, %s3596_s16  ;;  %v1871_v29 = vrot.slane %v1869_v8, 5 }
 0x23c   :  { %1034 = vst.msk [vmem:[#allocation3] sm:$0xe0] %vm1033_vm14, %v1031_v59  ;;  %1833 = vrot.lane.b32.xlu0 %v1832_v5, %s3597_s1  ;;  %v2089_v5 = vld [vmem:[#allocation2 + $0x114] ss:$2 sm:$0x1f] }
 0x23d   :  { %1036 = vst.msk [vmem:[#allocation3 + $0x10] sm:$0x3] %vm1035_vm15, %v1031_v59  ;;  %v1244_v2 = vpop.permute.xlu1 %1243  ;;  %v2157_v59 = vrot.slane %v2155_v31, 3 }
 0x23e   :  { %1246 = vst.msk [vmem:[#allocation3 + $0x18] sm:$0x7c] %vm1183_vm6, %v1244_v2  ;;  %v1173_v21 = vpop.permute.xlu0 %1172  ;;  %v2091_v2 = vrot.slane %v2089_v5, 3 }
 0x23f   :  { %1176 = vst.msk [vmem:[#allocation3 + $0x10] sm:$0x7c] %vm1175_vm0, %v1173_v21  ;;  %1480 = vrot.lane.b32.xlu1 %v1479_v38, %s3597_s1  ;;  %vm4923_vm0 = vcmask 779904   ;;  %v1942_v21 = vrot.slane %v1940_v57, 5 }
 0x240   :  { %1562 = vrot.lane.b32.xlu0 %v1561_v34, %s3598_s17  ;;  %v1877_v34 = vld [vmem:[#allocation2 + $0xea] ss:$2 sm:$0x1f] }
 0x241   :  { %v1388_v58 = vpop.permute.xlu1 %1387 }
 0x242   :  { %1390 = vst.msk [vmem:[#allocation3 + $0x18] sm:$0x80] %vm1315_vm11, %v1388_v58  ;;  %v1303_v35 = vpop.permute.xlu0 %1302 }
 0x243   :  { %1391 = vst.msk [vmem:[#allocation3 + $0x28] sm:$0xf] %vm1317_vm12, %v1388_v58  ;;  %1623 = vrot.lane.b32.xlu1 %v1622_v6, %s3597_s1  ;;  %v1879_v58 = vrot.slane %v1877_v34, 5 }
 0x244   :  { %1306 = vst.msk [vmem:[#allocation3 + $0x10] sm:$0x80] %vm1305_vm2, %v1303_v35  ;;  %1695 = vrot.lane.b32.xlu0 %v1694_v49, %s3598_s17  ;;  %vm1191_vm2 = vcmask 785026   ;;  %v2097_v49 = vld [vmem:[#allocation2 + $0x11e] ss:$2 sm:$0x1f] }
 0x245   :  { %1308 = vst.msk [vmem:[#allocation3 + $0x20] sm:$0xf] %vm1307_vm4, %v1303_v35  ;;  %v1125_v14 = vpop.permute.xlu1 %1124  ;;  %vm1325_vm4 = vcmask 786055   ;;  %v2166_v35 = vrot.slane %v2164_v61, 3 }
 0x246   :  { %1127 = vst.msk [vmem:[#allocation3 + $0x8] sm:$0xe0] %vm4922_vm13, %v1125_v14  ;;  %v1041_v12 = vpop.permute.xlu0 %1040 }
 0x247   :  { %1128 = vst.msk [vmem:[#allocation3 + $0x18] sm:$0x3] %vm4923_vm0, %v1125_v14  ;;  %1760 = vrot.lane.b32.xlu1 %v1759_v25, %s3597_s1  ;;  %v2099_v14 = vrot.slane %v2097_v49, 3 }
 0x248   :  { %1044 = vst.msk [vmem:[#allocation3] sm:$0xe0] %vm4928_vm1, %v1041_v12  ;;  %1842 = vrot.lane.b32.xlu0 %v1841_v19, %s3598_s17  ;;  %vm1745_vm1 = vcmask 649728  }
 0x249   :  { %1046 = vst.msk [vmem:[#allocation3 + $0x10] sm:$0x3] %vm4921_vm5, %v1041_v12  ;;  %v1252_v15 = vpop.permute.xlu1 %1251  ;;  %vm4927_vm5 = vcmask 911104  }
 0x24a   :  { %1254 = vst.msk [vmem:[#allocation3 + $0x18] sm:$0x7c] %vm1191_vm2, %v1252_v15  ;;  %v1181_v7 = vpop.permute.xlu0 %1180  ;;  %v1885_v15 = vld [vmem:[#allocation2 + $0xeb] ss:$2 sm:$0x1f] }
 0x24b   :  { %1184 = vst.msk [vmem:[#allocation3 + $0x10] sm:$0x7c] %vm1183_vm6, %v1181_v7  ;;  %1490 = vrot.lane.b32.xlu1 %v1489_v55, %s3598_s17  ;;  %vm4924_vm6 = vcmask 917253   ;;  %v2173_v55 = vld [vmem:[#allocation2 + $0x139] ss:$2 sm:$0x1f] }
 0x24c   :  { %1632 = vrot.lane.b32.xlu0 %v1631_v52, %s3598_s17  ;;  %v1887_v52 = vrot.slane %v1885_v15, 5  ;;  %v2175_v28 = vrot.slane %v2173_v55, 3 }
 0x24d   :  { %v1397_v33 = vpop.permute.xlu1 %1396 }
 0x24e   :  { %1399 = vst.msk [vmem:[#allocation3 + $0x18] sm:$0x80] %vm1325_vm4, %v1397_v33  ;;  %v1313_v42 = vpop.permute.xlu0 %1312 }
 0x24f   :  { %1400 = vst.msk [vmem:[#allocation3 + $0x28] sm:$0xf] %vm1327_vm3, %v1397_v33  ;;  %1770 = vrot.lane.b32.xlu1 %v1769_v40, %s3598_s17  ;;  %v2105_v33 = vld [vmem:[#allocation2 + $0x11f] ss:$2 sm:$0x1f] }
 0x250   :  { %1316 = vst.msk [vmem:[#allocation3 + $0x10] sm:$0x80] %vm1315_vm11, %v1313_v42  ;;  %1919 = vrot.lane.b32.xlu0 %v1918_v44, %s3593_s3  ;;  %vm1199_vm11 = vcmask 916226   ;;  %v1956_v40 = vld [vmem:[#allocation2 + $0x106] ss:$2 sm:$0x1f] }
 0x251   :  { %1318 = vst.msk [vmem:[#allocation3 + $0x20] sm:$0xf] %vm1317_vm12, %v1313_v42  ;;  %v1134_v53 = vpop.permute.xlu1 %1133  ;;  %vm1335_vm12 = vcmask 917255   ;;  %v2107_v44 = vrot.slane %v2105_v33, 3 }
 0x252   :  { %1136 = vst.msk [vmem:[#allocation3 + $0x8] sm:$0xe0] %vm4924_vm6, %v1134_v53  ;;  %v1051_v56 = vpop.permute.xlu0 %1050 }
 0x253   :  { %1137 = vst.msk [vmem:[#allocation3 + $0x18] sm:$0x3] %vm4927_vm5, %v1134_v53  ;;  %1856 = vrot.lane.b32.xlu1 %v1855_v54, %s3593_s3  ;;  %v1958_v54 = vrot.slane %v1956_v40, 5 }
 0x254   :  { %1054 = vst.msk [vmem:[#allocation3] sm:$0xe0] %vm4922_vm13, %v1051_v56  ;;  %2140 = vrot.lane.b32.xlu0 %v2139_v62, %s3593_s3  ;;  %vm1337_vm13 = vcmask 913152   ;;  %v1893_v62 = vld [vmem:[#allocation2 + $0xec] ss:$2 sm:$0x1f] }
 0x255   :  { %1056 = vst.msk [vmem:[#allocation3 + $0x10] sm:$0x3] %vm4923_vm0, %v1051_v56  ;;  %v1260_v4 = vpop.permute.xlu1 %1259  ;;  %vm4925_vm0 = vcmask 1042304  }
 0x256   :  { %1262 = vst.msk [vmem:[#allocation3 + $0x18] sm:$0x7c] %vm1199_vm11, %v1260_v4  ;;  %v1189_v47 = vpop.permute.xlu0 %1188  ;;  %v1895_v4 = vrot.slane %v1893_v62, 5 }
 0x257   :  { %1192 = vst.msk [vmem:[#allocation3 + $0x10] sm:$0x7c] %vm1191_vm2, %v1189_v47  ;;  %2076 = vrot.lane.b32.xlu1 %v2075_v16, %s3593_s3  ;;  %vm4926_vm2 = vcmask 1048453   ;;  %v2184_v47 = vrot.slane %v2182_v63, 3 }
 0x258   :  { %1927 = vrot.lane.b32.xlu0 %v1926_v17, %s3592_s2  ;;  %v2113_v17 = vld [vmem:[#allocation2 + $0x120] ss:$2 sm:$0x1f] }
 0x259   :  { %v1406_v23 = vpop.permute.xlu1 %1405 }
 0x25a   :  { %1408 = vst.msk [vmem:[#allocation3 + $0x18] sm:$0x80] %vm1335_vm12, %v1406_v23  ;;  %v1323_v43 = vpop.permute.xlu0 %1322 }
 0x25b   :  { %1409 = vst.msk [vmem:[#allocation3 + $0x28] sm:$0xf] %vm1337_vm13, %v1406_v23  ;;  %1864 = vrot.lane.b32.xlu1 %v1863_v26, %s3592_s2  ;;  %v2115_v23 = vrot.slane %v2113_v17, 3 }
 0x25c   :  { %1326 = vst.msk [vmem:[#allocation3 + $0x10] sm:$0x80] %vm1325_vm4, %v1323_v43  ;;  %2149 = vrot.lane.b32.xlu0 %v2148_v51, %s3592_s2  ;;  %vm1345_vm4 = vcmask 1048455   ;;  %v1901_v51 = vld [vmem:[#allocation2 + $0xed] ss:$2 sm:$0x1f] }
 0x25d   :  { %1328 = vst.msk [vmem:[#allocation3 + $0x20] sm:$0xf] %vm1327_vm3, %v1323_v43  ;;  %v1143_v48 = vpop.permute.xlu1 %1142  ;;  %vm1207_vm3 = vcmask 1047426   ;;  %v1966_v43 = vrot.slane %v1964_v24, 5 }
 0x25e   :  { %1145 = vst.msk [vmem:[#allocation3 + $0x8] sm:$0xe0] %vm4926_vm2, %v1143_v48  ;;  %v1061_v11 = vpop.permute.xlu0 %1060 }
 0x25f   :  { %1146 = vst.msk [vmem:[#allocation3 + $0x18] sm:$0x3] %vm4925_vm0, %v1143_v48  ;;  %2084 = vrot.lane.b32.xlu1 %v2083_v3, %s3592_s2  ;;  %v1903_v48 = vrot.slane %v1901_v51, 5 }
 0x260   :  { %1064 = vst.msk [vmem:[#allocation3] sm:$0xe0] %vm4924_vm6, %v1061_v11  ;;  %1935 = vrot.lane.b32.xlu0 %v1934_v1, %s3594_s14  ;;  %vm1347_vm6 = vcmask 1044352   ;;  %v2121_v1 = vld [vmem:[#allocation2 + $0x121] ss:$2 sm:$0x1f] }
 0x261   :  { %1066 = vst.msk [vmem:[#allocation3 + $0x10] sm:$0x3] %vm4927_vm5, %v1061_v11  ;;  %v1268_v39 = vpop.permute.xlu1 %1267  ;;  %vm1455_vm5 = vcmask 516480   ;;  %v2193_v11 = vrot.slane %v2191_v18, 3  ;;  %v2123_v31 = vrot.slane %v2121_v1, 3 }
 0x262   :  { %1270 = vst.msk [vmem:[#allocation3 + $0x18] sm:$0x7c] %vm1207_vm3, %v1268_v39  ;;  %v1197_v36 = vpop.permute.xlu0 %1196 }
 0x263   :  { %1200 = vst.msk [vmem:[#allocation3 + $0x10] sm:$0x7c] %vm1199_vm11, %v1197_v36  ;;  %1872 = vrot.lane.b32.xlu1 %v1871_v29, %s3594_s14  ;;  %vm1435_vm11 = vcmask 254080   ;;  %v2009_v29 = vld [vmem:[#allocation2 + $0x107] ss:$2 sm:$0x1f] }
 0x264   :  { %2158 = vrot.lane.b32.xlu0 %v2157_v59, %s3594_s14 }
 0x265   :  { %v1415_v0 = vpop.permute.xlu1 %1414  ;;  %v2200_v25 = vld [vmem:[#allocation3 + $0x8] sm:$0xff] }
 0x266   :  { %1417 = vst.msk [vmem:[#allocation3 + $0x18] sm:$0x80] %vm1345_vm4, %v1415_v0  ;;  %v1333_v38 = vpop.permute.xlu0 %1332 }
 0x267   :  { %1418 = vst.msk [vmem:[#allocation3 + $0x28] sm:$0xf] %vm1347_vm6, %v1415_v0  ;;  %2092 = vrot.lane.b32.xlu1 %v2091_v2, %s3594_s14 }
 0x268   :  { %1336 = vst.msk [vmem:[#allocation3 + $0x10] sm:$0x80] %vm1335_vm12, %v1333_v38  ;;  %1943 = vrot.lane.b32.xlu0 %v1942_v21, %s3595_s15  ;;  %vm1581_vm12 = vcmask 259201  }
 0x269   :  { %1338 = vst.msk [vmem:[#allocation3 + $0x20] sm:$0xf] %vm1337_vm13, %v1333_v38  ;;  %v1071_v10 = vpop.permute.xlu1 %1070  ;;  %vm1433_vm13 = vcmask 261252  }
 0x26a   :  { %1074 = vst.msk [vmem:[#allocation3] sm:$0xe0] %vm4926_vm2, %v1071_v10  ;;  %v1205_v6 = vpop.permute.xlu0 %1204  ;;  %vm1590_vm2 = vcmask 390401  }
 0x26b   :  { %1076 = vst.msk [vmem:[#allocation3 + $0x10] sm:$0x3] %vm4925_vm0, %v1071_v10  ;;  %1880 = vrot.lane.b32.xlu1 %v1879_v58, %s3595_s15  ;;  %vm1715_vm0 = vcmask 256128  }
 0x26c   :  { %1208 = vst.msk [vmem:[#allocation3 + $0x10] sm:$0x7c] %vm1207_vm3, %v1205_v6  ;;  %2167 = vrot.lane.b32.xlu0 %v2166_v35, %s3595_s15  ;;  %vm1713_vm3 = vcmask 261254  }
 0x26d   :  { %v1343_v45 = vpop.permute.xlu1 %1342  ;;  %v2202_v12 = vld [vmem:[#allocation3 + $0x18] sm:$0xff] }
 0x26e   :  { %1346 = vst.msk [vmem:[#allocation3 + $0x10] sm:$0x80] %vm1345_vm4, %v1343_v45  ;;  %v1509_v19 = vpop.permute.xlu0 %1508  ;;  %v2214_v60 = vpack.c.bf16 %v2202_v12, %v2200_v25  ;;  %vm1445_vm4 = vcmask 385280  }
 0x26f   :  { %1348 = vst.msk [vmem:[#allocation3 + $0x20] sm:$0xf] %vm1347_vm6, %v1343_v45  ;;  %2100 = vrot.lane.b32.xlu1 %v2099_v14, %s3595_s15  ;;  %vm1443_vm6 = vcmask 392452  }
 0x270   :  { %1511 = vst.msk [vmem:[#allocation3 + $0x28] sm:$0xf0] %vm1433_vm13, %v1509_v19  ;;  %1951 = vrot.lane.b32.xlu0 %v1950_v22, %s3596_s16  ;;  %2381 = vmatprep.mubr.bf16.mxu1 %v2214_v60 }
 0x271   :  { %1512 = vst.msk [vmem:[#allocation3 + $0x38] sm:$0x1] %vm1435_vm11, %v1509_v19  ;;  %v1648_v7 = vpop.permute.xlu1 %1647  ;;  %v2199_v46 = vld [vmem:[#allocation3] sm:$0xff] }
 0x272   :  { %1650 = vst.msk [vmem:[#allocation3 + $0x38] sm:$0x3e] %vm1581_vm12, %v1648_v7  ;;  %v1789_v20 = vpop.permute.xlu0 %1788 }
 0x273   :  { %1791 = vst.msk [vmem:[#allocation3 + $0x38] sm:$0xc0] %vm1713_vm3, %v1789_v20  ;;  %1888 = vrot.lane.b32.xlu1 %v1887_v52, %s3596_s16 }
 0x274   :  { %1792 = vst.msk [vmem:[#allocation3 + $0x48] sm:$0x7] %vm1715_vm0, %v1789_v20  ;;  %2176 = vrot.lane.b32.xlu0 %v2175_v28, %s3596_s16 }
 0x275   :  { %v1431_v42 = vpop.permute.xlu1 %1430  ;;  %v2201_v50 = vld [vmem:[#allocation3 + $0x10] sm:$0xff] }
 0x276   :  { %1434 = vst.msk [vmem:[#allocation3 + $0x20] sm:$0xf0] %vm1433_vm13, %v1431_v42  ;;  %v1518_v53 = vpop.permute.xlu0 %1517  ;;  %v2213_v56 = vpack.c.bf16 %v2201_v50, %v2199_v46  ;;  %vm1723_vm13 = vcmask 392454  }
 0x277   :  { %1436 = vst.msk [vmem:[#allocation3 + $0x30] sm:$0x1] %vm1435_vm11, %v1431_v42  ;;  %2108 = vrot.lane.b32.xlu1 %v2107_v44, %s3596_s16  ;;  %vm1725_vm11 = vcmask 387328  }
 0x278   :  { %1520 = vst.msk [vmem:[#allocation3 + $0x28] sm:$0xf0] %vm1443_vm6, %v1518_v53  ;;  %1959 = vrot.lane.b32.xlu0 %v1958_v54, %s3597_s1  ;;  %2382 = vmatmul.mubr.bf16.vlgmr.msra.gmra.mrb[0].mxu1 %v2213_v56 }
 0x279   :  { %1521 = vst.msk [vmem:[#allocation3 + $0x38] sm:$0x1] %vm1445_vm4, %v1518_v53  ;;  %v1579_v9 = vpop.permute.xlu1 %1578 }
 0x27a   :  { %1582 = vst.msk [vmem:[#allocation3 + $0x30] sm:$0x3e] %vm1581_vm12, %v1579_v9  ;;  %v1656_v16 = vpop.permute.xlu0 %1655  ;;  %vm1453_vm12 = vcmask 523652  }
 0x27b   :  { %1658 = vst.msk [vmem:[#allocation3 + $0x38] sm:$0x3e] %vm1590_vm2, %v1656_v16  ;;  %1896 = vrot.lane.b32.xlu1 %v1895_v4, %s3597_s1 }
 0x27c   :  { %2185 = vrot.lane.b32.xlu0 %v2184_v47, %s3597_s1 }
 0x27d   :  { %v1711_v27 = vpop.permute.xlu1 %1710 }
 0x27e   :  { %1714 = vst.msk [vmem:[#allocation3 + $0x30] sm:$0xc0] %vm1713_vm3, %v1711_v27  ;;  %v1798_v26 = vpop.permute.xlu0 %1797  ;;  %vm1733_vm3 = vcmask 523654  }
 0x27f   :  { %1716 = vst.msk [vmem:[#allocation3 + $0x40] sm:$0x7] %vm1715_vm0, %v1711_v27  ;;  %2116 = vrot.lane.b32.xlu1 %v2115_v23, %s3597_s1  ;;  %vm1599_vm0 = vcmask 521601  }
 0x280   :  { %1800 = vst.msk [vmem:[#allocation3 + $0x38] sm:$0xc0] %vm1723_vm13, %v1798_v26  ;;  %1967 = vrot.lane.b32.xlu0 %v1966_v43, %s3598_s17 }
 0x281   :  { %1801 = vst.msk [vmem:[#allocation3 + $0x48] sm:$0x7] %vm1725_vm11, %v1798_v26  ;;  %v1441_v41 = vpop.permute.xlu1 %1440 }
 0x282   :  { %1444 = vst.msk [vmem:[#allocation3 + $0x20] sm:$0xf0] %vm1443_vm6, %v1441_v41  ;;  %v1527_v3 = vpop.permute.xlu0 %1526  ;;  %vm1735_vm6 = vcmask 518528  }
 0x283   :  { %1446 = vst.msk [vmem:[#allocation3 + $0x30] sm:$0x1] %vm1445_vm4, %v1441_v41  ;;  %1904 = vrot.lane.b32.xlu1 %v1903_v48, %s3598_s17  ;;  %vm1465_vm4 = vcmask 647680  }
 0x284   :  { %1529 = vst.msk [vmem:[#allocation3 + $0x28] sm:$0xf0] %vm1453_vm12, %v1527_v3  ;;  %2194 = vrot.lane.b32.xlu0 %v2193_v11, %s3598_s17 }
 0x285   :  { %1530 = vst.msk [vmem:[#allocation3 + $0x38] sm:$0x1] %vm1455_vm5, %v1527_v3  ;;  %v1588_v8 = vpop.permute.xlu1 %1587 }
 0x286   :  { %1591 = vst.msk [vmem:[#allocation3 + $0x30] sm:$0x3e] %vm1590_vm2, %v1588_v8  ;;  %v1664_v39 = vpop.permute.xlu0 %1663  ;;  %vm1463_vm2 = vcmask 654852  }
 0x287   :  { %1666 = vst.msk [vmem:[#allocation3 + $0x38] sm:$0x3e] %vm1599_vm0, %v1664_v39  ;;  %2124 = vrot.lane.b32.xlu1 %v2123_v31, %s3598_s17 }
 0x288   :  { %2011 = vrot.lane.b32.xlu0 %v2009_v29, %s3598_s17 }
 0x289   :  { %v1721_v36 = vpop.permute.xlu1 %1720 }
 0x28a   :  { %1724 = vst.msk [vmem:[#allocation3 + $0x30] sm:$0xc0] %vm1723_vm13, %v1721_v36  ;;  %v1807_v59 = vpop.permute.xlu0 %1806  ;;  %vm1608_vm13 = vcmask 652801  }
 0x28b   :  { %1726 = vst.msk [vmem:[#allocation3 + $0x40] sm:$0x7] %vm1725_vm11, %v1721_v36  ;;  %vm1743_vm11 = vcmask 654854  }
 0x28c   :  { %1809 = vst.msk [vmem:[#allocation3 + $0x38] sm:$0xc0] %vm1733_vm3, %v1807_v59 }
 0x28d   :  { %1810 = vst.msk [vmem:[#allocation3 + $0x48] sm:$0x7] %vm1735_vm6, %v1807_v59  ;;  %v1451_v5 = vpop.permute.xlu1 %1450 }
 0x28e   :  { %1454 = vst.msk [vmem:[#allocation3 + $0x20] sm:$0xf0] %vm1453_vm12, %v1451_v5  ;;  %v1536_v57 = vpop.permute.xlu0 %1535  ;;  %vm1475_vm12 = vcmask 778880  }
 0x28f   :  { %1456 = vst.msk [vmem:[#allocation3 + $0x30] sm:$0x1] %vm1455_vm5, %v1451_v5  ;;  %vm1473_vm5 = vcmask 786052  }
 0x290   :  { %1538 = vst.msk [vmem:[#allocation3 + $0x28] sm:$0xf0] %vm1463_vm2, %v1536_v57 }
 0x291   :  { %1539 = vst.msk [vmem:[#allocation3 + $0x38] sm:$0x1] %vm1465_vm4, %v1536_v57  ;;  %v1597_v0 = vpop.permute.xlu1 %1596 }
 0x292   :  { %1600 = vst.msk [vmem:[#allocation3 + $0x30] sm:$0x3e] %vm1599_vm0, %v1597_v0  ;;  %v1672_v2 = vpop.permute.xlu0 %1671  ;;  %vm1617_vm0 = vcmask 784001  }
 0x293   :  { %1674 = vst.msk [vmem:[#allocation3 + $0x38] sm:$0x3e] %vm1608_vm13, %v1672_v2 }
 0x295   :  { %v1731_v38 = vpop.permute.xlu1 %1730 }
 0x296   :  { %1734 = vst.msk [vmem:[#allocation3 + $0x30] sm:$0xc0] %vm1733_vm3, %v1731_v38  ;;  %v1816_v21 = vpop.permute.xlu0 %1815  ;;  %vm1753_vm3 = vcmask 786054  }
 0x297   :  { %1736 = vst.msk [vmem:[#allocation3 + $0x40] sm:$0x7] %vm1735_vm6, %v1731_v38  ;;  %vm1755_vm6 = vcmask 780928  }
 0x298   :  { %1818 = vst.msk [vmem:[#allocation3 + $0x38] sm:$0xc0] %vm1743_vm11, %v1816_v21 }
 0x299   :  { %1819 = vst.msk [vmem:[#allocation3 + $0x48] sm:$0x7] %vm1745_vm1, %v1816_v21  ;;  %v1461_v34 = vpop.permute.xlu1 %1460 }
 0x29a   :  { %1464 = vst.msk [vmem:[#allocation3 + $0x20] sm:$0xf0] %vm1463_vm2, %v1461_v34  ;;  %v1545_v61 = vpop.permute.xlu0 %1544  ;;  %vm1483_vm2 = vcmask 917252  }
 0x29b   :  { %1466 = vst.msk [vmem:[#allocation3 + $0x30] sm:$0x1] %vm1465_vm4, %v1461_v34  ;;  %vm1485_vm4 = vcmask 910080  }
 0x29c   :  { %1547 = vst.msk [vmem:[#allocation3 + $0x28] sm:$0xf0] %vm1473_vm5, %v1545_v61 }
 0x29d   :  { %1548 = vst.msk [vmem:[#allocation3 + $0x38] sm:$0x1] %vm1475_vm12, %v1545_v61  ;;  %v1606_v10 = vpop.permute.xlu1 %1605 }
 0x29e   :  { %1609 = vst.msk [vmem:[#allocation3 + $0x30] sm:$0x3e] %vm1608_vm13, %v1606_v10  ;;  %v1680_v58 = vpop.permute.xlu0 %1679  ;;  %vm1626_vm13 = vcmask 915201  }
 0x29f   :  { %1682 = vst.msk [vmem:[#allocation3 + $0x38] sm:$0x3e] %vm1617_vm0, %v1680_v58 }
 0x2a1   :  { %v1741_v6 = vpop.permute.xlu1 %1740 }
 0x2a2   :  { %1744 = vst.msk [vmem:[#allocation3 + $0x30] sm:$0xc0] %vm1743_vm11, %v1741_v6  ;;  %v1825_v35 = vpop.permute.xlu0 %1824  ;;  %vm1765_vm11 = vcmask 912128  }
 0x2a3   :  { %1746 = vst.msk [vmem:[#allocation3 + $0x40] sm:$0x7] %vm1745_vm1, %v1741_v6  ;;  %vm1763_vm1 = vcmask 917254  }
 0x2a4   :  { %1827 = vst.msk [vmem:[#allocation3 + $0x38] sm:$0xc0] %vm1753_vm3, %v1825_v35 }
 0x2a5   :  { %1828 = vst.msk [vmem:[#allocation3 + $0x48] sm:$0x7] %vm1755_vm6, %v1825_v35  ;;  %v1471_v49 = vpop.permute.xlu1 %1470 }
 0x2a6   :  { %1474 = vst.msk [vmem:[#allocation3 + $0x20] sm:$0xf0] %vm1473_vm5, %v1471_v49  ;;  %v1554_v32 = vpop.permute.xlu0 %1553  ;;  %vm1493_vm5 = vcmask 1048452  }
 0x2a7   :  { %1476 = vst.msk [vmem:[#allocation3 + $0x30] sm:$0x1] %vm1475_vm12, %v1471_v49  ;;  %vm1495_vm12 = vcmask 1041280  }
 0x2a8   :  { %1556 = vst.msk [vmem:[#allocation3 + $0x28] sm:$0xf0] %vm1483_vm2, %v1554_v32 }
 0x2a9   :  { %1557 = vst.msk [vmem:[#allocation3 + $0x38] sm:$0x1] %vm1485_vm4, %v1554_v32  ;;  %v1615_v45 = vpop.permute.xlu1 %1614 }
 0x2aa   :  { %1618 = vst.msk [vmem:[#allocation3 + $0x30] sm:$0x3e] %vm1617_vm0, %v1615_v45  ;;  %v1688_v14 = vpop.permute.xlu0 %1687  ;;  %vm1635_vm0 = vcmask 1046401  }
 0x2ab   :  { %1690 = vst.msk [vmem:[#allocation3 + $0x38] sm:$0x3e] %vm1626_vm13, %v1688_v14 }
 0x2ad   :  { %v1751_v25 = vpop.permute.xlu1 %1750 }
 0x2ae   :  { %1754 = vst.msk [vmem:[#allocation3 + $0x30] sm:$0xc0] %vm1753_vm3, %v1751_v25  ;;  %v1834_v12 = vpop.permute.xlu0 %1833  ;;  %vm1773_vm3 = vcmask 1048454  }
 0x2af   :  { %1756 = vst.msk [vmem:[#allocation3 + $0x40] sm:$0x7] %vm1755_vm6, %v1751_v25  ;;  %vm1775_vm6 = vcmask 1043328  }
 0x2b0   :  { %1836 = vst.msk [vmem:[#allocation3 + $0x38] sm:$0xc0] %vm1763_vm1, %v1834_v12 }
 0x2b1   :  { %1837 = vst.msk [vmem:[#allocation3 + $0x48] sm:$0x7] %vm1765_vm11, %v1834_v12  ;;  %v1481_v19 = vpop.permute.xlu1 %1480 }
 0x2b2   :  { %1484 = vst.msk [vmem:[#allocation3 + $0x20] sm:$0xf0] %vm1483_vm2, %v1481_v19  ;;  %v1563_v22 = vpop.permute.xlu0 %1562  ;;  %vm1859_vm2 = vcmask 261251  }
 0x2b3   :  { %1486 = vst.msk [vmem:[#allocation3 + $0x30] sm:$0x1] %vm1485_vm4, %v1481_v19  ;;  %vm1867_vm4 = vcmask 392451  }
 0x2b4   :  { %1565 = vst.msk [vmem:[#allocation3 + $0x28] sm:$0xf0] %vm1493_vm5, %v1563_v22 }
 0x2b5   :  { %1566 = vst.msk [vmem:[#allocation3 + $0x38] sm:$0x1] %vm1495_vm12, %v1563_v22  ;;  %v1624_v60 = vpop.permute.xlu1 %1623 }
 0x2b6   :  { %1627 = vst.msk [vmem:[#allocation3 + $0x30] sm:$0x3e] %vm1626_vm13, %v1624_v60  ;;  %v1696_v15 = vpop.permute.xlu0 %1695  ;;  %vm1875_vm13 = vcmask 523651  }
 0x2b7   :  { %1698 = vst.msk [vmem:[#allocation3 + $0x38] sm:$0x3e] %vm1635_vm0, %v1696_v15 }
 0x2b9   :  { %v1761_v55 = vpop.permute.xlu1 %1760 }
 0x2ba   :  { %1764 = vst.msk [vmem:[#allocation3 + $0x30] sm:$0xc0] %vm1763_vm1, %v1761_v55  ;;  %v1843_v7 = vpop.permute.xlu0 %1842 }
 0x2bb   :  { %1766 = vst.msk [vmem:[#allocation3 + $0x40] sm:$0x7] %vm1765_vm11, %v1761_v55  ;;  %v2204_v40 = vld [vmem:[#allocation3 + $0x28] sm:$0xff] }
 0x2bc   :  { %1845 = vst.msk [vmem:[#allocation3 + $0x38] sm:$0xc0] %vm1773_vm3, %v1843_v7 }
 0x2bd   :  { %1846 = vst.msk [vmem:[#allocation3 + $0x48] sm:$0x7] %vm1775_vm6, %v1843_v7  ;;  %v1491_v52 = vpop.permute.xlu1 %1490 }
 0x2be   :  { %1494 = vst.msk [vmem:[#allocation3 + $0x20] sm:$0xf0] %vm1493_vm5, %v1491_v52  ;;  %v1633_v20 = vpop.permute.xlu0 %1632  ;;  %vm1899_vm5 = vcmask 917251  }
 0x2bf   :  { %1496 = vst.msk [vmem:[#allocation3 + $0x30] sm:$0x1] %vm1495_vm12, %v1491_v52 }
 0x2c0   :  { %1636 = vst.msk [vmem:[#allocation3 + $0x30] sm:$0x3e] %vm1635_vm0, %v1633_v20 }
 0x2c1   :  { %v1771_v28 = vpop.permute.xlu1 %1770 }
 0x2c2   :  { %1774 = vst.msk [vmem:[#allocation3 + $0x30] sm:$0xc0] %vm1773_vm3, %v1771_v28  ;;  %v1920_v33 = vpop.permute.xlu0 %1919  ;;  %vm4937_vm3 = vcmask 917253  }
 0x2c3   :  { %1776 = vst.msk [vmem:[#allocation3 + $0x40] sm:$0x7] %vm1775_vm6, %v1771_v28  ;;  %v2206_v42 = vld [vmem:[#allocation3 + $0x38] sm:$0xff]  ;;  %vm4938_vm6 = vcmask 911104  }
 0x2c4   :  { %1922 = vst.msk [vmem:[#allocation3 + $0x48] sm:$0xf8] %vm1859_vm2, %v1920_v33  ;;  %v2216_v44 = vpack.c.bf16 %v2206_v42, %v2204_v40 }
 0x2c5   :  { %v1857_v46 = vpop.permute.xlu1 %1856  ;;  %v2203_v54 = vld [vmem:[#allocation3 + $0x20] sm:$0xff] }
 0x2c6   :  { %2389 = vmatprep.mubr.bf16.mxu1 %v2216_v44  ;;  %1860 = vst.msk [vmem:[#allocation3 + $0x40] sm:$0xf8] %vm1859_vm2, %v1857_v46  ;;  %v2141_v50 = vpop.permute.xlu0 %2140  ;;  %vm1907_vm2 = vcmask 1048451  }
 0x2c7   :  { %2143 = vst.msk [vmem:[#allocation3 + $0x58] sm:$0xe0] %vm1013_vm7, %v2141_v50 }
 0x2c8   :  { %2144 = vst.msk [vmem:[#allocation3 + $0x68] sm:$0x3] %vm1015_vm8, %v2141_v50 }
 0x2c9   :  { %v2077_v53 = vpop.permute.xlu1 %2076  ;;  %v2205_v56 = vld [vmem:[#allocation3 + $0x30] sm:$0xff] }
 0x2ca   :  { %2079 = vst.msk [vmem:[#allocation3 + $0x50] sm:$0xe0] %vm1013_vm7, %v2077_v53  ;;  %v1928_v62 = vpop.permute.xlu0 %1927  ;;  %v2215_v63 = vpack.c.bf16 %v2205_v56, %v2203_v54  ;;  %vm1883_vm7 = vcmask 654851  }
 0x2cb   :  { %2080 = vst.msk [vmem:[#allocation3 + $0x60] sm:$0x3] %vm1015_vm8, %v2077_v53  ;;  %vm4929_vm8 = vcmask 654853  }
 0x2cc   :  { %1930 = vst.msk [vmem:[#allocation3 + $0x48] sm:$0xf8] %vm1867_vm4, %v1928_v62  ;;  %2390 = vmatmul.mubr.bf16.gmra.mrb[4].mxu1 %v2215_v63  ;;  %vm4931_vm1 = vmmov %vm4929_vm8 }
 0x2cd   :  { %v1865_v9 = vpop.permute.xlu1 %1864 }
 0x2ce   :  { %1868 = vst.msk [vmem:[#allocation3 + $0x40] sm:$0xf8] %vm1867_vm4, %v1865_v9  ;;  %v2150_v4 = vpop.permute.xlu0 %2149  ;;  %vm4939_vm4 = vmmov %vm4937_vm3 }
 0x2cf   :  { %2152 = vst.msk [vmem:[#allocation3 + $0x58] sm:$0xe0] %vm1023_vm9, %v2150_v4 }
 0x2d0   :  { %2153 = vst.msk [vmem:[#allocation3 + $0x68] sm:$0x3] %vm1025_vm10, %v2150_v4 }
 0x2d1   :  { %v2085_v16 = vpop.permute.xlu1 %2084 }
 0x2d2   :  { %2087 = vst.msk [vmem:[#allocation3 + $0x50] sm:$0xe0] %vm1023_vm9, %v2085_v16  ;;  %v1936_v47 = vpop.permute.xlu0 %1935  ;;  %vm4930_vm9 = vcmask 648704  }
 0x2d3   :  { %2088 = vst.msk [vmem:[#allocation3 + $0x60] sm:$0x3] %vm1025_vm10, %v2085_v16  ;;  %vm1891_vm10 = vcmask 786051   ;;  %vm4932_vm11 = vmmov %vm4930_vm9 }
 0x2d4   :  { %1938 = vst.msk [vmem:[#allocation3 + $0x48] sm:$0xf8] %vm1875_vm13, %v1936_v47  ;;  %v3553_v47 = vld [vmem:[%s4915_s7 + $0xc0] sm:$0xff]  }
 0x2d5   :  { %v1873_v17 = vpop.permute.xlu1 %1872  ;;  %3438 = vmatprep.subr.bf16.mxu0 %v3553_v47 }
 0x2d6   :  { %1876 = vst.msk [vmem:[#allocation3 + $0x40] sm:$0xf8] %vm1875_vm13, %v1873_v17  ;;  %v2159_v24 = vpop.permute.xlu0 %2158  ;;  %vm4940_vm13 = vmmov %vm4938_vm6  ;;  %v3554_v17 = vld [vmem:[%s4915_s7 + $0x80] sm:$0xff]  }
 0x2d7   :  { %2161 = vst.msk [vmem:[#allocation3 + $0x58] sm:$0xe0] %vm1033_vm14, %v2159_v24  ;;  %3439 = vmatpush3.bf16.msra.mxu0 %v3554_v17 }
 0x2d8   :  { %2162 = vst.msk [vmem:[#allocation3 + $0x68] sm:$0x3] %vm1035_vm15, %v2159_v24  ;;  %v3555_v24 = vld [vmem:[%s4915_s7 + $0xc8] sm:$0xff]  }
 0x2d9   :  { %v2093_v27 = vpop.permute.xlu1 %2092  ;;  %3440 = vmatprep.subr.bf16.mxu0 %v3555_v24 }
 0x2da   :  { %2095 = vst.msk [vmem:[#allocation3 + $0x50] sm:$0xe0] %vm1033_vm14, %v2093_v27  ;;  %v1944_v23 = vpop.permute.xlu0 %1943  ;;  %vm4933_vm14 = vcmask 786053  }
 0x2db   :  { %2096 = vst.msk [vmem:[#allocation3 + $0x60] sm:$0x3] %vm1035_vm15, %v2093_v27  ;;  %vm4934_vm15 = vcmask 779904   ;;  %vm4935_vm12 = vmmov %vm4933_vm14  ;;  %v3556_v27 = vld [vmem:[%s4915_s7 + $0x88] sm:$0xff]  }
 0x2dc   :  { %1946 = vst.msk [vmem:[#allocation3 + $0x48] sm:$0xf8] %vm1883_vm7, %v1944_v23  ;;  %vm4936_vm0 = vmmov %vm4934_vm15  ;;  %v3557_v23 = vld [vmem:[%s4915_s7 + $0xd0] sm:$0xff]   ;;  %3441 = vmatpush3.bf16.msra.mxu0 %v3556_v27 }
 0x2dd   :  { %v1881_v26 = vpop.permute.xlu1 %1880  ;;  %3442 = vmatprep.subr.bf16.mxu0 %v3557_v23 }
 0x2de   :  { %1884 = vst.msk [vmem:[#allocation3 + $0x40] sm:$0xf8] %vm1883_vm7, %v1881_v26  ;;  %v2168_v43 = vpop.permute.xlu0 %2167  ;;  %vm4941_vm7 = vcmask 1048453   ;;  %v3558_v26 = vld [vmem:[%s4915_s7 + $0x90] sm:$0xff]  }
 0x2df   :  { %2170 = vst.msk [vmem:[#allocation3 + $0x58] sm:$0xe0] %vm4929_vm8, %v2168_v43  ;;  %vm4942_vm8 = vcmask 1042304  }
 0x2e0   :  { %2171 = vst.msk [vmem:[#allocation3 + $0x68] sm:$0x3] %vm4930_vm9, %v2168_v43  ;;  %vm4943_vm9 = vmmov %vm4941_vm7  ;;  %3443 = vmatpush3.bf16.msra.mxu0 %v3558_v26 }
 0x2e1   :  { %v2101_v51 = vpop.permute.xlu1 %2100 }
 0x2e2   :  { %2103 = vst.msk [vmem:[#allocation3 + $0x50] sm:$0xe0] %vm4931_vm1, %v2101_v51  ;;  %v1952_v18 = vpop.permute.xlu0 %1951  ;;  %vm4945_vm1 = vcmask 1045376  }
 0x2e3   :  { %2104 = vst.msk [vmem:[#allocation3 + $0x60] sm:$0x3] %vm4932_vm11, %v2101_v51  ;;  %vm2415_vm11 = vcmask 261120  }
 0x2e4   :  { %1954 = vst.msk [vmem:[#allocation3 + $0x48] sm:$0xf8] %vm1891_vm10, %v1952_v18 }
 0x2e5   :  { %v1889_v41 = vpop.permute.xlu1 %1888 }
 0x2e6   :  { %1892 = vst.msk [vmem:[#allocation3 + $0x40] sm:$0xf8] %vm1891_vm10, %v1889_v41  ;;  %v2177_v48 = vpop.permute.xlu0 %2176  ;;  %vm4944_vm10 = vmmov %vm4942_vm8 }
 0x2e7   :  { %2179 = vst.msk [vmem:[#allocation3 + $0x58] sm:$0xe0] %vm4933_vm14, %v2177_v48  ;;  %vm2427_vm14 = vcmask 254976  }
 0x2e8   :  { %2180 = vst.msk [vmem:[#allocation3 + $0x68] sm:$0x3] %vm4934_vm15, %v2177_v48  ;;  %vm2513_vm15 = vcmask 253952  }
 0x2e9   :  { %v2109_v3 = vpop.permute.xlu1 %2108 }
 0x2ea   :  { %2111 = vst.msk [vmem:[#allocation3 + $0x50] sm:$0xe0] %vm4935_vm12, %v2109_v3  ;;  %v1960_v11 = vpop.permute.xlu0 %1959  ;;  %vm2543_vm12 = vcmask 778752  }
 0x2eb   :  { %2112 = vst.msk [vmem:[#allocation3 + $0x60] sm:$0x3] %vm4936_vm0, %v2109_v3  ;;  %vm2558_vm0 = vcmask 1041152  }
 0x2ec   :  { %1962 = vst.msk [vmem:[#allocation3 + $0x48] sm:$0xf8] %vm1899_vm5, %v1960_v11 }
 0x2ed   :  { %v1897_v1 = vpop.permute.xlu1 %1896 }
 0x2ee   :  { %1900 = vst.msk [vmem:[#allocation3 + $0x40] sm:$0xf8] %vm1899_vm5, %v1897_v1  ;;  %v2186_v8 = vpop.permute.xlu0 %2185  ;;  %vm2528_vm5 = vcmask 516352  }
 0x2ef   :  { %2188 = vst.msk [vmem:[#allocation3 + $0x58] sm:$0xe0] %vm4937_vm3, %v2186_v8 }
 0x2f0   :  { %2189 = vst.msk [vmem:[#allocation3 + $0x68] sm:$0x3] %vm4938_vm6, %v2186_v8  ;;  %vm3253_vm6 = vcmask 517120  }
 0x2f1   :  { %v2117_v31 = vpop.permute.xlu1 %2116 }
 0x2f2   :  { %2119 = vst.msk [vmem:[#allocation3 + $0x50] sm:$0xe0] %vm4939_vm4, %v2117_v31  ;;  %v1968_v39 = vpop.permute.xlu0 %1967 }
 0x2f3   :  { %2120 = vst.msk [vmem:[#allocation3 + $0x60] sm:$0x3] %vm4940_vm13, %v2117_v31 }
 0x2f4   :  { %1970 = vst.msk [vmem:[#allocation3 + $0x48] sm:$0xf8] %vm1907_vm2, %v1968_v39 }
 0x2f5   :  { %v1905_v29 = vpop.permute.xlu1 %1904 }
 0x2f6   :  { %1908 = vst.msk [vmem:[#allocation3 + $0x40] sm:$0xf8] %vm1907_vm2, %v1905_v29  ;;  %v2195_v36 = vpop.permute.xlu0 %2194 }
 0x2f7   :  { %2197 = vst.msk [vmem:[#allocation3 + $0x58] sm:$0xe0] %vm4941_vm7, %v2195_v36 }
 0x2f8   :  { %2198 = vst.msk [vmem:[#allocation3 + $0x68] sm:$0x3] %vm4942_vm8, %v2195_v36 }
 0x2f9   :  { %v2125_v59 = vpop.permute.xlu1 %2124 }
 0x2fa   :  { %2127 = vst.msk [vmem:[#allocation3 + $0x50] sm:$0xe0] %vm4943_vm9, %v2125_v59  ;;  %v2012_v5 = vpop.permute.xlu0 %2011 }
 0x2fb   :  { %2128 = vst.msk [vmem:[#allocation3 + $0x60] sm:$0x3] %vm4944_vm10, %v2125_v59  ;;  %v2208_v57 = vld [vmem:[#allocation3 + $0x48] sm:$0xff] }
 0x2fc   :  { %2014 = vst.msk [vmem:[#allocation3 + $0x50] sm:$0x1f] %vm4945_vm1, %v2012_v5 }
 0x2fd   :  { %v2207_v21 = vld [vmem:[#allocation3 + $0x40] sm:$0xff] }
 0x2fe   :  { %v2210_v0 = vld [vmem:[#allocation3 + $0x58] sm:$0xff] }
 0x2ff   :  { %v2218_v2 = vpack.c.bf16 %v2210_v0, %v2208_v57  ;;  %v2212_v38 = vld [vmem:[#allocation3 + $0x68] sm:$0x3] }
 0x300   :  { %v2220_v10 = vpack.c.bf16 %v2212_v38, %v2212_v38 }
 0x301   :  { %2397 = vmatprep.mubr.bf16.mxu1 %v2218_v2 }
 0x302   :  { %v2211_v58 = vld [vmem:[#allocation3 + $0x60] sm:$0x3] }
 0x303   :  { %v2209_v34 = vld [vmem:[#allocation3 + $0x50] sm:$0xff]  ;;  %v2219_v6 = vpack.c.bf16 %v2211_v58, %v2211_v58 }
 0x304   :  { %v2217_v61 = vpack.c.bf16 %v2209_v34, %v2207_v21 }
 0x306   :  { %2398 = vmatmul.mubr.bf16.gmra.mrb[8].mxu1 %v2217_v61 }
 0x307   :  { %2405 = vmatprep.mubr.bf16.mxu1 %v2220_v10 }
 0x30e   :  { %2406 = vmatmul.mubr.bf16.gmra.mrb[12].mxu1 %v2219_v6 }
 0x34b   :  { %v3392_v35 = vpop.f32.mrb[0].mxu1 }
 0x34c   :  { %v3393_v49 = vpop.f32.mrb[1].mxu1 }
 0x34d   :  { %v4672_v32 = vadd.f32 %v3393_v49, %v3392_v35  ;;  %v3395_v45 = vpop.f32.mrb[2].mxu1 }
 0x34e   :  { %v3396_v14 = vpop.f32.mrb[3].mxu1 }
 0x34f   :  { %v2436_v25 = vmul.f32 %v4672_v32, %v4672_v32  ;;  %v4676_v12 = vadd.f32 %v3396_v14, %v3395_v45  ;;  %v2416_v19 = vsel %vm2415_vm11, %v4672_v32, 0.0 }
 0x351   :  { %v2417_v22 = vsel %vm2415_vm11, %v4676_v12, 0.0  ;;  %v2437_v60 = vmul.f32 %v4676_v12, %v4676_v12  ;;  %v2443_v55 = vsel %vm2415_vm11, %v2436_v25, 0.0 }
 0x352   :  { %v2418_v15 = vadd.f32 %v2417_v22, %v2416_v19 }
 0x353   :  { %v2444_v7 = vsel %vm2415_vm11, %v2437_v60, 0.0 }
 0x354   :  { %v2445_v52 = vadd.f32 %v2444_v7, %v2443_v55 }
 0x39f   :  { %v3398_v20 = vpop.f32.mrb[4].mxu1 }
 0x3a0   :  { %v3399_v28 = vpop.f32.mrb[5].mxu1 }
 0x3a1   :  { %v4686_v33 = vadd.f32 %v3399_v28, %v3398_v20  ;;  %v3401_v40 = vpop.f32.mrb[6].mxu1 }
 0x3a2   :  { %v3402_v42 = vpop.f32.mrb[7].mxu1 }
 0x3a3   :  { %v2419_v44 = vsel %vm2415_vm11, %v4686_v33, 0.0  ;;  %v2438_v46 = vmul.f32 %v4686_v33, %v4686_v33  ;;  %v4692_v50 = vadd.f32 %v3402_v42, %v3401_v40 }
 0x3a4   :  { %v2420_v53 = vadd.f32 %v2419_v44, %v2418_v15 }
 0x3a5   :  { %v2446_v54 = vsel %vm2415_vm11, %v2438_v46, 0.0  ;;  %v2421_v56 = vsel %vm2415_vm11, %v4692_v50, 0.0  ;;  %v2439_v62 = vmul.f32 %v4692_v50, %v4692_v50 }
 0x3a6   :  { %v2447_v63 = vadd.f32 %v2446_v54, %v2445_v52  ;;  %v2422_v9 = vadd.f32 %v2421_v56, %v2420_v53  ;;  %v2413_v54 = vld [vmem:[%s4916_s5] sm:$0x1] }
 0x3a7   :  { %v2448_v4 = vsel %vm2415_vm11, %v2439_v62, 0.0 }
 0x3a8   :  { %v2449_v16 = vadd.f32 %v2448_v4, %v2447_v63  ;;  %v2414_v63 = vld [vmem:[%s4917_s6] sm:$0x1] }
 0x3d9   :  { %v3404_v43 = vpop.f32.mrb[8].mxu1 }
 0x3da   :  { %v3405_v51 = vpop.f32.mrb[9].mxu1 }
 0x3db   :  { %v3406_v18 = vadd.f32 %v3405_v51, %v3404_v43  ;;  %v3407_v41 = vpop.f32.mrb[10].mxu1  ;;  %v3599_v51 = vmov 1983009808  }
 0x3dc   :  { %v3408_v48 = vpop.f32.mrb[11].mxu1 }
 0x3dd   :  { %v2423_v3 = vsel %vm2415_vm11, %v3406_v18, 0.0  ;;  %v2440_v11 = vmul.f32 %v3406_v18, %v3406_v18  ;;  %v3409_v1 = vadd.f32 %v3408_v48, %v3407_v41  ;;  %v2519_v41 = vunpack.c.l.s4 %v3599_v51 }
 0x3de   :  { %v2424_v8 = vadd.f32 %v2423_v3, %v2422_v9 }
 0x3df   :  { %v2450_v31 = vsel %vm2415_vm11, %v2440_v11, 0.0  ;;  %v2425_v39 = vsel %vm2415_vm11, %v3409_v1, 0.0  ;;  %v2441_v29 = vmul.f32 %v3409_v1, %v3409_v1 }
 0x3e0   :  { %v2451_v36 = vadd.f32 %v2450_v31, %v2449_v16  ;;  %v2426_v59 = vadd.f32 %v2425_v39, %v2424_v8 }
 0x3e1   :  { %v2452_v5 = vsel %vm2415_vm11, %v2441_v29, 0.0  ;;  %v3410_v57 = vpop.f32.mrb[12].mxu1 }
 0x3e2   :  { %v2453_v0 = vadd.f32 %v2452_v5, %v2451_v36  ;;  %v3411_v2 = vpop.f32.mrb[13].mxu1 }
 0x3e3   :  { %v3412_v38 = vadd.f32 %v3411_v2, %v3410_v57  ;;  %v3413_v21 = vpop.f32.mrb[14].mxu1 }
 0x3e4   :  { %v3414_v34 = vpop.f32.mrb[15].mxu1 }
 0x3e5   :  { %v2428_v61 = vsel %vm2427_vm14, %v3412_v38, 0.0  ;;  %v2442_v10 = vmul.f32 %v3412_v38, %v3412_v38 }
 0x3e6   :  { %v2429_v58 = vadd.f32 %v2428_v61, %v2426_v59 }
 0x3e7   :  { %v2454_v6 = vsel %vm2427_vm14, %v2442_v10, 0.0 }
 0x3e8   :  { %v2430_v35 = vrot.slane %v2429_v58, 4  ;;  %v2455_v49 = vadd.f32 %v2454_v6, %v2453_v0 }
 0x3ea   :  { %v2431_v45 = vadd.f32 %v2430_v35, %v2429_v58  ;;  %v2456_v14 = vrot.slane %v2455_v49, 4 }
 0x3ec   :  { %v2432_v25 = vrot.slane %v2431_v45, 2  ;;  %v2457_v19 = vadd.f32 %v2456_v14, %v2455_v49 }
 0x3ee   :  { %v2433_v22 = vadd.f32 %v2432_v25, %v2431_v45  ;;  %v2458_v60 = vrot.slane %v2457_v19, 2 }
 0x3f0   :  { %v2434_v15 = vrot.slane %v2433_v22, 1  ;;  %v2459_v55 = vadd.f32 %v2458_v60, %v2457_v19 }
 0x3f2   :  { %v2435_v7 = vadd.f32 %v2434_v15, %v2433_v22  ;;  %v2460_v52 = vrot.slane %v2459_v55, 1 }
 0x3f4   :  { %v2461_v20 = vadd.f32 %v2460_v52, %v2459_v55  ;;  %v2462_v28 = vmul.f32 0.02, %v2435_v7 }
 0x3f6   :  { %v2463_v40 = vmul.f32 0.02, %v2461_v20  ;;  %v2464_v42 = vmul.f32 %v2462_v28, %v2462_v28 }
 0x3f8   :  { %v2465_v44 = vsub.f32 %v2463_v40, %v2464_v42  ;;  %v3561_v40 = vld [vmem:[%s4915_s7 + $0xe0] sm:$0xff]  }
 0x3f9   :  { %v3562_v42 = vld [vmem:[%s4915_s7 + $0xa0] sm:$0xff]  }
 0x3fa   :  { %v2466_v46 = vmax.f32 %v2465_v44, 0.0  ;;  %v3563_v44 = vld [vmem:[%s4915_s7 + $0x40] sm:$0xff]  }
 0x3fb   :  { %3416 = vmatprep.subr.bf16.mxu1 %v3563_v44 }
 0x3fc   :  { %v2467_v53 = vadd.f32 1e-05, %v2466_v46 }
 0x3fe   :  { %3588 = vrsqrt.f32 %v2467_v53 }
 0x408   :  { %v3589_v56 = vpop.eup %3588 }
 0x409   :  { %v2469_v62 = vmul.f32 %v3589_v56, %v2413_v54  ;;  %v3564_v56 = vld [vmem:[%s4915_s7] sm:$0xff]  }
 0x40a   :  { %3417 = vmatpush3.bf16.msra.mxu1 %v3564_v56 }
 0x40b   :  { %v2470_v9 = vmul.f32 %v2469_v62, %v2462_v28  ;;  %v2476_v4 = vrot.slane %v2469_v62, %v4034_v37  ;;  %v3565_v62 = vld [vmem:[%s4915_s7 + $0xe8] sm:$0xff]  }
 0x40d   :  { %v2471_v16 = vsub.f32 %v2414_v63, %v2470_v9  ;;  %v2478_v47 = vmul.f32 %v4672_v32, %v2476_v4  ;;  %v2479_v17 = vmul.f32 %v4676_v12, %v2476_v4  ;;  %v2480_v24 = vmul.f32 %v4686_v33, %v2476_v4  ;;  %v3567_v9 = vld [vmem:[%s4915_s7 + $0x48] sm:$0xff]  }
 0x40e   :  { %v2481_v27 = vmul.f32 %v4692_v50, %v2476_v4  ;;  %v2482_v23 = vmul.f32 %v3406_v18, %v2476_v4  ;;  %v2483_v26 = vmul.f32 %v3409_v1, %v2476_v4  ;;  %v2520_v50 = vunpack.c.0.s8 %v2519_v41  ;;  %v3560_v18 = vld [vmem:[%s4915_s7 + $0x98] sm:$0xff]   ;;  %v3566_v4 = vld [vmem:[%s4915_s7 + $0xa8] sm:$0xff]   ;;  %3418 = vmatprep.subr.bf16.mxu1 %v3567_v9 }
 0x40f   :  { %v2489_v43 = vrot.slane %v2471_v16, %v4034_v37  ;;  %v3559_v37 = vld [vmem:[%s4915_s7 + $0xd8] sm:$0xff]   ;;  %v3568_v16 = vld [vmem:[%s4915_s7 + $0x8] sm:$0xff]  }
 0x410   :  { %3444 = vmatprep.subr.bf16.mxu0 %v3559_v37  ;;  %v4747_v1 = vsub.s32 %v2520_v50, %v4028_v30  ;;  %3419 = vmatpush3.bf16.msra.mxu1 %v3568_v16 }
 0x411   :  { %v2491_v48 = vadd.f32 %v2489_v43, %v2478_v47  ;;  %v2493_v3 = vadd.f32 %v2489_v43, %v2480_v24  ;;  %v2492_v11 = vadd.f32 %v2489_v43, %v2479_v17  ;;  %v2494_v8 = vadd.f32 %v2489_v43, %v2481_v27  ;;  %3445 = vmatpush3.bf16.msra.mxu0 %v3560_v18 }
 0x412   :  { %v2496_v31 = vadd.f32 %v2489_v43, %v2483_v26  ;;  %v2495_v39 = vadd.f32 %v2489_v43, %v2482_v23  ;;  %3446 = vmatprep.subr.bf16.mxu0 %v3561_v40  ;;  %v3569_v23 = vld [vmem:[%s4915_s7 + $0x50] sm:$0xff]  }
 0x413   :  { %v2498_v29 = vmax.f32 %v2491_v48, 0.0  ;;  %v2500_v32 = vmax.f32 %v2493_v3, 0.0  ;;  %v2499_v36 = vmax.f32 %v2492_v11, 0.0  ;;  %v2501_v12 = vmax.f32 %v2494_v8, 0.0  ;;  %v3570_v26 = vld [vmem:[%s4915_s7 + $0x10] sm:$0xff]   ;;  %3420 = vmatprep.subr.bf16.mxu1 %v3569_v23  ;;  %v3571_v3 = vld [vmem:[%s4915_s7 + $0x58] sm:$0xff]  }
 0x414   :  { %v2503_v59 = vmax.f32 %v2496_v31, 0.0  ;;  %v2502_v33 = vmax.f32 %v2495_v39, 0.0  ;;  %v3572_v11 = vld [vmem:[%s4915_s7 + $0xf0] sm:$0xff]   ;;  %3421 = vmatpush3.bf16.msra.mxu1 %v3570_v26  ;;  %v3573_v31 = vld [vmem:[%s4915_s7 + $0x18] sm:$0xff]  }
 0x415   :  { %2505 = vst.msk [vmem:[#allocation4] sm:$0xff] %vm2415_vm11, %v2498_v29  ;;  %2507 = vst.msk [vmem:[#allocation4 + $0x10] sm:$0xff] %vm2415_vm11, %v2500_v32  ;;  %3447 = vmatpush3.bf16.msra.mxu0 %v3562_v42  ;;  %v3574_v8 = vld [vmem:[%s4915_s7 + $0xb0] sm:$0xff]   ;;  %3422 = vmatprep.subr.bf16.mxu1 %v3571_v3 }
 0x416   :  { %2506 = vst.msk [vmem:[#allocation4 + $0x8] sm:$0xff] %vm2415_vm11, %v2499_v36  ;;  %2508 = vst.msk [vmem:[#allocation4 + $0x18] sm:$0xff] %vm2415_vm11, %v2501_v12  ;;  %3448 = vmatprep.subr.bf16.mxu0 %v3565_v62  ;;  %v3575_v12 = vld [vmem:[%s4915_s7 + $0x60] sm:$0xff]  }
 0x417   :  { %2510 = vst.msk [vmem:[#allocation4 + $0x28] sm:$0xff] %vm2415_vm11, %v2503_v59  ;;  %2509 = vst.msk [vmem:[#allocation4 + $0x20] sm:$0xff] %vm2415_vm11, %v2502_v33  ;;  %v3576_v59 = vld [vmem:[%s4915_s7 + $0x20] sm:$0xff]  }
 0x418   :  { %3423 = vmatpush3.bf16.msra.mxu1 %v3573_v31 }
 0x419   :  { %3449 = vmatpush3.bf16.msra.mxu0 %v3566_v4  ;;  %3424 = vmatprep.subr.bf16.mxu1 %v3575_v12 }
 0x41a   :  { %3450 = vmatprep.subr.bf16.mxu0 %v3572_v11 }
 0x41c   :  { %v2564_v5 = vld [vmem:[#allocation4 + $0x6] ss:$2 sm:$0x1]  ;;  %v2516_v57 = vld [vmem:[#allocation4 + $0x1] ss:$2 sm:$0x1]  ;;  %3425 = vmatpush3.bf16.msra.mxu1 %v3576_v59 }
 0x41d   :  { %v2572_v0 = vrot.slane %v2564_v5, %v4747_v1  ;;  %v2524_v2 = vrot.slane %v2516_v57, %v4747_v1  ;;  %v2654_v38 = vld [vmem:[#allocation4 + $0x10] ss:$2 sm:$0x1]  ;;  %v2609_v21 = vld [vmem:[#allocation4 + $0xb] ss:$2 sm:$0x1]  ;;  %3451 = vmatpush3.bf16.msra.mxu0 %v3574_v8 }
 0x41e   :  { %v2662_v34 = vrot.slane %v2654_v38, %v4747_v1  ;;  %v2617_v61 = vrot.slane %v2609_v21, %v4747_v1  ;;  %v2744_v10 = vld [vmem:[#allocation4 + $0x1f] ss:$2 sm:$0x1]  ;;  %v2699_v30 = vld [vmem:[#allocation4 + $0x1a] ss:$2 sm:$0x1] }
 0x41f   :  { %2573 = vrot.lane.b32.xlu1 %v2572_v0, %s3592_s2  ;;  %2525 = vrot.lane.b32.xlu0 %v2524_v2, %s3592_s2  ;;  %v2752_v58 = vrot.slane %v2744_v10, %v4747_v1  ;;  %v2707_v6 = vrot.slane %v2699_v30, %v4747_v1  ;;  %v2834_v35 = vld [vmem:[#allocation4 + $0x29] ss:$2 sm:$0x1]  ;;  %v2789_v49 = vld [vmem:[#allocation4 + $0x24] ss:$2 sm:$0x1] }
 0x420   :  { %v2578_v45 = vld [vmem:[#allocation4 + $0x7] ss:$2 sm:$0x1]  ;;  %v2531_v14 = vld [vmem:[#allocation4 + $0x2] ss:$2 sm:$0x1]  ;;  %v2842_v22 = vrot.slane %v2834_v35, %v4747_v1  ;;  %v2797_v60 = vrot.slane %v2789_v49, %v4747_v1 }
 0x421   :  { %v2561_v25 = vld [vmem:[#allocation4 + $0x5] ss:$2 sm:$0x1]  ;;  %v2512_v19 = vld [vmem:[#allocation4] ss:$2 sm:$0x1]  ;;  %v2586_v46 = vrot.slane %v2578_v45, %v4747_v1  ;;  %v2539_v53 = vrot.slane %v2531_v14, %v4747_v1 }
 0x422   :  { %2562 = vst.msk [vmem:[#allocation5 + $0x2] sm:$0x1] %vm2513_vm15, %v2561_v25  ;;  %2514 = vst.msk [vmem:[#allocation5] sm:$0x1] %vm2513_vm15, %v2512_v19  ;;  %v3577_v5 = vld [vmem:[%s4915_s7 + $0x68] sm:$0xff]   ;;  %v3579_v57 = vld [vmem:[%s4915_s7 + $0xf8] sm:$0xff]  }
 0x423   :  { %2663 = vrot.lane.b32.xlu1 %v2662_v34, %s3592_s2  ;;  %2618 = vrot.lane.b32.xlu0 %v2617_v61, %s3592_s2  ;;  %v2651_v15 = vld [vmem:[#allocation4 + $0xf] ss:$2 sm:$0x1]  ;;  %v2606_v55 = vld [vmem:[#allocation4 + $0xa] ss:$2 sm:$0x1] }
 0x424   :  { %2652 = vst.msk [vmem:[#allocation5 + $0x6] sm:$0x1] %vm2513_vm15, %v2651_v15  ;;  %2607 = vst.msk [vmem:[#allocation5 + $0x4] sm:$0x1] %vm2513_vm15, %v2606_v55  ;;  %v3581_v0 = vld [vmem:[%s4915_s7 + $0xb8] sm:$0xff]   ;;  %v3578_v2 = vld [vmem:[%s4915_s7 + $0x28] sm:$0xff]   ;;  %3452 = vmatprep.subr.bf16.mxu0 %v3579_v57  ;;  %3426 = vmatprep.subr.bf16.mxu1 %v3577_v5 }
 0x425   :  { %v2741_v7 = vld [vmem:[#allocation4 + $0x1e] ss:$2 sm:$0x1]  ;;  %v2696_v52 = vld [vmem:[#allocation4 + $0x19] ss:$2 sm:$0x1]  ;;  %3453 = vmatpush3.bf16.msra.mxu0 %v3581_v0  ;;  %3427 = vmatpush3.bf16.msra.mxu1 %v3578_v2 }
 0x426   :  { %2742 = vst.msk [vmem:[#allocation5 + $0x3] sm:$0x1] %vm2513_vm15, %v2741_v7  ;;  %2697 = vst.msk [vmem:[#allocation5 + $0x1] sm:$0x1] %vm2513_vm15, %v2696_v52  ;;  %v3580_v34 = vld [vmem:[%s4915_s7 + $0x70] sm:$0xff]   ;;  %v3583_v35 = vld [vmem:[%s4915_s7 + $0x78] sm:$0xff]  }
 0x427   :  { %2753 = vrot.lane.b32.xlu1 %v2752_v58, %s3592_s2  ;;  %2708 = vrot.lane.b32.xlu0 %v2707_v6, %s3592_s2  ;;  %v2831_v20 = vld [vmem:[#allocation4 + $0x28] ss:$2 sm:$0x1]  ;;  %v2786_v28 = vld [vmem:[#allocation4 + $0x23] ss:$2 sm:$0x1] }
 0x428   :  { %2832 = vst.msk [vmem:[#allocation5 + $0x7] sm:$0x1] %vm2513_vm15, %v2831_v20  ;;  %2787 = vst.msk [vmem:[#allocation5 + $0x5] sm:$0x1] %vm2513_vm15, %v2786_v28  ;;  %v3582_v30 = vld [vmem:[%s4915_s7 + $0x30] sm:$0xff]   ;;  %3428 = vmatprep.subr.bf16.mxu1 %v3580_v34  ;;  %v3584_v14 = vld [vmem:[%s4915_s7 + $0x38] sm:$0xff]  }
 0x429   :  { %v2668_v54 = vld [vmem:[#allocation4 + $0x11] ss:$2 sm:$0x1]  ;;  %v2623_v63 = vld [vmem:[#allocation4 + $0xc] ss:$2 sm:$0x1]  ;;  %3429 = vmatpush3.bf16.msra.mxu1 %v3582_v30 }
 0x42a   :  { %v2676_v47 = vrot.slane %v2668_v54, %v4747_v1  ;;  %v2631_v17 = vrot.slane %v2623_v63, %v4747_v1  ;;  %v2758_v24 = vld [vmem:[#allocation4 + $0x20] ss:$2 sm:$0x1]  ;;  %v2713_v27 = vld [vmem:[#allocation4 + $0x1b] ss:$2 sm:$0x1]  ;;  %3430 = vmatprep.subr.bf16.mxu1 %v3583_v35 }
 0x42b   :  { %2843 = vrot.lane.b32.xlu1 %v2842_v22, %s3592_s2  ;;  %2798 = vrot.lane.b32.xlu0 %v2797_v60, %s3592_s2  ;;  %v2766_v43 = vrot.slane %v2758_v24, %v4747_v1  ;;  %v2721_v51 = vrot.slane %v2713_v27, %v4747_v1  ;;  %v2848_v41 = vld [vmem:[#allocation4 + $0x2a] ss:$2 sm:$0x1]  ;;  %v2803_v48 = vld [vmem:[#allocation4 + $0x25] ss:$2 sm:$0x1] }
 0x42c   :  { %v2856_v39 = vrot.slane %v2848_v41, %v4747_v1  ;;  %v2811_v29 = vrot.slane %v2803_v48, %v4747_v1  ;;  %v2592_v32 = vld [vmem:[#allocation4 + $0x8] ss:$2 sm:$0x1]  ;;  %v2546_v36 = vld [vmem:[#allocation4 + $0x3] ss:$2 sm:$0x1] }
 0x42d   :  { %v2600_v33 = vrot.slane %v2592_v32, %v4747_v1  ;;  %v2554_v50 = vrot.slane %v2546_v36, %v4747_v1  ;;  %v2682_v37 = vld [vmem:[#allocation4 + $0x12] ss:$2 sm:$0x1]  ;;  %v2637_v18 = vld [vmem:[#allocation4 + $0xd] ss:$2 sm:$0x1]  ;;  %3431 = vmatpush3.bf16.msra.mxu1 %v3584_v14 }
 0x42e   :  { %v2690_v38 = vrot.slane %v2682_v37, %v4747_v1  ;;  %v2645_v21 = vrot.slane %v2637_v18, %v4747_v1  ;;  %v2772_v61 = vld [vmem:[#allocation4 + $0x21] ss:$2 sm:$0x1]  ;;  %v2727_v10 = vld [vmem:[#allocation4 + $0x1c] ss:$2 sm:$0x1] }
 0x42f   :  { %2587 = vrot.lane.b32.xlu1 %v2586_v46, %s3595_s15  ;;  %2540 = vrot.lane.b32.xlu0 %v2539_v53, %s3595_s15  ;;  %v2780_v58 = vrot.slane %v2772_v61, %v4747_v1  ;;  %v2735_v6 = vrot.slane %v2727_v10, %v4747_v1  ;;  %v2862_v49 = vld [vmem:[#allocation4 + $0x2b] ss:$2 sm:$0x1]  ;;  %v2817_v45 = vld [vmem:[#allocation4 + $0x26] ss:$2 sm:$0x1] }
 0x430   :  { %v2870_v25 = vrot.slane %v2862_v49, %v4747_v1  ;;  %v2825_v19 = vrot.slane %v2817_v45, %v4747_v1  ;;  %v3246_v36 = vand.u32 127, %v706_v13 }
 0x432   :  { %vm3247_vm3 = vcmp.ge.s32.totalorder %v3246_v36, 32 }
 0x433   :  { %2677 = vrot.lane.b32.xlu1 %v2676_v47, %s3595_s15  ;;  %2632 = vrot.lane.b32.xlu0 %v2631_v17, %s3595_s15 }
 0x437   :  { %2767 = vrot.lane.b32.xlu1 %v2766_v43, %s3595_s15  ;;  %2722 = vrot.lane.b32.xlu0 %v2721_v51, %s3595_s15 }
 0x43b   :  { %2857 = vrot.lane.b32.xlu1 %v2856_v39, %s3595_s15  ;;  %2812 = vrot.lane.b32.xlu0 %v2811_v29, %s3595_s15  ;;  %v3320_v29 = vld [vmem:[%s4918_s8] ss:$0 sm:$0xff] }
 0x43f   :  { %2601 = vrot.lane.b32.xlu1 %v2600_v33, %s3597_s1  ;;  %2555 = vrot.lane.b32.xlu0 %v2554_v50, %s3597_s1 }
 0x443   :  { %2691 = vrot.lane.b32.xlu1 %v2690_v38, %s3597_s1  ;;  %2646 = vrot.lane.b32.xlu0 %v2645_v21, %s3597_s1 }
 0x447   :  { %2781 = vrot.lane.b32.xlu1 %v2780_v58, %s3597_s1  ;;  %2736 = vrot.lane.b32.xlu0 %v2735_v6, %s3597_s1 }
 0x44b   :  { %2871 = vrot.lane.b32.xlu1 %v2870_v25, %s3597_s1  ;;  %2826 = vrot.lane.b32.xlu0 %v2825_v19, %s3597_s1 }
 0x491   :  { %v2574_v22 = vpop.permute.xlu1 %2573  ;;  %v2526_v60 = vpop.permute.xlu0 %2525 }
 0x492   :  { %2576 = vst.msk [vmem:[#allocation5 + $0x2] sm:$0x1] %vm2528_vm5, %v2574_v22  ;;  %2529 = vst.msk [vmem:[#allocation5] sm:$0x1] %vm2528_vm5, %v2526_v60 }
 0x495   :  { %v2664_v15 = vpop.permute.xlu1 %2663  ;;  %v2619_v55 = vpop.permute.xlu0 %2618 }
 0x496   :  { %2666 = vst.msk [vmem:[#allocation5 + $0x6] sm:$0x1] %vm2528_vm5, %v2664_v15  ;;  %2621 = vst.msk [vmem:[#allocation5 + $0x4] sm:$0x1] %vm2528_vm5, %v2619_v55 }
 0x499   :  { %v2754_v7 = vpop.permute.xlu1 %2753  ;;  %v2709_v52 = vpop.permute.xlu0 %2708 }
 0x49a   :  { %2756 = vst.msk [vmem:[#allocation5 + $0x3] sm:$0x1] %vm2528_vm5, %v2754_v7  ;;  %2711 = vst.msk [vmem:[#allocation5 + $0x1] sm:$0x1] %vm2528_vm5, %v2709_v52 }
 0x49d   :  { %v2844_v20 = vpop.permute.xlu1 %2843  ;;  %v2799_v28 = vpop.permute.xlu0 %2798 }
 0x49e   :  { %2846 = vst.msk [vmem:[#allocation5 + $0x7] sm:$0x1] %vm2528_vm5, %v2844_v20  ;;  %2801 = vst.msk [vmem:[#allocation5 + $0x5] sm:$0x1] %vm2528_vm5, %v2799_v28 }
 0x4a1   :  { %v2588_v40 = vpop.permute.xlu1 %2587  ;;  %v2541_v42 = vpop.permute.xlu0 %2540 }
 0x4a2   :  { %2590 = vst.msk [vmem:[#allocation5 + $0x2] sm:$0x1] %vm2543_vm12, %v2588_v40  ;;  %2544 = vst.msk [vmem:[#allocation5] sm:$0x1] %vm2543_vm12, %v2541_v42 }
 0x4a5   :  { %v2678_v44 = vpop.permute.xlu1 %2677  ;;  %v2633_v46 = vpop.permute.xlu0 %2632 }
 0x4a6   :  { %2680 = vst.msk [vmem:[#allocation5 + $0x6] sm:$0x1] %vm2543_vm12, %v2678_v44  ;;  %2635 = vst.msk [vmem:[#allocation5 + $0x4] sm:$0x1] %vm2543_vm12, %v2633_v46 }
 0x4a9   :  { %v2768_v53 = vpop.permute.xlu1 %2767  ;;  %v2723_v54 = vpop.permute.xlu0 %2722 }
 0x4aa   :  { %2770 = vst.msk [vmem:[#allocation5 + $0x3] sm:$0x1] %vm2543_vm12, %v2768_v53  ;;  %2725 = vst.msk [vmem:[#allocation5 + $0x1] sm:$0x1] %vm2543_vm12, %v2723_v54 }
 0x4ad   :  { %v2858_v56 = vpop.permute.xlu1 %2857  ;;  %v2813_v62 = vpop.permute.xlu0 %2812 }
 0x4ae   :  { %2860 = vst.msk [vmem:[#allocation5 + $0x7] sm:$0x1] %vm2543_vm12, %v2858_v56  ;;  %2815 = vst.msk [vmem:[#allocation5 + $0x5] sm:$0x1] %vm2543_vm12, %v2813_v62 }
 0x4b1   :  { %v2602_v63 = vpop.permute.xlu1 %2601  ;;  %v2556_v9 = vpop.permute.xlu0 %2555 }
 0x4b2   :  { %2604 = vst.msk [vmem:[#allocation5 + $0x2] sm:$0x1] %vm2558_vm0, %v2602_v63  ;;  %2559 = vst.msk [vmem:[#allocation5] sm:$0x1] %vm2558_vm0, %v2556_v9 }
 0x4b5   :  { %v2692_v4 = vpop.permute.xlu1 %2691  ;;  %v2647_v16 = vpop.permute.xlu0 %2646 }
 0x4b6   :  { %2694 = vst.msk [vmem:[#allocation5 + $0x6] sm:$0x1] %vm2558_vm0, %v2692_v4  ;;  %2649 = vst.msk [vmem:[#allocation5 + $0x4] sm:$0x1] %vm2558_vm0, %v2647_v16 }
 0x4b9   :  { %v2782_v47 = vpop.permute.xlu1 %2781  ;;  %v2737_v17 = vpop.permute.xlu0 %2736 }
 0x4ba   :  { %2784 = vst.msk [vmem:[#allocation5 + $0x3] sm:$0x1] %vm2558_vm0, %v2782_v47  ;;  %2739 = vst.msk [vmem:[#allocation5 + $0x1] sm:$0x1] %vm2558_vm0, %v2737_v17 }
 0x4bd   :  { %v2872_v24 = vpop.permute.xlu1 %2871  ;;  %v2827_v27 = vpop.permute.xlu0 %2826 }
 0x4be   :  { %2874 = vst.msk [vmem:[#allocation5 + $0x7] sm:$0x1] %vm2558_vm0, %v2872_v24  ;;  %2829 = vst.msk [vmem:[#allocation5 + $0x5] sm:$0x1] %vm2558_vm0, %v2827_v27 }
 0x4c5   :  { %v2875_v23 = vld [vmem:[#allocation5] sm:$0xff] }
 0x4c6   :  { %v2884_v26 = vrot.slane %v2875_v23, %v4747_v1  ;;  %v2877_v43 = vcombine.high %v2875_v23, %v2875_v23 }
 0x4c8   :  { %v2892_v51 = vcombine.high %v2884_v26, %v2884_v26  ;;  %v2891_v41 = vrot.slane %v2877_v43, %v4747_v1  ;;  %v2898_v11 = vpack.c.bf16 %v2884_v26, %v2884_v26 }
 0x4ca   :  { %v2899_v48 = vpack.c.bf16 %v2892_v51, %v2892_v51  ;;  %v2893_v3 = vcombine.high %v2891_v41, %v2891_v41  ;;  %v2900_v31 = vpack.c.bf16 %v2891_v41, %v2891_v41 }
 0x4cc   :  { %3197 = vmatprep.mubr.bf16.mxu1 %v2899_v48  ;;  %v2901_v8 = vpack.c.bf16 %v2893_v3, %v2893_v3 }
 0x4cd   :  { %3198 = vmatmul.mubr.bf16.vlgmr.msra.gmra.mrb[16].mxu1 %v2898_v11 }
 0x4ce   :  { %3237 = vmatprep.mubr.bf16.mxu0 %v2901_v8 }
 0x4cf   :  { %3238 = vmatmul.mubr.bf16.vlgmr.msra.gmra.mrb[44].mxu0 %v2900_v31 }
 0x5a0   :  { %v3432_v39 = vpop.f32.mrb[16].mxu1 }
 0x5a1   :  { %v3433_v32 = vpop.f32.mrb[17].mxu1 }
 0x5a2   :  { %v3434_v12 = vadd.f32 %v3433_v32, %v3432_v39  ;;  %v3435_v59 = vpop.f32.mrb[18].mxu1  ;;  %v3454_v1 = vpop.f32.mrb[44].mxu0 }
 0x5a3   :  { %v3436_v33 = vpop.f32.mrb[19].mxu1  ;;  %v3455_v50 = vpop.f32.mrb[45].mxu0 }
 0x5a4   :  { %v3200_v37 = vadd.f32 %v3434_v12, %v3320_v29  ;;  %v3456_v18 = vadd.f32 %v3455_v50, %v3454_v1  ;;  %v3457_v5 = vpop.f32.mrb[46].mxu0 }
 0x5a5   :  { %v3458_v57 = vpop.f32.mrb[47].mxu0 }
 0x5a6   :  { %v3240_v0 = vadd.f32 %v3456_v18, %v3200_v37 }
 0x5a8   :  { %v3248_v2 = vsel %vm3247_vm3, %v3240_v0, 0.0 }
 0x5a9   :  { %v3249_v38 = vmul.f32 0.5, %v3248_v2 }
 0x5ab   :  { %v3250_v21 = vmul.f32 1.442695, %v3249_v38 }
 0x5ad   :  { %3590 = vpow2.f32 %v3250_v21 }
 0x5b7   :  { %v3591_v34 = vpop.eup %3590 }
 0x5b8   :  { %v3252_v61 = vsel %vm3247_vm3, %v3591_v34, %v3240_v0 }
 0x5b9   :  { %3254 = vst.msk [vmem:[%s4919_s9] sm:$0x3] %vm3253_vm6, %v3252_v61 }

</bundles_post_ra>
